<compile_context>
chip_gen: v7x
topology: tpu7x:2x2x1
jax: 0.10.0
libtpu: 0.0.40
codegen_flags: <defaults>
</compile_context>

<pallas_src>
import functools

import jax
import jax.numpy as jnp
from jax import lax
from jax.experimental import pallas as pl
from jax.experimental.pallas import tpu as pltpu


# --------------------------------------------------------------------------
# Kernels
# --------------------------------------------------------------------------
def _mm_bias_act_kernel(x_ref, w_ref, b_ref, o_ref, *, apply_relu):
    """out = act(x @ w + b): fused 1x1-conv + folded-BN (+ ReLU)."""
    acc = jnp.dot(x_ref[...], w_ref[...], preferred_element_type=jnp.float32)
    acc = acc + b_ref[...].astype(jnp.float32)
    if apply_relu:
        acc = jnp.maximum(acc, 0.0)
    o_ref[...] = acc.astype(o_ref.dtype)


def _mm_bias_res_relu_kernel(y_ref, w_ref, b_ref, r_ref, o_ref):
    """out = relu(y @ w + b + residual): conv3 + BN3 + identity skip + ReLU."""
    acc = jnp.dot(y_ref[...], w_ref[...], preferred_element_type=jnp.float32)
    acc = acc + b_ref[...].astype(jnp.float32) + r_ref[...].astype(jnp.float32)
    o_ref[...] = jnp.maximum(acc, 0.0).astype(o_ref.dtype)


def _mm2_bias_relu_kernel(y_ref, w3_ref, x_ref, wd_ref, b_ref, o_ref):
    """out = relu(y @ w3 + x @ wd + b): conv3+BN3 and downsample conv+BNd fused."""
    acc = jnp.dot(y_ref[...], w3_ref[...], preferred_element_type=jnp.float32)
    acc = acc + jnp.dot(x_ref[...], wd_ref[...], preferred_element_type=jnp.float32)
    acc = acc + b_ref[...].astype(jnp.float32)
    o_ref[...] = jnp.maximum(acc, 0.0).astype(o_ref.dtype)


def _conv3x3_bn_relu_kernel(x_ref, w_ref, b_ref, o_ref, *, H, W, dilation):
    """Fused 3x3 conv (stride=1, groups=1, dilation d) + folded BN + ReLU.

    x_ref: (1, H+2d, W+2d, Cin) padded input tile (one batch element)
    w_ref: (9, Cin, Cout) folded tap weights (HWIO flattened over the 3x3 taps)
    b_ref: (1, Cout) folded BN bias
    o_ref: (1, H*W, Cout)
    """
    cin = x_ref.shape[-1]
    cout = o_ref.shape[-1]
    xp = x_ref[0]                                   # load padded tile once
    acc = jnp.zeros((H * W, cout), jnp.float32)
    for ky in range(3):
        for kx in range(3):
            dy = ky * dilation
            dx = kx * dilation
            patch = xp[dy:dy + H, dx:dx + W, :].reshape(H * W, cin)
            acc = acc + jnp.dot(patch, w_ref[ky * 3 + kx],
                                preferred_element_type=jnp.float32)
    acc = jnp.maximum(acc + b_ref[...].astype(jnp.float32), 0.0)
    o_ref[0] = acc.astype(o_ref.dtype)


# --------------------------------------------------------------------------
# Wrappers
# --------------------------------------------------------------------------
def fused_pointwise(x2d, w_t, bias, *, relu, block_m=512):
    """1x1-conv (+folded BN) (+ReLU) over flattened pixels, tiled on the M axis."""
    M, cin = x2d.shape
    cout = w_t.shape[1]
    tm = min(block_m, M)
    grid = (pl.cdiv(M, tm),)
    return pl.pallas_call(
        functools.partial(_mm_bias_act_kernel, apply_relu=relu),
        out_shape=jax.ShapeDtypeStruct((M, cout), x2d.dtype),
        grid=grid,
        in_specs=[
            pl.BlockSpec((tm, cin), lambda i: (i, 0)),
            pl.BlockSpec((cin, cout), lambda i: (0, 0)),
            pl.BlockSpec((1, cout), lambda i: (0, 0)),
        ],
        out_specs=pl.BlockSpec((tm, cout), lambda i: (i, 0)),
        compiler_params=pltpu.CompilerParams(dimension_semantics=("parallel",)),
        cost_estimate=pl.CostEstimate(
            flops=2 * M * cin * cout,
            transcendentals=0,
            bytes_accessed=4 * (M * cin + cin * cout + cout + M * cout),
        ),
    )(x2d, w_t, bias)


def fused_final(y2d, w3t, bias, x2d, wdt=None, *, block_m=512):
    """conv3 + BN3 (+ fused downsample conv1x1 + BNd) + residual add + ReLU.

    y2d: (M, width) output of conv2.  x2d: (M, Cin) block input (identity path).
    If wdt is None, Cin == Cout and x2d is added directly as the residual.
    Otherwise the downsample projection x2d @ wdt is computed in the same kernel
    (bias already contains b3 + bd).
    """
    M, width = y2d.shape
    cout = w3t.shape[1]
    cin = x2d.shape[1]
    tm = min(block_m, M)
    grid = (pl.cdiv(M, tm),)

    if wdt is None:
        kernel = _mm_bias_res_relu_kernel
        in_specs = [
            pl.BlockSpec((tm, width), lambda i: (i, 0)),
            pl.BlockSpec((width, cout), lambda i: (0, 0)),
            pl.BlockSpec((1, cout), lambda i: (0, 0)),
            pl.BlockSpec((tm, cout), lambda i: (i, 0)),
        ]
        args = [y2d, w3t, bias, x2d]
        flops = 2 * M * width * cout
        bytes_accessed = 4 * (M * width + width * cout + cout + 2 * M * cout)
    else:
        kernel = _mm2_bias_relu_kernel
        in_specs = [
            pl.BlockSpec((tm, width), lambda i: (i, 0)),
            pl.BlockSpec((width, cout), lambda i: (0, 0)),
            pl.BlockSpec((tm, cin), lambda i: (i, 0)),
            pl.BlockSpec((cin, cout), lambda i: (0, 0)),
            pl.BlockSpec((1, cout), lambda i: (0, 0)),
        ]
        args = [y2d, w3t, x2d, wdt, bias]
        flops = 2 * M * (width + cin) * cout
        bytes_accessed = 4 * (M * width + width * cout + M * cin + cin * cout
                              + cout + M * cout)

    return pl.pallas_call(
        kernel,
        out_shape=jax.ShapeDtypeStruct((M, cout), y2d.dtype),
        grid=grid,
        in_specs=in_specs,
        out_specs=pl.BlockSpec((tm, cout), lambda i: (i, 0)),
        compiler_params=pltpu.CompilerParams(dimension_semantics=("parallel",)),
        cost_estimate=pl.CostEstimate(
            flops=flops, transcendentals=0, bytes_accessed=bytes_accessed),
    )(*args)


def fused_conv3x3(x_nhwc, w_taps, bias, *, dilation=1):
    """Fused 3x3 conv + BN + ReLU; grid over batch; returns (N*H*W, Cout)."""
    N, H, W, cin = x_nhwc.shape
    cout = w_taps.shape[2]
    p = dilation
    xpad = jnp.pad(x_nhwc, ((0, 0), (p, p), (p, p), (0, 0)))
    Hp, Wp = H + 2 * p, W + 2 * p

    out = pl.pallas_call(
        functools.partial(_conv3x3_bn_relu_kernel, H=H, W=W, dilation=dilation),
        out_shape=jax.ShapeDtypeStruct((N, H * W, cout), x_nhwc.dtype),
        grid=(N,),
        in_specs=[
            pl.BlockSpec((1, Hp, Wp, cin), lambda n: (n, 0, 0, 0)),
            pl.BlockSpec((9, cin, cout), lambda n: (0, 0, 0)),
            pl.BlockSpec((1, cout), lambda n: (0, 0)),
        ],
        out_specs=pl.BlockSpec((1, H * W, cout), lambda n: (n, 0, 0)),
        compiler_params=pltpu.CompilerParams(dimension_semantics=("parallel",)),
        cost_estimate=pl.CostEstimate(
            flops=2 * N * H * W * 9 * cin * cout,
            transcendentals=0,
            bytes_accessed=4 * (N * Hp * Wp * cin + 9 * cin * cout + cout
                                + N * H * W * cout),
        ),
    )(xpad, w_taps, bias)
    return out.reshape(N * H * W, cout)


def bottleneck_forward(params, x_nchw, *, dilation, has_downsample):
    """Full bottleneck main path: 3 fused Pallas kernels + glue reshapes."""
    N, cin, H, W = x_nchw.shape
    x_nhwc = jnp.transpose(x_nchw, (0, 2, 3, 1))
    M = N * H * W
    x2d = x_nhwc.reshape(M, cin)

    # conv1 (1x1) + bn1 + relu
    y = fused_pointwise(x2d, params["w1t"], params["b1"], relu=True)

    # conv2 (3x3, stride=1, groups=1, dilation) + bn2 + relu
    width = params["w1t"].shape[1]
    y = fused_conv3x3(y.reshape(N, H, W, width), params["w2t"], params["b2"],
                      dilation=dilation)

    # conv3 (1x1) + bn3 (+ downsample conv1x1 + bnd) + residual add + relu
    if has_downsample:
        out2d = fused_final(y, params["w3t"], params["b3d"], x2d,
                            wdt=params["wdt"])
    else:
        out2d = fused_final(y, params["w3t"], params["b3"], x2d)

    cout = params["w3t"].shape[1]
    out = out2d.reshape(N, H, W, cout)
    return jnp.transpose(out, (0, 3, 1, 2))


# --------------------------------------------------------------------------
# Module (parameter construction with BN folding done ONCE at init)
# --------------------------------------------------------------------------
def _fold_bn(gamma, beta, mean, var, eps):
    s = gamma / jnp.sqrt(var + eps)
    return s, beta - mean * s


def _init_bn(key, c):
    k1, k2, k3, k4 = jax.random.split(key, 4)
    gamma = jax.random.uniform(k1, (c,), dtype=jnp.float32, minval=0.5, maxval=1.5)
    beta = 0.1 * jax.random.normal(k2, (c,), dtype=jnp.float32)
    mean = 0.1 * jax.random.normal(k3, (c,), dtype=jnp.float32)
    var = jax.random.uniform(k4, (c,), dtype=jnp.float32, minval=0.5, maxval=1.5)
    return gamma, beta, mean, var


class BottleneckPallas:
    """JAX/Pallas port of the PyTorch Bottleneck block (inference semantics)."""

    expansion = 4

    def __init__(self, inplanes, planes, key, stride=1, has_downsample=False,
                 groups=1, base_width=64, dilation=1, eps=1e-5,
                 dont_return_features=False):
        assert groups == 1, "TODO(synk): grouped 3x3 conv not implemented"
        assert stride == 1, "TODO(synk): strided conv2/downsample not implemented"
        width = int(planes * (base_width / 64.0)) * groups
        out_ch = planes * self.expansion
        self.dilation = dilation
        self.has_downsample = has_downsample
        self.dont_return_features = dont_return_features

        ks = jax.random.split(key, 8)
        p = {}

        # conv1 (width, inplanes) + bn1  -> folded, pre-transposed (Cin, Cout)
        w1 = 0.1 * jax.random.normal(ks[0], (width, inplanes), dtype=jnp.float32)
        s1, bb1 = _fold_bn(*_init_bn(ks[1], width), eps)
        p["w1t"] = (w1 * s1[:, None]).T
        p["b1"] = bb1.reshape(1, width)

        # conv2 (width, width, 3, 3) OIHW + bn2 -> folded HWIO, taps flattened
        w2 = 0.1 * jax.random.normal(ks[2], (width, width, 3, 3), dtype=jnp.float32)
        s2, bb2 = _fold_bn(*_init_bn(ks[3], width), eps)
        w2_hwio = jnp.transpose(w2, (2, 3, 1, 0)) * s2          # (3,3,Cin,Cout)
        p["w2t"] = w2_hwio.reshape(9, width, width)
        p["b2"] = bb2.reshape(1, width)

        # conv3 (out_ch, width) + bn3
        w3 = 0.1 * jax.random.normal(ks[4], (out_ch, width), dtype=jnp.float32)
        s3, bb3 = _fold_bn(*_init_bn(ks[5], out_ch), eps)
        p["w3t"] = (w3 * s3[:, None]).T
        p["b3"] = bb3.reshape(1, out_ch)

        if has_downsample:
            wd = 0.1 * jax.random.normal(ks[6], (out_ch, inplanes), dtype=jnp.float32)
            sd, bbd = _fold_bn(*_init_bn(ks[7], out_ch), eps)
            p["wdt"] = (wd * sd[:, None]).T
            p["bd"] = bbd.reshape(1, out_ch)
            p["b3d"] = p["b3"] + p["bd"]        # combined bias for the fused K3
        else:
            assert inplanes == out_ch, "identity skip requires matching channels"

        self.params = p
        self._fwd = jax.jit(functools.partial(
            bottleneck_forward, dilation=dilation, has_downsample=has_downsample))

    def __call__(self, x):
        # Mirror the PyTorch forward: accept either a tensor or (tensor, features)
        if isinstance(x, (tuple, list)):
            features = x[1]
            x = x[0]
        else:
            features = []
        out = self._fwd(self.params, x)
        features.append(out)
        if self.dont_return_features:
            return out
        return out, features


# --------------------------------------------------------------------------
# Pure-JAX reference (same folded parameters) for correctness checking
# --------------------------------------------------------------------------
def reference_forward(params, x_nchw, *, dilation, has_downsample):
    x = jnp.transpose(x_nchw, (0, 2, 3, 1))
    hp = jax.lax.Precision.HIGHEST

    y = jnp.maximum(
        jnp.einsum("nhwc,cd->nhwd", x, params["w1t"], precision=hp)
        + params["b1"][0], 0.0)

    width = params["w1t"].shape[1]
    w2_hwio = params["w2t"].reshape(3, 3, width, width)
    y = lax.conv_general_dilated(
        y, w2_hwio, window_strides=(1, 1),
        padding=[(dilation, dilation), (dilation, dilation)],
        rhs_dilation=(dilation, dilation),
        dimension_numbers=("NHWC", "HWIO", "NHWC"), precision=hp)
    y = jnp.maximum(y + params["b2"][0], 0.0)

    y = jnp.einsum("nhwc,cd->nhwd", y, params["w3t"], precision=hp) + params["b3"][0]
    if has_downsample:
        identity = (jnp.einsum("nhwc,cd->nhwd", x, params["wdt"], precision=hp)
                    + params["bd"][0])
    else:
        identity = x
    out = jnp.maximum(y + identity, 0.0)
    return jnp.transpose(out, (0, 3, 1, 2))


# --------------------------------------------------------------------------
if __name__ == "__main__":
    key = jax.random.PRNGKey(0)
    k_x1, k_m1, k_x2, k_m2 = jax.random.split(key, 4)

    # Case A: downsample branch (projection shortcut).  N=2, 32->64 ch, 16x16.
    N, inplanes, H, W, planes = 2, 32, 16, 16, 16
    x = jax.random.normal(k_x1, (N, inplanes, H, W), dtype=jnp.float32)
    block = BottleneckPallas(inplanes, planes, key=k_m1, has_downsample=True)

    out, features = block(x)
    out = jax.block_until_ready(out)
    assert out.shape == (N, planes * BottleneckPallas.expansion, H, W)
    assert len(features) == 1

    ref = reference_forward(block.params, x, dilation=1, has_downsample=True)
    ref = jax.block_until_ready(ref)
    err = float(jnp.max(jnp.abs(out - ref)))
    assert jnp.allclose(out, ref, atol=1e-3, rtol=1e-3), f"max_err={err}"

    # Case B: identity shortcut with dilation=2 (dilated cityscapes stage style).
    inplanes2, planes2 = 64, 16                      # inplanes == planes * 4
    x2 = jax.random.normal(k_x2, (N, inplanes2, H, W), dtype=jnp.float32)
    block2 = BottleneckPallas(inplanes2, planes2, key=k_m2,
                              has_downsample=False, dilation=2)
    out2, _ = block2(x2)
    out2 = jax.block_until_ready(out2)
    ref2 = reference_forward(block2.params, x2, dilation=2, has_downsample=False)
    ref2 = jax.block_until_ready(ref2)
    err2 = float(jnp.max(jnp.abs(out2 - ref2)))
    assert jnp.allclose(out2, ref2, atol=1e-3, rtol=1e-3), f"max_err={err2}"

    # Exercise the (tensor, feature-list) input path of the original forward.
    out3, features3 = block((x, [out]))
    out3 = jax.block_until_ready(out3)
    assert len(features3) == 2
    assert jnp.allclose(out3, out, atol=1e-5, rtol=1e-5)

    print("KERNEL_OK")
</pallas_src>

<mosaic_0001>
module attributes {stable_mosaic.version = 11 : i64} {
  func.func @_mm_bias_act_kernel(%arg0: i32, %arg1: memref<512x32xf32, #tpu.memory_space<vmem>>, %arg2: memref<32x16xf32, #tpu.memory_space<vmem>>, %arg3: memref<1x16xf32, #tpu.memory_space<vmem>>, %arg4: memref<512x16xf32, #tpu.memory_space<vmem>>) attributes {dimension_semantics = [#tpu.dimension_semantics<parallel>], iteration_bounds = array<i64: 1>, scalar_prefetch = 0 : i64, scratch_operands = 0 : i64, tpu.core_type = #tpu.core_type<tc>, window_params = [{transform_indices = @transform_0, window_bounds = array<i64: 512, 32>}, {pipeline_mode = #tpu.pipeline_mode<synchronous>, transform_indices = @transform_1, window_bounds = array<i64: 32, 16>}, {pipeline_mode = #tpu.pipeline_mode<synchronous>, transform_indices = @transform_2, window_bounds = array<i64: 1, 16>}, {transform_indices = @transform_3, window_bounds = array<i64: 512, 16>}]} {
    %c0 = arith.constant 0 : index
    %c0_0 = arith.constant 0 : index
    %0 = vector.load %arg1[%c0, %c0_0] : memref<512x32xf32, #tpu.memory_space<vmem>>, vector<512x32xf32>
    %c0_1 = arith.constant 0 : index
    %c0_2 = arith.constant 0 : index
    %1 = vector.load %arg2[%c0_1, %c0_2] : memref<32x16xf32, #tpu.memory_space<vmem>>, vector<32x16xf32>
    %cst = arith.constant dense<0.000000e+00> : vector<512x16xf32>
    %2 = tpu.matmul %0, %1, %cst {dimension_numbers = #tpu.dot_dimension_numbers<[1], [0], [0], [1], [0, 0, 1, 1], [], []>} : vector<512x32xf32>, vector<32x16xf32>, vector<512x16xf32> -> vector<512x16xf32>
    %c0_3 = arith.constant 0 : index
    %c0_4 = arith.constant 0 : index
    %3 = vector.load %arg3[%c0_3, %c0_4] : memref<1x16xf32, #tpu.memory_space<vmem>>, vector<1x16xf32>
    %4 = vector.broadcast %3 : vector<1x16xf32> to vector<512x16xf32>
    %5 = arith.addf %2, %4 : vector<512x16xf32>
    %cst_5 = arith.constant 0.000000e+00 : f32
    %6 = vector.broadcast %cst_5 : f32 to vector<512x16xf32>
    %7 = arith.maximumf %5, %6 : vector<512x16xf32>
    %c0_6 = arith.constant 0 : index
    %c0_7 = arith.constant 0 : index
    %8 = vector.load %arg4[%c0_6, %c0_7] : memref<512x16xf32, #tpu.memory_space<vmem>>, vector<512x16xf32>
    tpu.vector_store %arg4[%c0_6, %c0_7], %7 {strides = array<i32>} : memref<512x16xf32, #tpu.memory_space<vmem>>, vector<512x16xf32>,
    return
  }
  func.func @transform_0(%arg0: i32) -> (i32, i32) {
    %c0_i32 = arith.constant 0 : i32
    %c0_i32_0 = arith.constant 0 : i32
    return %arg0, %c0_i32 : i32, i32
  }
  func.func @transform_1(%arg0: i32) -> (i32, i32) {
    %c0_i32 = arith.constant 0 : i32
    %c0_i32_0 = arith.constant 0 : i32
    %c0_i32_1 = arith.constant 0 : i32
    return %c0_i32, %c0_i32_0 : i32, i32
  }
  func.func @transform_2(%arg0: i32) -> (i32, i32) {
    %c0_i32 = arith.constant 0 : i32
    %c0_i32_0 = arith.constant 0 : i32
    %c0_i32_1 = arith.constant 0 : i32
    return %c0_i32, %c0_i32_0 : i32, i32
  }
  func.func @transform_3(%arg0: i32) -> (i32, i32) {
    %c0_i32 = arith.constant 0 : i32
    %c0_i32_0 = arith.constant 0 : i32
    return %arg0, %c0_i32 : i32, i32
  }
}

module attributes {stable_mosaic.version = 11 : i64} {
  func.func @_conv3x3_bn_relu_kernel(%arg0: i32, %arg1: memref<1x18x18x16xf32, #tpu.memory_space<vmem>>, %arg2: memref<9x16x16xf32, #tpu.memory_space<vmem>>, %arg3: memref<1x16xf32, #tpu.memory_space<vmem>>, %arg4: memref<1x256x16xf32, #tpu.memory_space<vmem>>) attributes {dimension_semantics = [#tpu.dimension_semantics<parallel>], iteration_bounds = array<i64: 2>, scalar_prefetch = 0 : i64, scratch_operands = 0 : i64, tpu.core_type = #tpu.core_type<tc>, window_params = [{transform_indices = @transform_0, window_bounds = array<i64: 1, 18, 18, 16>}, {pipeline_mode = #tpu.pipeline_mode<synchronous>, transform_indices = @transform_1, window_bounds = array<i64: 9, 16, 16>}, {pipeline_mode = #tpu.pipeline_mode<synchronous>, transform_indices = @transform_2, window_bounds = array<i64: 1, 16>}, {transform_indices = @transform_3, window_bounds = array<i64: 1, 256, 16>}]} {
    %c0 = arith.constant 0 : index
    %c0_0 = arith.constant 0 : index
    %c0_1 = arith.constant 0 : index
    %c0_2 = arith.constant 0 : index
    %0 = vector.load %arg1[%c0, %c0_0, %c0_1, %c0_2] : memref<1x18x18x16xf32, #tpu.memory_space<vmem>>, vector<1x18x18x16xf32>
    %1 = vector.shape_cast %0 : vector<1x18x18x16xf32> to vector<18x18x16xf32>
    %cst = arith.constant 0.000000e+00 : f32
    %2 = vector.broadcast %cst : f32 to vector<256x16xf32>
    %3 = vector.extract_strided_slice %1 {offsets = [0, 0, 0], sizes = [16, 16, 16], strides = [1, 1, 1]} : vector<18x18x16xf32> to vector<16x16x16xf32>
    %4 = vector.shape_cast %3 : vector<16x16x16xf32> to vector<256x16xf32>
    %c0_3 = arith.constant 0 : index
    %c0_4 = arith.constant 0 : index
    %c0_5 = arith.constant 0 : index
    %5 = vector.load %arg2[%c0_3, %c0_4, %c0_5] : memref<9x16x16xf32, #tpu.memory_space<vmem>>, vector<1x16x16xf32>
    %6 = vector.shape_cast %5 : vector<1x16x16xf32> to vector<16x16xf32>
    %cst_6 = arith.constant dense<0.000000e+00> : vector<256x16xf32>
    %7 = tpu.matmul %4, %6, %cst_6 {dimension_numbers = #tpu.dot_dimension_numbers<[1], [0], [0], [1], [0, 0, 1, 1], [], []>} : vector<256x16xf32>, vector<16x16xf32>, vector<256x16xf32> -> vector<256x16xf32>
    %8 = arith.addf %2, %7 : vector<256x16xf32>
    %9 = vector.extract_strided_slice %1 {offsets = [0, 1, 0], sizes = [16, 16, 16], strides = [1, 1, 1]} : vector<18x18x16xf32> to vector<16x16x16xf32>
    %10 = vector.shape_cast %9 : vector<16x16x16xf32> to vector<256x16xf32>
    %c1 = arith.constant 1 : index
    %c0_7 = arith.constant 0 : index
    %c0_8 = arith.constant 0 : index
    %11 = vector.load %arg2[%c1, %c0_7, %c0_8] : memref<9x16x16xf32, #tpu.memory_space<vmem>>, vector<1x16x16xf32>
    %12 = vector.shape_cast %11 : vector<1x16x16xf32> to vector<16x16xf32>
    %cst_9 = arith.constant dense<0.000000e+00> : vector<256x16xf32>
    %13 = tpu.matmul %10, %12, %cst_9 {dimension_numbers = #tpu.dot_dimension_numbers<[1], [0], [0], [1], [0, 0, 1, 1], [], []>} : vector<256x16xf32>, vector<16x16xf32>, vector<256x16xf32> -> vector<256x16xf32>
    %14 = arith.addf %8, %13 : vector<256x16xf32>
    %15 = vector.extract_strided_slice %1 {offsets = [0, 2, 0], sizes = [16, 16, 16], strides = [1, 1, 1]} : vector<18x18x16xf32> to vector<16x16x16xf32>
    %16 = vector.shape_cast %15 : vector<16x16x16xf32> to vector<256x16xf32>
    %c2 = arith.constant 2 : index
    %c0_10 = arith.constant 0 : index
    %c0_11 = arith.constant 0 : index
    %17 = vector.load %arg2[%c2, %c0_10, %c0_11] : memref<9x16x16xf32, #tpu.memory_space<vmem>>, vector<1x16x16xf32>
    %18 = vector.shape_cast %17 : vector<1x16x16xf32> to vector<16x16xf32>
    %cst_12 = arith.constant dense<0.000000e+00> : vector<256x16xf32>
    %19 = tpu.matmul %16, %18, %cst_12 {dimension_numbers = #tpu.dot_dimension_numbers<[1], [0], [0], [1], [0, 0, 1, 1], [], []>} : vector<256x16xf32>, vector<16x16xf32>, vector<256x16xf32> -> vector<256x16xf32>
    %20 = arith.addf %14, %19 : vector<256x16xf32>
    %21 = vector.extract_strided_slice %1 {offsets = [1, 0, 0], sizes = [16, 16, 16], strides = [1, 1, 1]} : vector<18x18x16xf32> to vector<16x16x16xf32>
    %22 = vector.shape_cast %21 : vector<16x16x16xf32> to vector<256x16xf32>
    %c3 = arith.constant 3 : index
    %c0_13 = arith.constant 0 : index
    %c0_14 = arith.constant 0 : index
    %23 = vector.load %arg2[%c3, %c0_13, %c0_14] : memref<9x16x16xf32, #tpu.memory_space<vmem>>, vector<1x16x16xf32>
    %24 = vector.shape_cast %23 : vector<1x16x16xf32> to vector<16x16xf32>
    %cst_15 = arith.constant dense<0.000000e+00> : vector<256x16xf32>
    %25 = tpu.matmul %22, %24, %cst_15 {dimension_numbers = #tpu.dot_dimension_numbers<[1], [0], [0], [1], [0, 0, 1, 1], [], []>} : vector<256x16xf32>, vector<16x16xf32>, vector<256x16xf32> -> vector<256x16xf32>
    %26 = arith.addf %20, %25 : vector<256x16xf32>
    %27 = vector.extract_strided_slice %1 {offsets = [1, 1, 0], sizes = [16, 16, 16], strides = [1, 1, 1]} : vector<18x18x16xf32> to vector<16x16x16xf32>
    %28 = vector.shape_cast %27 : vector<16x16x16xf32> to vector<256x16xf32>
    %c4 = arith.constant 4 : index
    %c0_16 = arith.constant 0 : index
    %c0_17 = arith.constant 0 : index
    %29 = vector.load %arg2[%c4, %c0_16, %c0_17] : memref<9x16x16xf32, #tpu.memory_space<vmem>>, vector<1x16x16xf32>
    %30 = vector.shape_cast %29 : vector<1x16x16xf32> to vector<16x16xf32>
    %cst_18 = arith.constant dense<0.000000e+00> : vector<256x16xf32>
    %31 = tpu.matmul %28, %30, %cst_18 {dimension_numbers = #tpu.dot_dimension_numbers<[1], [0], [0], [1], [0, 0, 1, 1], [], []>} : vector<256x16xf32>, vector<16x16xf32>, vector<256x16xf32> -> vector<256x16xf32>
    %32 = arith.addf %26, %31 : vector<256x16xf32>
    %33 = vector.extract_strided_slice %1 {offsets = [1, 2, 0], sizes = [16, 16, 16], strides = [1, 1, 1]} : vector<18x18x16xf32> to vector<16x16x16xf32>
    %34 = vector.shape_cast %33 : vector<16x16x16xf32> to vector<256x16xf32>
    %c5 = arith.constant 5 : index
    %c0_19 = arith.constant 0 : index
    %c0_20 = arith.constant 0 : index
    %35 = vector.load %arg2[%c5, %c0_19, %c0_20] : memref<9x16x16xf32, #tpu.memory_space<vmem>>, vector<1x16x16xf32>
    %36 = vector.shape_cast %35 : vector<1x16x16xf32> to vector<16x16xf32>
    %cst_21 = arith.constant dense<0.000000e+00> : vector<256x16xf32>
    %37 = tpu.matmul %34, %36, %cst_21 {dimension_numbers = #tpu.dot_dimension_numbers<[1], [0], [0], [1], [0, 0, 1, 1], [], []>} : vector<256x16xf32>, vector<16x16xf32>, vector<256x16xf32> -> vector<256x16xf32>
    %38 = arith.addf %32, %37 : vector<256x16xf32>
    %39 = vector.extract_strided_slice %1 {offsets = [2, 0, 0], sizes = [16, 16, 16], strides = [1, 1, 1]} : vector<18x18x16xf32> to vector<16x16x16xf32>
    %40 = vector.shape_cast %39 : vector<16x16x16xf32> to vector<256x16xf32>
    %c6 = arith.constant 6 : index
    %c0_22 = arith.constant 0 : index
    %c0_23 = arith.constant 0 : index
    %41 = vector.load %arg2[%c6, %c0_22, %c0_23] : memref<9x16x16xf32, #tpu.memory_space<vmem>>, vector<1x16x16xf32>
    %42 = vector.shape_cast %41 : vector<1x16x16xf32> to vector<16x16xf32>
    %cst_24 = arith.constant dense<0.000000e+00> : vector<256x16xf32>
    %43 = tpu.matmul %40, %42, %cst_24 {dimension_numbers = #tpu.dot_dimension_numbers<[1], [0], [0], [1], [0, 0, 1, 1], [], []>} : vector<256x16xf32>, vector<16x16xf32>, vector<256x16xf32> -> vector<256x16xf32>
    %44 = arith.addf %38, %43 : vector<256x16xf32>
    %45 = vector.extract_strided_slice %1 {offsets = [2, 1, 0], sizes = [16, 16, 16], strides = [1, 1, 1]} : vector<18x18x16xf32> to vector<16x16x16xf32>
    %46 = vector.shape_cast %45 : vector<16x16x16xf32> to vector<256x16xf32>
    %c7 = arith.constant 7 : index
    %c0_25 = arith.constant 0 : index
    %c0_26 = arith.constant 0 : index
    %47 = vector.load %arg2[%c7, %c0_25, %c0_26] : memref<9x16x16xf32, #tpu.memory_space<vmem>>, vector<1x16x16xf32>
    %48 = vector.shape_cast %47 : vector<1x16x16xf32> to vector<16x16xf32>
    %cst_27 = arith.constant dense<0.000000e+00> : vector<256x16xf32>
    %49 = tpu.matmul %46, %48, %cst_27 {dimension_numbers = #tpu.dot_dimension_numbers<[1], [0], [0], [1], [0, 0, 1, 1], [], []>} : vector<256x16xf32>, vector<16x16xf32>, vector<256x16xf32> -> vector<256x16xf32>
    %50 = arith.addf %44, %49 : vector<256x16xf32>
    %51 = vector.extract_strided_slice %1 {offsets = [2, 2, 0], sizes = [16, 16, 16], strides = [1, 1, 1]} : vector<18x18x16xf32> to vector<16x16x16xf32>
    %52 = vector.shape_cast %51 : vector<16x16x16xf32> to vector<256x16xf32>
    %c8 = arith.constant 8 : index
    %c0_28 = arith.constant 0 : index
    %c0_29 = arith.constant 0 : index
    %53 = vector.load %arg2[%c8, %c0_28, %c0_29] : memref<9x16x16xf32, #tpu.memory_space<vmem>>, vector<1x16x16xf32>
    %54 = vector.shape_cast %53 : vector<1x16x16xf32> to vector<16x16xf32>
    %cst_30 = arith.constant dense<0.000000e+00> : vector<256x16xf32>
    %55 = tpu.matmul %52, %54, %cst_30 {dimension_numbers = #tpu.dot_dimension_numbers<[1], [0], [0], [1], [0, 0, 1, 1], [], []>} : vector<256x16xf32>, vector<16x16xf32>, vector<256x16xf32> -> vector<256x16xf32>
    %56 = arith.addf %50, %55 : vector<256x16xf32>
    %c0_31 = arith.constant 0 : index
    %c0_32 = arith.constant 0 : index
    %57 = vector.load %arg3[%c0_31, %c0_32] : memref<1x16xf32, #tpu.memory_space<vmem>>, vector<1x16xf32>
    %58 = vector.broadcast %57 : vector<1x16xf32> to vector<256x16xf32>
    %59 = arith.addf %56, %58 : vector<256x16xf32>
    %cst_33 = arith.constant 0.000000e+00 : f32
    %60 = vector.broadcast %cst_33 : f32 to vector<256x16xf32>
    %61 = arith.maximumf %59, %60 : vector<256x16xf32>
    %c0_34 = arith.constant 0 : index
    %c0_35 = arith.constant 0 : index
    %c0_36 = arith.constant 0 : index
    %62 = vector.load %arg4[%c0_34, %c0_35, %c0_36] : memref<1x256x16xf32, #tpu.memory_space<vmem>>, vector<1x256x16xf32>
    %63 = vector.shape_cast %62 : vector<1x256x16xf32> to vector<256x16xf32>
    %64 = vector.shape_cast %61 : vector<256x16xf32> to vector<1x256x16xf32>
    tpu.vector_store %arg4[%c0_34, %c0_35, %c0_36], %64 {strides = array<i32>} : memref<1x256x16xf32, #tpu.memory_space<vmem>>, vector<1x256x16xf32>,
    return
  }
  func.func @transform_0(%arg0: i32) -> (i32, i32, i32, i32) {
    %c0_i32 = arith.constant 0 : i32
    %c0_i32_0 = arith.constant 0 : i32
    %c0_i32_1 = arith.constant 0 : i32
    %c0_i32_2 = arith.constant 0 : i32
    return %arg0, %c0_i32, %c0_i32_0, %c0_i32_1 : i32, i32, i32, i32
  }
  func.func @transform_1(%arg0: i32) -> (i32, i32, i32) {
    %c0_i32 = arith.constant 0 : i32
    %c0_i32_0 = arith.constant 0 : i32
    %c0_i32_1 = arith.constant 0 : i32
    %c0_i32_2 = arith.constant 0 : i32
    return %c0_i32, %c0_i32_0, %c0_i32_1 : i32, i32, i32
  }
  func.func @transform_2(%arg0: i32) -> (i32, i32) {
    %c0_i32 = arith.constant 0 : i32
    %c0_i32_0 = arith.constant 0 : i32
    %c0_i32_1 = arith.constant 0 : i32
    return %c0_i32, %c0_i32_0 : i32, i32
  }
  func.func @transform_3(%arg0: i32) -> (i32, i32, i32) {
    %c0_i32 = arith.constant 0 : i32
    %c0_i32_0 = arith.constant 0 : i32
    %c0_i32_1 = arith.constant 0 : i32
    return %arg0, %c0_i32, %c0_i32_0 : i32, i32, i32
  }
}

module attributes {stable_mosaic.version = 11 : i64} {
  func.func @_mm2_bias_relu_kernel(%arg0: i32, %arg1: memref<512x16xf32, #tpu.memory_space<vmem>>, %arg2: memref<16x64xf32, #tpu.memory_space<vmem>>, %arg3: memref<512x32xf32, #tpu.memory_space<vmem>>, %arg4: memref<32x64xf32, #tpu.memory_space<vmem>>, %arg5: memref<1x64xf32, #tpu.memory_space<vmem>>, %arg6: memref<512x64xf32, #tpu.memory_space<vmem>>) attributes {dimension_semantics = [#tpu.dimension_semantics<parallel>], iteration_bounds = array<i64: 1>, scalar_prefetch = 0 : i64, scratch_operands = 0 : i64, tpu.core_type = #tpu.core_type<tc>, window_params = [{transform_indices = @transform_0, window_bounds = array<i64: 512, 16>}, {pipeline_mode = #tpu.pipeline_mode<synchronous>, transform_indices = @transform_1, window_bounds = array<i64: 16, 64>}, {transform_indices = @transform_2, window_bounds = array<i64: 512, 32>}, {pipeline_mode = #tpu.pipeline_mode<synchronous>, transform_indices = @transform_3, window_bounds = array<i64: 32, 64>}, {pipeline_mode = #tpu.pipeline_mode<synchronous>, transform_indices = @transform_4, window_bounds = array<i64: 1, 64>}, {transform_indices = @transform_5, window_bounds = array<i64: 512, 64>}]} {
    %c0 = arith.constant 0 : index
    %c0_0 = arith.constant 0 : index
    %0 = vector.load %arg1[%c0, %c0_0] : memref<512x16xf32, #tpu.memory_space<vmem>>, vector<512x16xf32>
    %c0_1 = arith.constant 0 : index
    %c0_2 = arith.constant 0 : index
    %1 = vector.load %arg2[%c0_1, %c0_2] : memref<16x64xf32, #tpu.memory_space<vmem>>, vector<16x64xf32>
    %cst = arith.constant dense<0.000000e+00> : vector<512x64xf32>
    %2 = tpu.matmul %0, %1, %cst {dimension_numbers = #tpu.dot_dimension_numbers<[1], [0], [0], [1], [0, 0, 1, 1], [], []>} : vector<512x16xf32>, vector<16x64xf32>, vector<512x64xf32> -> vector<512x64xf32>
    %c0_3 = arith.constant 0 : index
    %c0_4 = arith.constant 0 : index
    %3 = vector.load %arg3[%c0_3, %c0_4] : memref<512x32xf32, #tpu.memory_space<vmem>>, vector<512x32xf32>
    %c0_5 = arith.constant 0 : index
    %c0_6 = arith.constant 0 : index
    %4 = vector.load %arg4[%c0_5, %c0_6] : memref<32x64xf32, #tpu.memory_space<vmem>>, vector<32x64xf32>
    %cst_7 = arith.constant dense<0.000000e+00> : vector<512x64xf32>
    %5 = tpu.matmul %3, %4, %cst_7 {dimension_numbers = #tpu.dot_dimension_numbers<[1], [0], [0], [1], [0, 0, 1, 1], [], []>} : vector<512x32xf32>, vector<32x64xf32>, vector<512x64xf32> -> vector<512x64xf32>
    %6 = arith.addf %2, %5 : vector<512x64xf32>
    %c0_8 = arith.constant 0 : index
    %c0_9 = arith.constant 0 : index
    %7 = vector.load %arg5[%c0_8, %c0_9] : memref<1x64xf32, #tpu.memory_space<vmem>>, vector<1x64xf32>
    %8 = vector.broadcast %7 : vector<1x64xf32> to vector<512x64xf32>
    %9 = arith.addf %6, %8 : vector<512x64xf32>
    %cst_10 = arith.constant 0.000000e+00 : f32
    %10 = vector.broadcast %cst_10 : f32 to vector<512x64xf32>
    %11 = arith.maximumf %9, %10 : vector<512x64xf32>
    %c0_11 = arith.constant 0 : index
    %c0_12 = arith.constant 0 : index
    %12 = vector.load %arg6[%c0_11, %c0_12] : memref<512x64xf32, #tpu.memory_space<vmem>>, vector<512x64xf32>
    tpu.vector_store %arg6[%c0_11, %c0_12], %11 {strides = array<i32>} : memref<512x64xf32, #tpu.memory_space<vmem>>, vector<512x64xf32>,
    return
  }
  func.func @transform_0(%arg0: i32) -> (i32, i32) {
    %c0_i32 = arith.constant 0 : i32
    %c0_i32_0 = arith.constant 0 : i32
    return %arg0, %c0_i32 : i32, i32
  }
  func.func @transform_1(%arg0: i32) -> (i32, i32) {
    %c0_i32 = arith.constant 0 : i32
    %c0_i32_0 = arith.constant 0 : i32
    %c0_i32_1 = arith.constant 0 : i32
    return %c0_i32, %c0_i32_0 : i32, i32
  }
  func.func @transform_2(%arg0: i32) -> (i32, i32) {
    %c0_i32 = arith.constant 0 : i32
    %c0_i32_0 = arith.constant 0 : i32
    return %arg0, %c0_i32 : i32, i32
  }
  func.func @transform_3(%arg0: i32) -> (i32, i32) {
    %c0_i32 = arith.constant 0 : i32
    %c0_i32_0 = arith.constant 0 : i32
    %c0_i32_1 = arith.constant 0 : i32
    return %c0_i32, %c0_i32_0 : i32, i32
  }
  func.func @transform_4(%arg0: i32) -> (i32, i32) {
    %c0_i32 = arith.constant 0 : i32
    %c0_i32_0 = arith.constant 0 : i32
    %c0_i32_1 = arith.constant 0 : i32
    return %c0_i32, %c0_i32_0 : i32, i32
  }
  func.func @transform_5(%arg0: i32) -> (i32, i32) {
    %c0_i32 = arith.constant 0 : i32
    %c0_i32_0 = arith.constant 0 : i32
    return %arg0, %c0_i32 : i32, i32
  }
}

</mosaic_0001>

<bundles_post_ra>
// kernel: bottleneck_forward.3
= control target key start
LH: loop header
LB: loop body
LE: loop exit
PB: predicated region body
PF: predicated region fallthrough
CT: control target
= control target key end

     0   :  { %8 = vsyncpa [#allocation3], 0  ;;  %s1091_s12 = smov [#allocation2]   ;;  %s1527_s0 = inlined_call_operand.hbm [shape: f32[512,32], index: 0, kind: input, shape index: {}]   ;;  %s1528_s1 = inlined_call_operand.vmem [shape: f32[32,16], index: 1, kind: input, shape index: {}]   ;;  %s1529_s2 = inlined_call_operand.vmem [shape: f32[1,16], index: 2, kind: input, shape index: {}]   ;;  %s1530_s3 = inlined_call_operand.vmem [shape: f32[512,16], index: 3, kind: output, shape index: {}]  }
   0x1   :  { %s14_s13 = sshll.u32 %s1091_s12, 4  ;;  %s1067_s16 = scalar_lea.hbm %s1527_s0, 8192  ;;  %s15_s13 = int_to_ptr.vmem [resolvable:$true] %s14_s13 }
   0x2   :  { %p1068_p0 = scmp.ne.s32.totalorder %s1527_s0, %s1067_s16  ;;  %p1071_p1 = scmp.lt.u32.totalorder %s1067_s16, %s1527_s0 }
   0x4   :  { %p1073_p2 = pnand %p1071_p1, %p1068_p0 }
   0x6   :  { %1076 = shalt.err (!%p1073_p2)
}
   0x7   :  { %s1077_s21 = scalar_lea.vmem %s15_s13, 8192  ;;  %p1082_p4 = scmp.lt.s32.totalorder %s15_s13, %s15_s13 }
   0x8   :  { %p1078_p3 = scmp.ne.s32.totalorder %s15_s13, %s1077_s21  ;;  %p1083_p5 = scmp.lt.s32.totalorder %s1077_s21, %s1077_s21 }
   0xa   :  { %p1084_p6 = por %p1083_p5, %p1082_p4 }
   0xc   :  { %p1085_p7 = pnand %p1084_p6, %p1078_p3 }
   0xe   :  { %1088 = shalt.err (!%p1085_p7)
}
   0xf   :  { %s1092_s22 = smov 128   ;;  %s1093_s23 = smov 8  }
  0x10   :  { %20 = dma.hbm_to_vmem [thread:$0]  %s1527_s0, 8192, %s15_s13, [#allocation3], %s1092_s22, %s1092_s22, %s1093_s23  }
  0x11   :  { %1089 = dma.done.wait [#allocation3], 8192  }
  0x12   :  { %1090 = vsyncadd [#allocation3], 4294959104  ;;  %vm103_vm0 = vcmask 261120   ;;  %v92_v0 = vld [vmem:[%s1528_s1] sm:$0xff]  ;;  %v93_v1 = vld [vmem:[%s1528_s1 + $0x8] sm:$0xff]  ;;  %vm745_vm1 = vcmask 130048  }
  0x13   :  { %v94_v2 = vld [vmem:[%s1528_s1 + $0x10] sm:$0xff]  ;;  %v1052_v3 = vpack.c.bf16 %v93_v1, %v92_v0  ;;  %v95_v4 = vld [vmem:[%s1528_s1 + $0x18] sm:$0xff]  ;;  %v28_v5 = vld [vmem:[#allocation2] sm:$0xff] }
  0x14   :  { %v60_v6 = vld [vmem:[#allocation2 + $0x100] sm:$0xff]  ;;  %v1056_v7 = vpack.c.bf16 %v95_v4, %v94_v2  ;;  %956 = vmatprep.mubr.msk.f32.mxu0 %vm103_vm0, %v28_v5  ;;  %v29_v8 = vld [vmem:[#allocation2 + $0x8] sm:$0xff]  ;;  %v30_v10 = vld [vmem:[#allocation2 + $0x10] sm:$0xff] }
  0x15   :  { %1004 = vmatprep.mubr.msk.f32.mxu1 %vm103_vm0, %v60_v6  ;;  %1053 = vmatprep.subr.bf16.mxu0 %v1052_v3  ;;  %v61_v9 = vld [vmem:[#allocation2 + $0x108] sm:$0xff]  ;;  %v62_v11 = vld [vmem:[#allocation2 + $0x110] sm:$0xff]  ;;  %v31_v12 = vld [vmem:[#allocation2 + $0x18] sm:$0xff] }
  0x16   :  { %1060 = vmatprep.subr.bf16.mxu1 %v1052_v3  ;;  %1055 = vmatpush3.bf16.msra.mxu0 %v1052_v3  ;;  %v63_v13 = vld [vmem:[#allocation2 + $0x118] sm:$0xff]  ;;  %v32_v14 = vld [vmem:[#allocation2 + $0x20] sm:$0xff]  ;;  %v33_v16 = vld [vmem:[#allocation2 + $0x28] sm:$0xff] }
  0x17   :  { %1062 = vmatpush3.bf16.msra.mxu1 %v1052_v3  ;;  %1057 = vmatprep.subr.bf16.mxu0 %v1056_v7  ;;  %v64_v15 = vld [vmem:[#allocation2 + $0x120] sm:$0xff]  ;;  %v65_v17 = vld [vmem:[#allocation2 + $0x128] sm:$0xff]  ;;  %v34_v18 = vld [vmem:[#allocation2 + $0x30] sm:$0xff] }
  0x18   :  { %1061 = vmatprep.subr.bf16.mxu1 %v1056_v7  ;;  %v66_v19 = vld [vmem:[#allocation2 + $0x130] sm:$0xff]  ;;  %v35_v20 = vld [vmem:[#allocation2 + $0x38] sm:$0xff]  ;;  %v36_v22 = vld [vmem:[#allocation2 + $0x40] sm:$0xff] }
  0x19   :  { %v67_v21 = vld [vmem:[#allocation2 + $0x138] sm:$0xff]  ;;  %v68_v23 = vld [vmem:[#allocation2 + $0x140] sm:$0xff]  ;;  %v37_v24 = vld [vmem:[#allocation2 + $0x48] sm:$0xff] }
  0x1a   :  { %1059 = vmatpush3.bf16.msra.mxu0 %v1056_v7  ;;  %v69_v25 = vld [vmem:[#allocation2 + $0x148] sm:$0xff]  ;;  %v38_v26 = vld [vmem:[#allocation2 + $0x50] sm:$0xff]  ;;  %v39_v28 = vld [vmem:[#allocation2 + $0x58] sm:$0xff] }
  0x1b   :  { %1063 = vmatpush3.bf16.msra.mxu1 %v1056_v7  ;;  %v70_v27 = vld [vmem:[#allocation2 + $0x150] sm:$0xff]  ;;  %v71_v29 = vld [vmem:[#allocation2 + $0x158] sm:$0xff]  ;;  %v40_v30 = vld [vmem:[#allocation2 + $0x60] sm:$0xff] }
  0x1c   :  { %v72_v31 = vld [vmem:[#allocation2 + $0x160] sm:$0xff]  ;;  %v41_v32 = vld [vmem:[#allocation2 + $0x68] sm:$0xff]  ;;  %v42_v34 = vld [vmem:[#allocation2 + $0x70] sm:$0xff] }
  0x1d   :  { %957 = vmatmul.mubr.msk.f32.vlgmr.msra.gmra.mrb[0].mxu0 %vm103_vm0, %v29_v8  ;;  %v73_v33 = vld [vmem:[#allocation2 + $0x168] sm:$0xff]  ;;  %v74_v35 = vld [vmem:[#allocation2 + $0x170] sm:$0xff]  ;;  %v43_v36 = vld [vmem:[#allocation2 + $0x78] sm:$0xff] }
  0x1e   :  { %1005 = vmatmul.mubr.msk.f32.vlgmr.msra.gmra.mrb[0].mxu1 %vm103_vm0, %v61_v9  ;;  %959 = vmatprep.mubr.msk.f32.mxu0 %vm103_vm0, %v30_v10  ;;  %v75_v37 = vld [vmem:[#allocation2 + $0x178] sm:$0xff]  ;;  %v44_v38 = vld [vmem:[#allocation2 + $0x80] sm:$0xff]  ;;  %v45_v40 = vld [vmem:[#allocation2 + $0x88] sm:$0xff] }
  0x1f   :  { %1007 = vmatprep.mubr.msk.f32.mxu1 %vm103_vm0, %v62_v11  ;;  %v76_v39 = vld [vmem:[#allocation2 + $0x180] sm:$0xff]  ;;  %v77_v41 = vld [vmem:[#allocation2 + $0x188] sm:$0xff]  ;;  %v46_v42 = vld [vmem:[#allocation2 + $0x90] sm:$0xff] }
  0x20   :  { %v78_v43 = vld [vmem:[#allocation2 + $0x190] sm:$0xff]  ;;  %v47_v44 = vld [vmem:[#allocation2 + $0x98] sm:$0xff]  ;;  %v48_v46 = vld [vmem:[#allocation2 + $0xa0] sm:$0xff] }
  0x21   :  { %960 = vmatmul.mubr.msk.f32.gmra.mrb[2].mxu0 %vm103_vm0, %v31_v12  ;;  %v79_v45 = vld [vmem:[#allocation2 + $0x198] sm:$0xff]  ;;  %v80_v47 = vld [vmem:[#allocation2 + $0x1a0] sm:$0xff]  ;;  %v49_v48 = vld [vmem:[#allocation2 + $0xa8] sm:$0xff] }
  0x22   :  { %1008 = vmatmul.mubr.msk.f32.gmra.mrb[2].mxu1 %vm103_vm0, %v63_v13  ;;  %962 = vmatprep.mubr.msk.f32.mxu0 %vm103_vm0, %v32_v14  ;;  %v81_v49 = vld [vmem:[#allocation2 + $0x1a8] sm:$0xff]  ;;  %v50_v50 = vld [vmem:[#allocation2 + $0xb0] sm:$0xff]  ;;  %v51_v52 = vld [vmem:[#allocation2 + $0xb8] sm:$0xff] }
  0x23   :  { %1010 = vmatprep.mubr.msk.f32.mxu1 %vm103_vm0, %v64_v15  ;;  %v82_v51 = vld [vmem:[#allocation2 + $0x1b0] sm:$0xff]  ;;  %v83_v53 = vld [vmem:[#allocation2 + $0x1b8] sm:$0xff]  ;;  %v52_v54 = vld [vmem:[#allocation2 + $0xc0] sm:$0xff] }
  0x24   :  { %v84_v55 = vld [vmem:[#allocation2 + $0x1c0] sm:$0xff]  ;;  %v53_v56 = vld [vmem:[#allocation2 + $0xc8] sm:$0xff]  ;;  %v54_v58 = vld [vmem:[#allocation2 + $0xd0] sm:$0xff] }
  0x25   :  { %963 = vmatmul.mubr.msk.f32.gmra.mrb[4].mxu0 %vm103_vm0, %v33_v16  ;;  %v85_v57 = vld [vmem:[#allocation2 + $0x1c8] sm:$0xff]  ;;  %v86_v59 = vld [vmem:[#allocation2 + $0x1d0] sm:$0xff]  ;;  %v55_v60 = vld [vmem:[#allocation2 + $0xd8] sm:$0xff] }
  0x26   :  { %1011 = vmatmul.mubr.msk.f32.gmra.mrb[4].mxu1 %vm103_vm0, %v65_v17  ;;  %965 = vmatprep.mubr.msk.f32.mxu0 %vm103_vm0, %v34_v18  ;;  %v87_v61 = vld [vmem:[#allocation2 + $0x1d8] sm:$0xff]  ;;  %v56_v62 = vld [vmem:[#allocation2 + $0xe0] sm:$0xff]  ;;  %v57_v0 = vld [vmem:[#allocation2 + $0xe8] sm:$0xff] }
  0x27   :  { %1013 = vmatprep.mubr.msk.f32.mxu1 %vm103_vm0, %v66_v19  ;;  %v88_v63 = vld [vmem:[#allocation2 + $0x1e0] sm:$0xff]  ;;  %v89_v1 = vld [vmem:[#allocation2 + $0x1e8] sm:$0xff]  ;;  %v58_v2 = vld [vmem:[#allocation2 + $0xf0] sm:$0xff] }
  0x28   :  { %v90_v3 = vld [vmem:[#allocation2 + $0x1f0] sm:$0xff]  ;;  %v59_v4 = vld [vmem:[#allocation2 + $0xf8] sm:$0xff]  ;;  %v1205_v6 = vld [vmem:[%s1529_s2] ss:$0 sm:$0xff] }
  0x29   :  { %966 = vmatmul.mubr.msk.f32.gmra.mrb[6].mxu0 %vm103_vm0, %v35_v20  ;;  %v91_v5 = vld [vmem:[#allocation2 + $0x1f8] sm:$0xff] }
  0x2a   :  { %1014 = vmatmul.mubr.msk.f32.gmra.mrb[6].mxu1 %vm103_vm0, %v67_v21  ;;  %968 = vmatprep.mubr.msk.f32.mxu0 %vm103_vm0, %v36_v22 }
  0x2b   :  { %1016 = vmatprep.mubr.msk.f32.mxu1 %vm103_vm0, %v68_v23 }
  0x2d   :  { %969 = vmatmul.mubr.msk.f32.gmra.mrb[8].mxu0 %vm103_vm0, %v37_v24 }
  0x2e   :  { %1017 = vmatmul.mubr.msk.f32.gmra.mrb[8].mxu1 %vm103_vm0, %v69_v25  ;;  %971 = vmatprep.mubr.msk.f32.mxu0 %vm103_vm0, %v38_v26 }
  0x2f   :  { %1019 = vmatprep.mubr.msk.f32.mxu1 %vm103_vm0, %v70_v27 }
  0x31   :  { %972 = vmatmul.mubr.msk.f32.gmra.mrb[10].mxu0 %vm103_vm0, %v39_v28 }
  0x32   :  { %1020 = vmatmul.mubr.msk.f32.gmra.mrb[10].mxu1 %vm103_vm0, %v71_v29  ;;  %974 = vmatprep.mubr.msk.f32.mxu0 %vm103_vm0, %v40_v30 }
  0x33   :  { %1022 = vmatprep.mubr.msk.f32.mxu1 %vm103_vm0, %v72_v31 }
  0x35   :  { %975 = vmatmul.mubr.msk.f32.gmra.mrb[12].mxu0 %vm103_vm0, %v41_v32 }
  0x36   :  { %1023 = vmatmul.mubr.msk.f32.gmra.mrb[12].mxu1 %vm103_vm0, %v73_v33  ;;  %977 = vmatprep.mubr.msk.f32.mxu0 %vm103_vm0, %v42_v34 }
  0x37   :  { %1025 = vmatprep.mubr.msk.f32.mxu1 %vm103_vm0, %v74_v35 }
  0x39   :  { %978 = vmatmul.mubr.msk.f32.gmra.mrb[14].mxu0 %vm103_vm0, %v43_v36 }
  0x3a   :  { %1026 = vmatmul.mubr.msk.f32.gmra.mrb[14].mxu1 %vm103_vm0, %v75_v37  ;;  %980 = vmatprep.mubr.msk.f32.mxu0 %vm103_vm0, %v44_v38 }
  0x3b   :  { %1028 = vmatprep.mubr.msk.f32.mxu1 %vm103_vm0, %v76_v39 }
  0x3d   :  { %981 = vmatmul.mubr.msk.f32.gmra.mrb[16].mxu0 %vm103_vm0, %v45_v40 }
  0x3e   :  { %1029 = vmatmul.mubr.msk.f32.gmra.mrb[16].mxu1 %vm103_vm0, %v77_v41  ;;  %983 = vmatprep.mubr.msk.f32.mxu0 %vm103_vm0, %v46_v42 }
  0x3f   :  { %1031 = vmatprep.mubr.msk.f32.mxu1 %vm103_vm0, %v78_v43 }
  0x41   :  { %984 = vmatmul.mubr.msk.f32.gmra.mrb[18].mxu0 %vm103_vm0, %v47_v44 }
  0x42   :  { %1032 = vmatmul.mubr.msk.f32.gmra.mrb[18].mxu1 %vm103_vm0, %v79_v45  ;;  %986 = vmatprep.mubr.msk.f32.mxu0 %vm103_vm0, %v48_v46 }
  0x43   :  { %1034 = vmatprep.mubr.msk.f32.mxu1 %vm103_vm0, %v80_v47 }
  0x45   :  { %987 = vmatmul.mubr.msk.f32.gmra.mrb[20].mxu0 %vm103_vm0, %v49_v48 }
  0x46   :  { %1035 = vmatmul.mubr.msk.f32.gmra.mrb[20].mxu1 %vm103_vm0, %v81_v49  ;;  %989 = vmatprep.mubr.msk.f32.mxu0 %vm103_vm0, %v50_v50 }
  0x47   :  { %1037 = vmatprep.mubr.msk.f32.mxu1 %vm103_vm0, %v82_v51 }
  0x49   :  { %990 = vmatmul.mubr.msk.f32.gmra.mrb[22].mxu0 %vm103_vm0, %v51_v52 }
  0x4a   :  { %1038 = vmatmul.mubr.msk.f32.gmra.mrb[22].mxu1 %vm103_vm0, %v83_v53  ;;  %992 = vmatprep.mubr.msk.f32.mxu0 %vm103_vm0, %v52_v54 }
  0x4b   :  { %1040 = vmatprep.mubr.msk.f32.mxu1 %vm103_vm0, %v84_v55 }
  0x4d   :  { %993 = vmatmul.mubr.msk.f32.gmra.mrb[24].mxu0 %vm103_vm0, %v53_v56 }
  0x4e   :  { %1041 = vmatmul.mubr.msk.f32.gmra.mrb[24].mxu1 %vm103_vm0, %v85_v57  ;;  %995 = vmatprep.mubr.msk.f32.mxu0 %vm103_vm0, %v54_v58 }
  0x4f   :  { %1043 = vmatprep.mubr.msk.f32.mxu1 %vm103_vm0, %v86_v59 }
  0x51   :  { %996 = vmatmul.mubr.msk.f32.gmra.mrb[26].mxu0 %vm103_vm0, %v55_v60 }
  0x52   :  { %1044 = vmatmul.mubr.msk.f32.gmra.mrb[26].mxu1 %vm103_vm0, %v87_v61  ;;  %998 = vmatprep.mubr.msk.f32.mxu0 %vm103_vm0, %v56_v62 }
  0x53   :  { %1046 = vmatprep.mubr.msk.f32.mxu1 %vm103_vm0, %v88_v63 }
  0x55   :  { %999 = vmatmul.mubr.msk.f32.gmra.mrb[28].mxu0 %vm103_vm0, %v57_v0 }
  0x56   :  { %1047 = vmatmul.mubr.msk.f32.gmra.mrb[28].mxu1 %vm103_vm0, %v89_v1  ;;  %1001 = vmatprep.mubr.msk.f32.mxu0 %vm103_vm0, %v58_v2 }
  0x57   :  { %1049 = vmatprep.mubr.msk.f32.mxu1 %vm103_vm0, %v90_v3 }
  0x59   :  { %1002 = vmatmul.mubr.msk.f32.gmra.mrb[30].mxu0 %vm103_vm0, %v59_v4 }
  0x5a   :  { %1050 = vmatmul.mubr.msk.f32.gmra.mrb[30].mxu1 %vm103_vm0, %v91_v5 }
  0xf0   :  { %v958_v7 = vpop.f32.mrb[0].mxu0 }
  0xf1   :  { %v1006_v8 = vpop.f32.mrb[0].mxu1  ;;  %v368_v9 = vadd.f32 %v958_v7, %v1205_v6  ;;  %v362_v11 = vpop.f32.mrb[1].mxu0 }
  0xf2   :  { %v528_v10 = vadd.f32 %v1006_v8, %v1205_v6  ;;  %v522_v12 = vpop.f32.mrb[1].mxu1  ;;  %v363_v13 = vadd.f32 %v1205_v6, %v362_v11 }
  0xf3   :  { %v523_v14 = vadd.f32 %v1205_v6, %v522_v12  ;;  %v682_v15 = vmax.f32 %v368_v9, 0.0 }
  0xf4   :  { %v714_v16 = vmax.f32 %v528_v10, 0.0  ;;  %v681_v17 = vmax.f32 %v363_v13, 0.0  ;;  %v961_v19 = vpop.f32.mrb[2].mxu0 }
  0xf5   :  { %v713_v18 = vmax.f32 %v523_v14, 0.0  ;;  %v1009_v20 = vpop.f32.mrb[2].mxu1  ;;  %747 = vst.msk [vmem:[%s1530_s3 + $0x8] sm:$0xff] %vm745_vm1, %v682_v15  ;;  %v378_v21 = vadd.f32 %v961_v19, %v1205_v6  ;;  %v372_v23 = vpop.f32.mrb[3].mxu0 }
  0xf6   :  { %779 = vst.msk [vmem:[%s1530_s3 + $0x108] sm:$0xff] %vm745_vm1, %v714_v16  ;;  %v538_v22 = vadd.f32 %v1009_v20, %v1205_v6  ;;  %v532_v24 = vpop.f32.mrb[3].mxu1  ;;  %746 = vst.msk [vmem:[%s1530_s3] sm:$0xff] %vm745_vm1, %v681_v17  ;;  %v373_v25 = vadd.f32 %v1205_v6, %v372_v23 }
  0xf7   :  { %778 = vst.msk [vmem:[%s1530_s3 + $0x100] sm:$0xff] %vm745_vm1, %v713_v18  ;;  %v533_v26 = vadd.f32 %v1205_v6, %v532_v24  ;;  %v684_v27 = vmax.f32 %v378_v21, 0.0 }
  0xf8   :  { %v716_v28 = vmax.f32 %v538_v22, 0.0  ;;  %v683_v29 = vmax.f32 %v373_v25, 0.0  ;;  %v964_v31 = vpop.f32.mrb[4].mxu0 }
  0xf9   :  { %v715_v30 = vmax.f32 %v533_v26, 0.0  ;;  %v1012_v32 = vpop.f32.mrb[4].mxu1  ;;  %749 = vst.msk [vmem:[%s1530_s3 + $0x18] sm:$0xff] %vm745_vm1, %v684_v27  ;;  %v388_v33 = vadd.f32 %v964_v31, %v1205_v6  ;;  %v382_v35 = vpop.f32.mrb[5].mxu0 }
  0xfa   :  { %781 = vst.msk [vmem:[%s1530_s3 + $0x118] sm:$0xff] %vm745_vm1, %v716_v28  ;;  %v548_v34 = vadd.f32 %v1012_v32, %v1205_v6  ;;  %v542_v36 = vpop.f32.mrb[5].mxu1  ;;  %748 = vst.msk [vmem:[%s1530_s3 + $0x10] sm:$0xff] %vm745_vm1, %v683_v29  ;;  %v383_v37 = vadd.f32 %v1205_v6, %v382_v35 }
  0xfb   :  { %780 = vst.msk [vmem:[%s1530_s3 + $0x110] sm:$0xff] %vm745_vm1, %v715_v30  ;;  %v543_v38 = vadd.f32 %v1205_v6, %v542_v36  ;;  %v686_v39 = vmax.f32 %v388_v33, 0.0 }
  0xfc   :  { %v718_v40 = vmax.f32 %v548_v34, 0.0  ;;  %v685_v41 = vmax.f32 %v383_v37, 0.0  ;;  %v967_v43 = vpop.f32.mrb[6].mxu0 }
  0xfd   :  { %v717_v42 = vmax.f32 %v543_v38, 0.0  ;;  %v1015_v44 = vpop.f32.mrb[6].mxu1  ;;  %751 = vst.msk [vmem:[%s1530_s3 + $0x28] sm:$0xff] %vm745_vm1, %v686_v39  ;;  %v398_v45 = vadd.f32 %v967_v43, %v1205_v6  ;;  %v392_v47 = vpop.f32.mrb[7].mxu0 }
  0xfe   :  { %783 = vst.msk [vmem:[%s1530_s3 + $0x128] sm:$0xff] %vm745_vm1, %v718_v40  ;;  %v558_v46 = vadd.f32 %v1015_v44, %v1205_v6  ;;  %v552_v48 = vpop.f32.mrb[7].mxu1  ;;  %750 = vst.msk [vmem:[%s1530_s3 + $0x20] sm:$0xff] %vm745_vm1, %v685_v41  ;;  %v393_v49 = vadd.f32 %v1205_v6, %v392_v47 }
  0xff   :  { %782 = vst.msk [vmem:[%s1530_s3 + $0x120] sm:$0xff] %vm745_vm1, %v717_v42  ;;  %v553_v50 = vadd.f32 %v1205_v6, %v552_v48  ;;  %v688_v51 = vmax.f32 %v398_v45, 0.0 }
 0x100   :  { %v720_v52 = vmax.f32 %v558_v46, 0.0  ;;  %v687_v53 = vmax.f32 %v393_v49, 0.0  ;;  %v970_v55 = vpop.f32.mrb[8].mxu0 }
 0x101   :  { %v719_v54 = vmax.f32 %v553_v50, 0.0  ;;  %v1018_v56 = vpop.f32.mrb[8].mxu1  ;;  %753 = vst.msk [vmem:[%s1530_s3 + $0x38] sm:$0xff] %vm745_vm1, %v688_v51  ;;  %v408_v57 = vadd.f32 %v970_v55, %v1205_v6  ;;  %v402_v59 = vpop.f32.mrb[9].mxu0 }
 0x102   :  { %785 = vst.msk [vmem:[%s1530_s3 + $0x138] sm:$0xff] %vm745_vm1, %v720_v52  ;;  %v568_v58 = vadd.f32 %v1018_v56, %v1205_v6  ;;  %v562_v60 = vpop.f32.mrb[9].mxu1  ;;  %752 = vst.msk [vmem:[%s1530_s3 + $0x30] sm:$0xff] %vm745_vm1, %v687_v53  ;;  %v403_v61 = vadd.f32 %v1205_v6, %v402_v59 }
 0x103   :  { %784 = vst.msk [vmem:[%s1530_s3 + $0x130] sm:$0xff] %vm745_vm1, %v719_v54  ;;  %v563_v62 = vadd.f32 %v1205_v6, %v562_v60  ;;  %v690_v63 = vmax.f32 %v408_v57, 0.0 }
 0x104   :  { %v722_v0 = vmax.f32 %v568_v58, 0.0  ;;  %v689_v1 = vmax.f32 %v403_v61, 0.0  ;;  %v973_v3 = vpop.f32.mrb[10].mxu0 }
 0x105   :  { %v721_v2 = vmax.f32 %v563_v62, 0.0  ;;  %v1021_v4 = vpop.f32.mrb[10].mxu1  ;;  %755 = vst.msk [vmem:[%s1530_s3 + $0x48] sm:$0xff] %vm745_vm1, %v690_v63  ;;  %v418_v5 = vadd.f32 %v973_v3, %v1205_v6  ;;  %v412_v8 = vpop.f32.mrb[11].mxu0 }
 0x106   :  { %787 = vst.msk [vmem:[%s1530_s3 + $0x148] sm:$0xff] %vm745_vm1, %v722_v0  ;;  %v578_v7 = vadd.f32 %v1021_v4, %v1205_v6  ;;  %v572_v9 = vpop.f32.mrb[11].mxu1  ;;  %754 = vst.msk [vmem:[%s1530_s3 + $0x40] sm:$0xff] %vm745_vm1, %v689_v1  ;;  %v413_v10 = vadd.f32 %v1205_v6, %v412_v8 }
 0x107   :  { %786 = vst.msk [vmem:[%s1530_s3 + $0x140] sm:$0xff] %vm745_vm1, %v721_v2  ;;  %v573_v11 = vadd.f32 %v1205_v6, %v572_v9  ;;  %v692_v12 = vmax.f32 %v418_v5, 0.0 }
 0x108   :  { %v724_v13 = vmax.f32 %v578_v7, 0.0  ;;  %v691_v14 = vmax.f32 %v413_v10, 0.0  ;;  %v976_v16 = vpop.f32.mrb[12].mxu0 }
 0x109   :  { %v723_v15 = vmax.f32 %v573_v11, 0.0  ;;  %v1024_v17 = vpop.f32.mrb[12].mxu1  ;;  %757 = vst.msk [vmem:[%s1530_s3 + $0x58] sm:$0xff] %vm745_vm1, %v692_v12  ;;  %v428_v18 = vadd.f32 %v976_v16, %v1205_v6  ;;  %v422_v20 = vpop.f32.mrb[13].mxu0 }
 0x10a   :  { %789 = vst.msk [vmem:[%s1530_s3 + $0x158] sm:$0xff] %vm745_vm1, %v724_v13  ;;  %v588_v19 = vadd.f32 %v1024_v17, %v1205_v6  ;;  %v582_v21 = vpop.f32.mrb[13].mxu1  ;;  %756 = vst.msk [vmem:[%s1530_s3 + $0x50] sm:$0xff] %vm745_vm1, %v691_v14  ;;  %v423_v22 = vadd.f32 %v1205_v6, %v422_v20 }
 0x10b   :  { %788 = vst.msk [vmem:[%s1530_s3 + $0x150] sm:$0xff] %vm745_vm1, %v723_v15  ;;  %v583_v23 = vadd.f32 %v1205_v6, %v582_v21  ;;  %v694_v24 = vmax.f32 %v428_v18, 0.0 }
 0x10c   :  { %v726_v25 = vmax.f32 %v588_v19, 0.0  ;;  %v693_v26 = vmax.f32 %v423_v22, 0.0  ;;  %v979_v28 = vpop.f32.mrb[14].mxu0 }
 0x10d   :  { %v725_v27 = vmax.f32 %v583_v23, 0.0  ;;  %v1027_v29 = vpop.f32.mrb[14].mxu1  ;;  %759 = vst.msk [vmem:[%s1530_s3 + $0x68] sm:$0xff] %vm745_vm1, %v694_v24  ;;  %v438_v30 = vadd.f32 %v979_v28, %v1205_v6  ;;  %v432_v32 = vpop.f32.mrb[15].mxu0 }
 0x10e   :  { %791 = vst.msk [vmem:[%s1530_s3 + $0x168] sm:$0xff] %vm745_vm1, %v726_v25  ;;  %v598_v31 = vadd.f32 %v1027_v29, %v1205_v6  ;;  %v592_v33 = vpop.f32.mrb[15].mxu1  ;;  %758 = vst.msk [vmem:[%s1530_s3 + $0x60] sm:$0xff] %vm745_vm1, %v693_v26  ;;  %v433_v34 = vadd.f32 %v1205_v6, %v432_v32 }
 0x10f   :  { %790 = vst.msk [vmem:[%s1530_s3 + $0x160] sm:$0xff] %vm745_vm1, %v725_v27  ;;  %v593_v35 = vadd.f32 %v1205_v6, %v592_v33  ;;  %v696_v36 = vmax.f32 %v438_v30, 0.0 }
 0x110   :  { %v728_v37 = vmax.f32 %v598_v31, 0.0  ;;  %v695_v38 = vmax.f32 %v433_v34, 0.0  ;;  %v982_v40 = vpop.f32.mrb[16].mxu0 }
 0x111   :  { %v727_v39 = vmax.f32 %v593_v35, 0.0  ;;  %v1030_v41 = vpop.f32.mrb[16].mxu1  ;;  %761 = vst.msk [vmem:[%s1530_s3 + $0x78] sm:$0xff] %vm745_vm1, %v696_v36  ;;  %v448_v42 = vadd.f32 %v982_v40, %v1205_v6  ;;  %v442_v44 = vpop.f32.mrb[17].mxu0 }
 0x112   :  { %793 = vst.msk [vmem:[%s1530_s3 + $0x178] sm:$0xff] %vm745_vm1, %v728_v37  ;;  %v608_v43 = vadd.f32 %v1030_v41, %v1205_v6  ;;  %v602_v45 = vpop.f32.mrb[17].mxu1  ;;  %760 = vst.msk [vmem:[%s1530_s3 + $0x70] sm:$0xff] %vm745_vm1, %v695_v38  ;;  %v443_v46 = vadd.f32 %v1205_v6, %v442_v44 }
 0x113   :  { %792 = vst.msk [vmem:[%s1530_s3 + $0x170] sm:$0xff] %vm745_vm1, %v727_v39  ;;  %v603_v47 = vadd.f32 %v1205_v6, %v602_v45  ;;  %v698_v48 = vmax.f32 %v448_v42, 0.0 }
 0x114   :  { %v730_v49 = vmax.f32 %v608_v43, 0.0  ;;  %v697_v50 = vmax.f32 %v443_v46, 0.0  ;;  %v985_v52 = vpop.f32.mrb[18].mxu0 }
 0x115   :  { %v729_v51 = vmax.f32 %v603_v47, 0.0  ;;  %v1033_v53 = vpop.f32.mrb[18].mxu1  ;;  %763 = vst.msk [vmem:[%s1530_s3 + $0x88] sm:$0xff] %vm745_vm1, %v698_v48  ;;  %v458_v54 = vadd.f32 %v985_v52, %v1205_v6  ;;  %v452_v56 = vpop.f32.mrb[19].mxu0 }
 0x116   :  { %795 = vst.msk [vmem:[%s1530_s3 + $0x188] sm:$0xff] %vm745_vm1, %v730_v49  ;;  %v618_v55 = vadd.f32 %v1033_v53, %v1205_v6  ;;  %v612_v57 = vpop.f32.mrb[19].mxu1  ;;  %762 = vst.msk [vmem:[%s1530_s3 + $0x80] sm:$0xff] %vm745_vm1, %v697_v50  ;;  %v453_v58 = vadd.f32 %v1205_v6, %v452_v56 }
 0x117   :  { %794 = vst.msk [vmem:[%s1530_s3 + $0x180] sm:$0xff] %vm745_vm1, %v729_v51  ;;  %v613_v59 = vadd.f32 %v1205_v6, %v612_v57  ;;  %v700_v60 = vmax.f32 %v458_v54, 0.0 }
 0x118   :  { %v732_v61 = vmax.f32 %v618_v55, 0.0  ;;  %v699_v62 = vmax.f32 %v453_v58, 0.0  ;;  %v988_v0 = vpop.f32.mrb[20].mxu0 }
 0x119   :  { %v731_v63 = vmax.f32 %v613_v59, 0.0  ;;  %v1036_v1 = vpop.f32.mrb[20].mxu1  ;;  %765 = vst.msk [vmem:[%s1530_s3 + $0x98] sm:$0xff] %vm745_vm1, %v700_v60  ;;  %v468_v2 = vadd.f32 %v988_v0, %v1205_v6  ;;  %v462_v4 = vpop.f32.mrb[21].mxu0 }
 0x11a   :  { %797 = vst.msk [vmem:[%s1530_s3 + $0x198] sm:$0xff] %vm745_vm1, %v732_v61  ;;  %v628_v3 = vadd.f32 %v1036_v1, %v1205_v6  ;;  %v622_v5 = vpop.f32.mrb[21].mxu1  ;;  %764 = vst.msk [vmem:[%s1530_s3 + $0x90] sm:$0xff] %vm745_vm1, %v699_v62  ;;  %v463_v7 = vadd.f32 %v1205_v6, %v462_v4 }
 0x11b   :  { %796 = vst.msk [vmem:[%s1530_s3 + $0x190] sm:$0xff] %vm745_vm1, %v731_v63  ;;  %v623_v8 = vadd.f32 %v1205_v6, %v622_v5  ;;  %v702_v9 = vmax.f32 %v468_v2, 0.0 }
 0x11c   :  { %v734_v10 = vmax.f32 %v628_v3, 0.0  ;;  %v701_v11 = vmax.f32 %v463_v7, 0.0  ;;  %v991_v13 = vpop.f32.mrb[22].mxu0 }
 0x11d   :  { %v733_v12 = vmax.f32 %v623_v8, 0.0  ;;  %v1039_v14 = vpop.f32.mrb[22].mxu1  ;;  %767 = vst.msk [vmem:[%s1530_s3 + $0xa8] sm:$0xff] %vm745_vm1, %v702_v9  ;;  %v478_v15 = vadd.f32 %v991_v13, %v1205_v6  ;;  %v472_v17 = vpop.f32.mrb[23].mxu0 }
 0x11e   :  { %799 = vst.msk [vmem:[%s1530_s3 + $0x1a8] sm:$0xff] %vm745_vm1, %v734_v10  ;;  %v638_v16 = vadd.f32 %v1039_v14, %v1205_v6  ;;  %v632_v18 = vpop.f32.mrb[23].mxu1  ;;  %766 = vst.msk [vmem:[%s1530_s3 + $0xa0] sm:$0xff] %vm745_vm1, %v701_v11  ;;  %v473_v19 = vadd.f32 %v1205_v6, %v472_v17 }
 0x11f   :  { %798 = vst.msk [vmem:[%s1530_s3 + $0x1a0] sm:$0xff] %vm745_vm1, %v733_v12  ;;  %v633_v20 = vadd.f32 %v1205_v6, %v632_v18  ;;  %v704_v21 = vmax.f32 %v478_v15, 0.0 }
 0x120   :  { %v736_v22 = vmax.f32 %v638_v16, 0.0  ;;  %v703_v23 = vmax.f32 %v473_v19, 0.0  ;;  %v994_v25 = vpop.f32.mrb[24].mxu0 }
 0x121   :  { %v735_v24 = vmax.f32 %v633_v20, 0.0  ;;  %v1042_v26 = vpop.f32.mrb[24].mxu1  ;;  %769 = vst.msk [vmem:[%s1530_s3 + $0xb8] sm:$0xff] %vm745_vm1, %v704_v21  ;;  %v488_v27 = vadd.f32 %v994_v25, %v1205_v6  ;;  %v482_v29 = vpop.f32.mrb[25].mxu0 }
 0x122   :  { %801 = vst.msk [vmem:[%s1530_s3 + $0x1b8] sm:$0xff] %vm745_vm1, %v736_v22  ;;  %v648_v28 = vadd.f32 %v1042_v26, %v1205_v6  ;;  %v642_v30 = vpop.f32.mrb[25].mxu1  ;;  %768 = vst.msk [vmem:[%s1530_s3 + $0xb0] sm:$0xff] %vm745_vm1, %v703_v23  ;;  %v483_v31 = vadd.f32 %v1205_v6, %v482_v29 }
 0x123   :  { %800 = vst.msk [vmem:[%s1530_s3 + $0x1b0] sm:$0xff] %vm745_vm1, %v735_v24  ;;  %v643_v32 = vadd.f32 %v1205_v6, %v642_v30  ;;  %v706_v33 = vmax.f32 %v488_v27, 0.0 }
 0x124   :  { %v738_v34 = vmax.f32 %v648_v28, 0.0  ;;  %v705_v35 = vmax.f32 %v483_v31, 0.0  ;;  %v997_v37 = vpop.f32.mrb[26].mxu0 }
 0x125   :  { %v737_v36 = vmax.f32 %v643_v32, 0.0  ;;  %v1045_v38 = vpop.f32.mrb[26].mxu1  ;;  %771 = vst.msk [vmem:[%s1530_s3 + $0xc8] sm:$0xff] %vm745_vm1, %v706_v33  ;;  %v498_v39 = vadd.f32 %v997_v37, %v1205_v6  ;;  %v492_v41 = vpop.f32.mrb[27].mxu0 }
 0x126   :  { %803 = vst.msk [vmem:[%s1530_s3 + $0x1c8] sm:$0xff] %vm745_vm1, %v738_v34  ;;  %v658_v40 = vadd.f32 %v1045_v38, %v1205_v6  ;;  %v652_v42 = vpop.f32.mrb[27].mxu1  ;;  %770 = vst.msk [vmem:[%s1530_s3 + $0xc0] sm:$0xff] %vm745_vm1, %v705_v35  ;;  %v493_v43 = vadd.f32 %v1205_v6, %v492_v41 }
 0x127   :  { %802 = vst.msk [vmem:[%s1530_s3 + $0x1c0] sm:$0xff] %vm745_vm1, %v737_v36  ;;  %v653_v44 = vadd.f32 %v1205_v6, %v652_v42  ;;  %v708_v45 = vmax.f32 %v498_v39, 0.0 }
 0x128   :  { %v740_v46 = vmax.f32 %v658_v40, 0.0  ;;  %v707_v47 = vmax.f32 %v493_v43, 0.0  ;;  %v1000_v49 = vpop.f32.mrb[28].mxu0 }
 0x129   :  { %v739_v48 = vmax.f32 %v653_v44, 0.0  ;;  %v1048_v50 = vpop.f32.mrb[28].mxu1  ;;  %773 = vst.msk [vmem:[%s1530_s3 + $0xd8] sm:$0xff] %vm745_vm1, %v708_v45  ;;  %v508_v51 = vadd.f32 %v1000_v49, %v1205_v6  ;;  %v502_v53 = vpop.f32.mrb[29].mxu0 }
 0x12a   :  { %805 = vst.msk [vmem:[%s1530_s3 + $0x1d8] sm:$0xff] %vm745_vm1, %v740_v46  ;;  %v668_v52 = vadd.f32 %v1048_v50, %v1205_v6  ;;  %v662_v54 = vpop.f32.mrb[29].mxu1  ;;  %772 = vst.msk [vmem:[%s1530_s3 + $0xd0] sm:$0xff] %vm745_vm1, %v707_v47  ;;  %v503_v55 = vadd.f32 %v1205_v6, %v502_v53 }
 0x12b   :  { %804 = vst.msk [vmem:[%s1530_s3 + $0x1d0] sm:$0xff] %vm745_vm1, %v739_v48  ;;  %v663_v56 = vadd.f32 %v1205_v6, %v662_v54  ;;  %v710_v57 = vmax.f32 %v508_v51, 0.0 }
 0x12c   :  { %v742_v58 = vmax.f32 %v668_v52, 0.0  ;;  %v709_v59 = vmax.f32 %v503_v55, 0.0  ;;  %v1003_v61 = vpop.f32.mrb[30].mxu0 }
 0x12d   :  { %v741_v60 = vmax.f32 %v663_v56, 0.0  ;;  %v1051_v62 = vpop.f32.mrb[30].mxu1  ;;  %775 = vst.msk [vmem:[%s1530_s3 + $0xe8] sm:$0xff] %vm745_vm1, %v710_v57  ;;  %v518_v63 = vadd.f32 %v1003_v61, %v1205_v6  ;;  %v512_v1 = vpop.f32.mrb[31].mxu0 }
 0x12e   :  { %807 = vst.msk [vmem:[%s1530_s3 + $0x1e8] sm:$0xff] %vm745_vm1, %v742_v58  ;;  %v678_v0 = vadd.f32 %v1051_v62, %v1205_v6  ;;  %v672_v2 = vpop.f32.mrb[31].mxu1  ;;  %774 = vst.msk [vmem:[%s1530_s3 + $0xe0] sm:$0xff] %vm745_vm1, %v709_v59  ;;  %v513_v3 = vadd.f32 %v1205_v6, %v512_v1 }
 0x12f   :  { %806 = vst.msk [vmem:[%s1530_s3 + $0x1e0] sm:$0xff] %vm745_vm1, %v741_v60  ;;  %v673_v4 = vadd.f32 %v1205_v6, %v672_v2  ;;  %v712_v5 = vmax.f32 %v518_v63, 0.0 }
 0x130   :  { %v744_v7 = vmax.f32 %v678_v0, 0.0  ;;  %v711_v8 = vmax.f32 %v513_v3, 0.0 }
 0x131   :  { %v743_v9 = vmax.f32 %v673_v4, 0.0  ;;  %777 = vst.msk [vmem:[%s1530_s3 + $0xf8] sm:$0xff] %vm745_vm1, %v712_v5 }
 0x132   :  { %809 = vst.msk [vmem:[%s1530_s3 + $0x1f8] sm:$0xff] %vm745_vm1, %v744_v7  ;;  %776 = vst.msk [vmem:[%s1530_s3 + $0xf0] sm:$0xff] %vm745_vm1, %v711_v8 }
 0x133   :  { %808 = vst.msk [vmem:[%s1530_s3 + $0x1f0] sm:$0xff] %vm745_vm1, %v743_v9 }
 0x134   :  { %814 = vsyncpa [#allocation3], 1 }

// kernel: bottleneck_forward.4
= control target key start
LH: loop header
LB: loop body
LE: loop exit
PB: predicated region body
PF: predicated region fallthrough
CT: control target
= control target key end

     0   :  { %s4532_s12 = smov 0   ;;  %s5780_s0 = inlined_call_operand.vmem [shape: f32[2,18,18,16], index: 0, kind: input, shape index: {}]   ;;  %s5781_s1 = inlined_call_operand.vmem [shape: f32[9,16,16], index: 1, kind: input, shape index: {}]   ;;  %s5782_s2 = inlined_call_operand.vmem [shape: f32[1,16], index: 2, kind: input, shape index: {}]   ;;  %s5783_s3 = inlined_call_operand.vmem [shape: f32[2,256,16], index: 3, kind: output, shape index: {}]  }
   0x1 LB: > { %s3111_s13 = sadd.s32 4294967295, %s4510_s12   ;;  %p3115_p0 = scmp.ge.s32.totalorder %s4510_s12, 1  ;;  %s4510_s12 = sphi %s4532_s12, %s13_s12  }
   0x2   : > { %p137_p1 = scmp.lt.s32.totalorder %s4510_s12, 3 }
   0x4   : > { %p138_p2 = pnand %p3115_p0, %p137_p1 }
   0x6   : > { %141 = sbr.rel (%p138_p2) target bundleno = 529 (0x211), region = 32 }
   0xd   : > { %v3119_v0 = vld [vmem:[%s5781_s1 + $0x10] sm:$0xff]  ;;  %v3120_v1 = vld [vmem:[%s5781_s1 + $0x18] sm:$0xff]  ;;  %v3253_v2 = vld [vmem:[%s5781_s1 + $0x40] sm:$0xff]  ;;  %p161_p3 = scmp.lt.s32.totalorder %s3111_s13, 1  ;;  %vm275_vm0 = vcmask 1046528   ;;  %vm359_vm1 = vcmask 130048  }
   0xe   : > { %v4201_v3 = vpack.c.bf16 %v3120_v1, %v3119_v0  ;;  %v3254_v4 = vld [vmem:[%s5781_s1 + $0x48] sm:$0xff]  ;;  %v225_v5 = vld [vmem:[%s5781_s1] sm:$0xff]  ;;  %v3287_v9 = vld [vmem:[%s5781_s1 + $0x50] sm:$0xff]  ;;  %vm938_vm2 = vcmask 1045504  }
   0xf   : > { %v226_v6 = vld [vmem:[%s5781_s1 + $0x8] sm:$0xff]  ;;  %v4558_v7 = vpack.c.bf16 %v3254_v4, %v3253_v2  ;;  %s5959_s13 = smov (!%p161_p3, %s3111_s13), 1  ;;  %v3288_v10 = vld [vmem:[%s5781_s1 + $0x58] sm:$0xff]  ;;  %v3321_v12 = vld [vmem:[%s5781_s1 + $0x60] sm:$0xff] }
  0x10   : > { %v4205_v8 = vpack.c.bf16 %v226_v6, %v225_v5  ;;  %4202 = vmatprep.subr.bf16.mxu1 %v4201_v3  ;;  %v4221_v11 = vpack.c.bf16 %v3288_v10, %v3287_v9  ;;  %s4495_s30 = smul.u32 432, %s5959_s13  ;;  %v3322_v13 = vld [vmem:[%s5781_s1 + $0x68] sm:$0xff]  ;;  %v3185_v17 = vld [vmem:[%s5781_s1 + $0x20] sm:$0xff]  ;;  %s3426_s4 = sshll.u32 %s5959_s13, 8 }
  0x11   : > { %4218 = vmatprep.subr.bf16.mxu0 %v4558_v7  ;;  %4204 = vmatpush3.bf16.msra.mxu1 %v4201_v3  ;;  %v3186_v27 = vld [vmem:[%s5781_s1 + $0x28] sm:$0xff]  ;;  %v4623_v33 = vpack.c.bf16 %v3322_v13, %v3321_v12  ;;  %s5676_s7 = scalar_lea.vmem %s5783_s3, %s3426_s4 }
  0x12   : > { %4220 = vmatpush3.bf16.msra.mxu0 %v4558_v7  ;;  %4206 = vmatprep.subr.bf16.mxu1 %v4205_v8  ;;  %s4574_s6 = scalar_lea.vmem %s5780_s0, %s4495_s30  ;;  %v4650_v46 = vpack.c.bf16 %v3186_v27, %v3185_v17 }
  0x13   : > { %4222 = vmatprep.subr.bf16.mxu0 %v4221_v11  ;;  %v4583_v14 = vld [vmem:[%s4574_s6] sm:$0xff]  ;;  %v4586_v15 = vld [vmem:[%s4574_s6 + $0x8] sm:$0xff]  ;;  %v4589_v16 = vld [vmem:[%s4574_s6 + $0x18] sm:$0xff] }
  0x14   : > { %5857 = vst [vmem:[#allocation2_spill] sm:$0xff] %v4589_v16  ;;  %v276_v18 = vrot.slane %v4583_v14, 1  ;;  %v277_v19 = vrot.slane %v4586_v15, 1  ;;  %v4597_v20 = vld [vmem:[%s4574_s6 + $0x20] sm:$0xff]  ;;  %v281_v21 = vrot.slane %v4589_v16, 1  ;;  %v4609_v26 = vld [vmem:[%s4574_s6 + $0x30] sm:$0xff] }
  0x15   : > { %5858 = vst [vmem:[#allocation3_spill] sm:$0xff] %v4597_v20  ;;  %v4601_v22 = vld [vmem:[%s4574_s6 + $0x10] sm:$0x3]  ;;  %v282_v23 = vrot.slane %v4597_v20, 1  ;;  %v4606_v25 = vld [vmem:[%s4574_s6 + $0x28] sm:$0x3] }
  0x16   : > { %v279_v24 = vrot.slane %v4601_v22, 1  ;;  %v278_v28 = vsel %vm275_vm0, %v276_v18, %v277_v19  ;;  %v284_v29 = vrot.slane %v4606_v25, 1  ;;  %v4617_v30 = vld [vmem:[%s4574_s6 + $0x38] sm:$0xff]  ;;  %v286_v31 = vrot.slane %v4609_v26, 1  ;;  %v4621_v32 = vld [vmem:[%s4574_s6 + $0x40] sm:$0x3] }
  0x17   : > { %3737 = vmatprep.mubr.msk.f32.mxu1 %vm359_vm1, %v278_v28  ;;  %v283_v34 = vsel %vm275_vm0, %v281_v21, %v282_v23  ;;  %v287_v36 = vrot.slane %v4617_v30, 1  ;;  %v289_v37 = vrot.slane %v4621_v32, 1  ;;  %v4631_v38 = vld [vmem:[%s4574_s6 + $0x48] sm:$0xff]  ;;  %v4634_v39 = vld [vmem:[%s4574_s6 + $0x50] sm:$0xff]  ;;  %v4637_v40 = vld [vmem:[%s4574_s6 + $0x58] sm:$0x3] }
  0x18   : > { %v280_v35 = vsel %vm275_vm0, %v277_v19, %v279_v24  ;;  %3945 = vmatprep.mubr.msk.f32.mxu0 %vm359_vm1, %v283_v34  ;;  %v285_v41 = vsel %vm275_vm0, %v282_v23, %v284_v29  ;;  %v291_v42 = vrot.slane %v4631_v38, 1  ;;  %v292_v43 = vrot.slane %v4634_v39, 1  ;;  %v4645_v44 = vld [vmem:[%s4574_s6 + $0x60] sm:$0xff]  ;;  %v4648_v45 = vld [vmem:[%s4574_s6 + $0x68] sm:$0xff]  ;;  %v4669_v53 = vld [vmem:[%s4574_s6 + $0x70] sm:$0x3] }
  0x19   : > { %3738 = vmatmul.mubr.msk.f32.vlgmr.msra.gmra.mrb[0].mxu1 %vm359_vm1, %v280_v35  ;;  %3946 = vmatmul.mubr.msk.f32.vlgmr.msra.gmra.mrb[0].mxu0 %vm359_vm1, %v285_v41  ;;  %v4654_v47 = vsel %vm275_vm0, %v286_v31, %v287_v36  ;;  %v4658_v48 = vsel %vm275_vm0, %v287_v36, %v289_v37  ;;  %v294_v49 = vrot.slane %v4637_v40, 1  ;;  %v296_v51 = vrot.slane %v4645_v44, 1  ;;  %v4674_v54 = vld [vmem:[%s4574_s6 + $0x78] sm:$0xff]  ;;  %v4677_v55 = vld [vmem:[%s4574_s6 + $0x80] sm:$0xff]  ;;  %v4696_v61 = vld [vmem:[%s4574_s6 + $0x88] sm:$0x3] }
  0x1a   : > { %4208 = vmatpush3.bf16.msra.mxu1 %v4205_v8  ;;  %5859 = vst [vmem:[#allocation4_spill] sm:$0xff] %v4654_v47  ;;  %4224 = vmatpush3.bf16.msra.mxu0 %v4221_v11  ;;  %5860 = vst [vmem:[#allocation5_spill] sm:$0xff] %v4658_v48  ;;  %v4664_v50 = vsel %vm275_vm0, %v291_v42, %v292_v43  ;;  %v297_v52 = vrot.slane %v4648_v45, 1  ;;  %v299_v57 = vrot.slane %v4669_v53, 1  ;;  %v301_v59 = vrot.slane %v4674_v54, 1  ;;  %v4701_v62 = vld [vmem:[%s4574_s6 + $0x90] sm:$0xff] }
  0x1b   : > { %3740 = vmatprep.mubr.msk.f32.mxu1 %vm359_vm1, %v283_v34  ;;  %3948 = vmatprep.mubr.msk.f32.mxu0 %vm359_vm1, %v4654_v47  ;;  %5861 = vst [vmem:[#allocation6_spill] sm:$0xff] %v4664_v50  ;;  %v4687_v56 = vsel %vm275_vm0, %v292_v43, %v294_v49  ;;  %v302_v60 = vrot.slane %v4677_v55, 1  ;;  %v4704_v63 = vld [vmem:[%s4574_s6 + $0x98] sm:$0xff]  ;;  %v304_v1 = vrot.slane %v4696_v61, 1  ;;  %v306_v3 = vrot.slane %v4701_v62, 1  ;;  %v4727_v6 = vld [vmem:[%s4574_s6 + $0xa8] sm:$0xff] }
  0x1c   : > { %4226 = vmatprep.subr.bf16.mxu0 %v4623_v33  ;;  %4210 = vmatprep.subr.bf16.mxu1 %v4650_v46  ;;  %5862 = vst [vmem:[#allocation7_spill] sm:$0xff] %v4687_v56  ;;  %v4691_v58 = vsel %vm275_vm0, %v296_v51, %v297_v52  ;;  %v4713_v0 = vsel %vm275_vm0, %v297_v52, %v299_v57  ;;  %v307_v4 = vrot.slane %v4704_v63, 1  ;;  %v4722_v5 = vld [vmem:[%s4574_s6 + $0xa0] sm:$0x3]  ;;  %v4730_v8 = vld [vmem:[%s4574_s6 + $0xb0] sm:$0xff]  ;;  %v311_v12 = vrot.slane %v4727_v6, 1 }
  0x1d   : > { %3741 = vmatmul.mubr.msk.f32.gmra.mrb[2].mxu1 %vm359_vm1, %v285_v41  ;;  %3949 = vmatmul.mubr.msk.f32.gmra.mrb[2].mxu0 %vm359_vm1, %v4658_v48  ;;  %5863 = vst [vmem:[#allocation8_spill] sm:$0xff] %v4691_v58  ;;  %5864 = vst [vmem:[#allocation9_spill] sm:$0xff] %v4713_v0  ;;  %v4717_v2 = vsel %vm275_vm0, %v301_v59, %v302_v60  ;;  %v4739_v9 = vsel %vm275_vm0, %v302_v60, %v304_v1  ;;  %v309_v10 = vrot.slane %v4722_v5, 1  ;;  %v4748_v17 = vld [vmem:[%s4574_s6 + $0xb8] sm:$0x3]  ;;  %v4753_v18 = vld [vmem:[%s4574_s6 + $0xc0] sm:$0xff] }
  0x1e   : > { %3743 = vmatprep.mubr.msk.f32.mxu1 %vm359_vm1, %v4654_v47  ;;  %3951 = vmatprep.mubr.msk.f32.mxu0 %vm359_vm1, %v4664_v50  ;;  %5865 = vst [vmem:[#allocation10_spill] sm:$0xff] %v4717_v2  ;;  %5866 = vst [vmem:[#allocation11_spill] sm:$0xff] %v4739_v9  ;;  %v4743_v11 = vsel %vm275_vm0, %v306_v3, %v307_v4  ;;  %v312_v13 = vrot.slane %v4730_v8, 1  ;;  %v4756_v19 = vld [vmem:[%s4574_s6 + $0xc8] sm:$0xff]  ;;  %v314_v23 = vrot.slane %v4748_v17, 1  ;;  %v316_v27 = vrot.slane %v4753_v18, 1 }
  0x1f   : > { %5867 = vst [vmem:[#allocation12_spill] sm:$0xff] %v4743_v11  ;;  %v4765_v21 = vsel %vm275_vm0, %v307_v4, %v309_v10  ;;  %v317_v28 = vrot.slane %v4756_v19, 1  ;;  %v4774_v29 = vld [vmem:[%s4574_s6 + $0xd0] sm:$0x3]  ;;  %v944_v36 = vrot.slane %v4589_v16, 2  ;;  %v945_v37 = vrot.slane %v4597_v20, 2 }
  0x20   : > { %5868 = vst [vmem:[#allocation13_spill] sm:$0xff] %v4765_v21  ;;  %v4769_v24 = vsel %vm275_vm0, %v311_v12, %v312_v13  ;;  %v4785_v31 = vsel %vm275_vm0, %v312_v13, %v314_v23  ;;  %v319_v34 = vrot.slane %v4774_v29, 1  ;;  %v4794_v41 = vld [vmem:[%s4574_s6 + $0xd8] sm:$0xff]  ;;  %v4797_v42 = vld [vmem:[%s4574_s6 + $0xe0] sm:$0xff]  ;;  %v947_v43 = vrot.slane %v4606_v25, 2  ;;  %v4822_v1 = vld [vmem:[%s4574_s6 + $0xf0] sm:$0xff] }
  0x21   : > { %3744 = vmatmul.mubr.msk.f32.gmra.mrb[4].mxu1 %vm359_vm1, %v4658_v48  ;;  %3952 = vmatmul.mubr.msk.f32.gmra.mrb[4].mxu0 %vm359_vm1, %v4687_v56  ;;  %5869 = vst [vmem:[#allocation14_spill] sm:$0xff] %v4769_v24  ;;  %5870 = vst [vmem:[#allocation15_spill] sm:$0xff] %v4785_v31  ;;  %v4789_v35 = vsel %vm275_vm0, %v316_v27, %v317_v28  ;;  %v321_v51 = vrot.slane %v4794_v41, 1  ;;  %v322_v52 = vrot.slane %v4797_v42, 1  ;;  %v4814_v57 = vld [vmem:[%s4574_s6 + $0xe8] sm:$0x3] }
  0x22   : > { %3746 = vmatprep.mubr.msk.f32.mxu1 %vm359_vm1, %v4664_v50  ;;  %3954 = vmatprep.mubr.msk.f32.mxu0 %vm359_vm1, %v4691_v58  ;;  %5871 = vst [vmem:[#allocation16_spill] sm:$0xff] %v4789_v35  ;;  %v4809_v49 = vsel %vm275_vm0, %v317_v28, %v319_v34  ;;  %v4817_v59 = vsel %vm938_vm2, %v944_v36, %v945_v37  ;;  %v949_v60 = vrot.slane %v4609_v26, 2  ;;  %v950_v25 = vrot.slane %v4617_v30, 2  ;;  %v4825_v3 = vld [vmem:[%s4574_s6 + $0xf8] sm:$0xff]  ;;  %v3355_v4 = vld [vmem:[%s5781_s1 + $0x70] sm:$0xff] }
  0x23   : > { %5872 = vst [vmem:[#allocation17_spill] sm:$0xff] %v4809_v49  ;;  %v3356_v10 = vld [vmem:[%s5781_s1 + $0x78] sm:$0xff]  ;;  %v324_v12 = vrot.slane %v4814_v57, 1  ;;  %v952_v13 = vrot.slane %v4621_v32, 2  ;;  %v4844_v23 = vsel %vm938_vm2, %v945_v37, %v947_v43  ;;  %v4847_v27 = vsel %vm275_vm0, %v321_v51, %v322_v52  ;;  %v4852_v36 = vld [vmem:[%s4574_s6 + $0x100] sm:$0x3] }
  0x24   : > { %5873 = vst [vmem:[#allocation18_spill] sm:$0xff] %v4847_v27  ;;  %v326_v28 = vrot.slane %v4822_v1, 1  ;;  %v327_v34 = vrot.slane %v4825_v3, 1  ;;  %v954_v32 = vrot.slane %v4631_v38, 2  ;;  %v4863_v37 = vld [vmem:[%s4574_s6 + $0x110] sm:$0xff]  ;;  %v4865_v43 = vpack.c.bf16 %v3356_v10, %v3355_v4 }
  0x25   : > { %3747 = vmatmul.mubr.msk.f32.gmra.mrb[6].mxu1 %vm359_vm1, %v4687_v56  ;;  %3955 = vmatmul.mubr.msk.f32.gmra.mrb[6].mxu0 %vm359_vm1, %v4713_v0  ;;  %v4874_v51 = vsel %vm275_vm0, %v322_v52, %v324_v12  ;;  %v329_v4 = vrot.slane %v4852_v36, 1  ;;  %v332_v52 = vrot.slane %v4863_v37, 1  ;;  %v4890_v12 = vld [vmem:[%s4574_s6 + $0x118] sm:$0x3]  ;;  %v967_v56 = vrot.slane %v4696_v61, 2 }
  0x26   : > { %3749 = vmatprep.mubr.msk.f32.mxu1 %vm359_vm1, %v4691_v58  ;;  %3957 = vmatprep.mubr.msk.f32.mxu0 %vm359_vm1, %v4717_v2  ;;  %5874 = vst [vmem:[#allocation19_spill] sm:$0xff] %v4874_v51  ;;  %v4884_v10 = vsel %vm275_vm0, %v326_v28, %v327_v34  ;;  %v4901_v28 = vld [vmem:[%s4574_s6 + $0x128] sm:$0xff]  ;;  %v4934_v58 = vld [vmem:[%s4574_s6 + $0x138] sm:$0xff]  ;;  %v972_v47 = vrot.slane %v4722_v5, 2  ;;  %v974_v5 = vrot.slane %v4727_v6, 2 }
  0x27   : > { %5876 = vst [vmem:[#allocation21_spill] sm:$0xff] %v4884_v10  ;;  %v341_v50 = vrot.slane %v4934_v58, 1  ;;  %v4961_v48 = vld [vmem:[%s4574_s6 + $0x148] sm:$0x3] }
  0x29   : > { %3750 = vmatmul.mubr.msk.f32.gmra.mrb[8].mxu1 %vm359_vm1, %v4713_v0  ;;  %3958 = vmatmul.mubr.msk.f32.gmra.mrb[8].mxu0 %vm359_vm1, %v4739_v9  ;;  %v4926_v0 = vld [vmem:[%s4574_s6 + $0x130] sm:$0x3] }
  0x2a   : > { %3752 = vmatprep.mubr.msk.f32.mxu1 %vm359_vm1, %v4717_v2  ;;  %3960 = vmatprep.mubr.msk.f32.mxu0 %vm359_vm1, %v4743_v11 }
  0x2d   : > { %3753 = vmatmul.mubr.msk.f32.gmra.mrb[10].mxu1 %vm359_vm1, %v4739_v9  ;;  %3961 = vmatmul.mubr.msk.f32.gmra.mrb[10].mxu0 %vm359_vm1, %v4765_v21 }
  0x2e   : > { %3755 = vmatprep.mubr.msk.f32.mxu1 %vm359_vm1, %v4743_v11  ;;  %3963 = vmatprep.mubr.msk.f32.mxu0 %vm359_vm1, %v4769_v24  ;;  %v962_v11 = vrot.slane %v4669_v53, 2  ;;  %v964_v53 = vrot.slane %v4674_v54, 2 }
  0x31   : > { %3756 = vmatmul.mubr.msk.f32.gmra.mrb[12].mxu1 %vm359_vm1, %v4765_v21  ;;  %3964 = vmatmul.mubr.msk.f32.gmra.mrb[12].mxu0 %vm359_vm1, %v4785_v31  ;;  %v4898_v21 = vld [vmem:[%s4574_s6 + $0x120] sm:$0xff] }
  0x32   : > { %3758 = vmatprep.mubr.msk.f32.mxu1 %vm359_vm1, %v4769_v24  ;;  %3966 = vmatprep.mubr.msk.f32.mxu0 %vm359_vm1, %v4789_v35  ;;  %v4860_v24 = vld [vmem:[%s4574_s6 + $0x108] sm:$0xff]  ;;  %v336_v2 = vrot.slane %v4898_v21, 1 }
  0x35   : > { %3759 = vmatmul.mubr.msk.f32.gmra.mrb[14].mxu1 %vm359_vm1, %v4785_v31  ;;  %3967 = vmatmul.mubr.msk.f32.gmra.mrb[14].mxu0 %vm359_vm1, %v4809_v49  ;;  %v955_v31 = vrot.slane %v4634_v39, 2 }
  0x36   : > { %3761 = vmatprep.mubr.msk.f32.mxu1 %vm359_vm1, %v4789_v35  ;;  %3997 = vmatprep.mubr.msk.f32.mxu0 %vm359_vm1, %v4817_v59  ;;  %v4855_v35 = vsel %vm938_vm2, %v949_v60, %v950_v25  ;;  %v4877_v60 = vsel %vm938_vm2, %v950_v25, %v952_v13  ;;  %v959_v13 = vrot.slane %v4645_v44, 2 }
  0x37   : > { %5875 = vst [vmem:[#allocation20_spill] sm:$0xff] %v4877_v60  ;;  %v4893_v25 = vsel %vm938_vm2, %v954_v32, %v955_v31  ;;  %v334_v32 = vrot.slane %v4890_v12, 1 }
  0x38   : > { %5877 = vst [vmem:[#allocation22_spill] sm:$0xff] %v4893_v25 }
  0x39   : > { %3762 = vmatmul.mubr.msk.f32.gmra.mrb[16].mxu1 %vm359_vm1, %v4809_v49  ;;  %3998 = vmatmul.mubr.msk.f32.vlgmr.msra.gmra.mrb[0].mxu0 %vm359_vm1, %v4844_v23  ;;  %v957_v49 = vrot.slane %v4637_v40, 2  ;;  %v4911_v40 = vsel %vm275_vm0, %v327_v34, %v329_v4  ;;  %v965_v4 = vrot.slane %v4677_v55, 2 }
  0x3a   : > { %3764 = vmatprep.mubr.msk.f32.mxu1 %vm359_vm1, %v4847_v27  ;;  %4228 = vmatpush3.bf16.msra.mxu0 %v4623_v33  ;;  %v331_v27 = vrot.slane %v4860_v24, 1  ;;  %v960_v33 = vrot.slane %v4648_v45, 2  ;;  %5878 = vst [vmem:[#allocation23_spill] sm:$0xff] %v4911_v40 }
  0x3b   : > { %4000 = vmatprep.mubr.msk.f32.mxu0 %vm359_vm1, %v4855_v35  ;;  %4230 = vmatprep.subr.bf16.mxu0 %v4865_v43  ;;  %v4918_v9 = vsel %vm938_vm2, %v955_v31, %v957_v49  ;;  %v4937_v31 = vld [vmem:[%s4574_s6 + $0x140] sm:$0xff]  ;;  %v4946_v49 = vsel %vm275_vm0, %v332_v52, %v334_v32  ;;  %v4969_v32 = vld [vmem:[%s4574_s6 + $0x150] sm:$0xff] }
  0x3c   : > { %5879 = vst [vmem:[#allocation24_spill] sm:$0xff] %v4918_v9  ;;  %v4929_v34 = vsel %vm938_vm2, %v959_v13, %v960_v33  ;;  %5882 = vst [vmem:[#allocation27_spill] sm:$0xff] %v4946_v49  ;;  %v339_v13 = vrot.slane %v4926_v0, 1 }
  0x3d   : > { %3765 = vmatmul.mubr.msk.f32.gmra.mrb[18].mxu1 %vm359_vm1, %v4874_v51  ;;  %4001 = vmatmul.mubr.msk.f32.gmra.mrb[2].mxu0 %vm359_vm1, %v4877_v60  ;;  %v4921_v51 = vsel %vm275_vm0, %v331_v27, %v332_v52  ;;  %5881 = vst [vmem:[#allocation26_spill] sm:$0xff] %v4929_v34  ;;  %v4949_v27 = vsel %vm938_vm2, %v960_v33, %v962_v11  ;;  %v969_v11 = vrot.slane %v4701_v62, 2  ;;  %v970_v33 = vrot.slane %v4704_v63, 2  ;;  %v5031_v60 = vld [vmem:[%s4574_s6 + $0x178] sm:$0x3] }
  0x3e   : > { %3767 = vmatprep.mubr.msk.f32.mxu1 %vm359_vm1, %v4884_v10  ;;  %4003 = vmatprep.mubr.msk.f32.mxu0 %vm359_vm1, %v4893_v25  ;;  %5880 = vst [vmem:[#allocation25_spill] sm:$0xff] %v4921_v51  ;;  %v337_v10 = vrot.slane %v4901_v28, 1  ;;  %5883 = vst [vmem:[#allocation28_spill] sm:$0xff] %v4949_v27  ;;  %v4964_v52 = vsel %vm938_vm2, %v964_v53, %v965_v4  ;;  %v344_v53 = vrot.slane %v4961_v48, 1 }
  0x3f   : > { %5885 = vst [vmem:[#allocation30_spill] sm:$0xff] %v4964_v52 }
  0x40   : > { %v4981_v61 = vsel %vm275_vm0, %v337_v10, %v339_v13  ;;  %v975_v13 = vrot.slane %v4730_v8, 2 }
  0x41   : > { %3768 = vmatmul.mubr.msk.f32.gmra.mrb[20].mxu1 %vm359_vm1, %v4911_v40  ;;  %4004 = vmatmul.mubr.msk.f32.gmra.mrb[4].mxu0 %vm359_vm1, %v4918_v9  ;;  %v4955_v40 = vsel %vm275_vm0, %v336_v2, %v337_v10  ;;  %v4972_v2 = vld [vmem:[%s4574_s6 + $0x158] sm:$0xff]  ;;  %5886 = vst [vmem:[#allocation31_spill] sm:$0xff] %v4981_v61  ;;  %v4996_v9 = vld [vmem:[%s4574_s6 + $0x160] sm:$0x3]  ;;  %v4999_v10 = vsel %vm938_vm2, %v969_v11, %v970_v33 }
  0x42   : > { %3770 = vmatprep.mubr.msk.f32.mxu1 %vm359_vm1, %v4921_v51  ;;  %4006 = vmatprep.mubr.msk.f32.mxu0 %vm359_vm1, %v4929_v34  ;;  %5884 = vst [vmem:[#allocation29_spill] sm:$0xff] %v4955_v40  ;;  %v342_v51 = vrot.slane %v4937_v31, 1  ;;  %v4988_v34 = vsel %vm938_vm2, %v965_v4, %v967_v56  ;;  %v5007_v56 = vld [vmem:[%s4574_s6 + $0x170] sm:$0xff]  ;;  %v5019_v4 = vsel %vm938_vm2, %v970_v33, %v972_v47  ;;  %v349_v11 = vrot.slane %v4996_v9, 1 }
  0x43   : > { %5887 = vst [vmem:[#allocation32_spill] sm:$0xff] %v4988_v34  ;;  %5889 = vst [vmem:[#allocation34_spill] sm:$0xff] %v5007_v56  ;;  %v979_v47 = vrot.slane %v4753_v18, 2  ;;  %v980_v33 = vrot.slane %v4756_v19, 2 }
  0x44   : > { %5891 = vst [vmem:[#allocation36_spill] sm:$0xff] %v5019_v4 }
  0x45   : > { %3771 = vmatmul.mubr.msk.f32.gmra.mrb[22].mxu1 %vm359_vm1, %v4946_v49  ;;  %4007 = vmatmul.mubr.msk.f32.gmra.mrb[6].mxu0 %vm359_vm1, %v4949_v27  ;;  %v4991_v49 = vsel %vm275_vm0, %v341_v50, %v342_v51  ;;  %v346_v27 = vrot.slane %v4969_v32, 1  ;;  %v5016_v50 = vsel %vm275_vm0, %v342_v51, %v344_v53  ;;  %v5034_v51 = vsel %vm938_vm2, %v974_v5, %v975_v13 }
  0x46   : > { %3773 = vmatprep.mubr.msk.f32.mxu1 %vm359_vm1, %v4955_v40  ;;  %4009 = vmatprep.mubr.msk.f32.mxu0 %vm359_vm1, %v4964_v52  ;;  %5888 = vst [vmem:[#allocation33_spill] sm:$0xff] %v4991_v49  ;;  %v347_v40 = vrot.slane %v4972_v2, 1  ;;  %v5004_v52 = vld [vmem:[%s4574_s6 + $0x168] sm:$0xff]  ;;  %5890 = vst [vmem:[#allocation35_spill] sm:$0xff] %v5016_v50 }
  0x48   : > { %v5025_v25 = vsel %vm275_vm0, %v346_v27, %v347_v40  ;;  %v354_v27 = vrot.slane %v5031_v60, 1 }
  0x49   : > { %3774 = vmatmul.mubr.msk.f32.gmra.mrb[24].mxu1 %vm359_vm1, %v4981_v61  ;;  %4010 = vmatmul.mubr.msk.f32.gmra.mrb[8].mxu0 %vm359_vm1, %v4988_v34  ;;  %5892 = vst [vmem:[#allocation37_spill] sm:$0xff] %v5025_v25  ;;  %v977_v61 = vrot.slane %v4748_v17, 2  ;;  %v351_v34 = vrot.slane %v5004_v52, 1  ;;  %v5045_v17 = vsel %vm275_vm0, %v347_v40, %v349_v11  ;;  %v985_v40 = vrot.slane %v4797_v42, 2 }
  0x4a   : > { %3776 = vmatprep.mubr.msk.f32.mxu1 %vm359_vm1, %v4991_v49  ;;  %4012 = vmatprep.mubr.msk.f32.mxu0 %vm359_vm1, %v4999_v10  ;;  %v352_v49 = vrot.slane %v5007_v56, 1  ;;  %5893 = vst [vmem:[#allocation38_spill] sm:$0xff] %v5045_v17  ;;  %v989_v11 = vrot.slane %v4822_v1, 2 }
  0x4b   : > { %v5051_v53 = vsel %vm938_vm2, %v975_v13, %v977_v61  ;;  %v987_v61 = vrot.slane %v4814_v57, 2 }
  0x4c   : > { %v5054_v5 = vsel %vm275_vm0, %v351_v34, %v352_v49  ;;  %v5069_v34 = vsel %vm275_vm0, %v352_v49, %v354_v27  ;;  %v3219_v49 = vld [vmem:[%s5781_s1 + $0x30] sm:$0xff]  ;;  %v994_v27 = vrot.slane %v4860_v24, 2 }
  0x4d   : > { %3777 = vmatmul.mubr.msk.f32.gmra.mrb[26].mxu1 %vm359_vm1, %v5016_v50  ;;  %4013 = vmatmul.mubr.msk.f32.gmra.mrb[10].mxu0 %vm359_vm1, %v5019_v4  ;;  %5894 = vst [vmem:[#allocation39_spill] sm:$0xff] %v5054_v5  ;;  %v982_v50 = vrot.slane %v4774_v29, 2  ;;  %v5058_v4 = vsel %vm938_vm2, %v979_v47, %v980_v33  ;;  %5895 = vst [vmem:[#allocation40_spill] sm:$0xff] %v5069_v34  ;;  %v990_v47 = vrot.slane %v4825_v3, 2 }
  0x4e   : > { %3779 = vmatprep.mubr.msk.f32.mxu1 %vm359_vm1, %v5025_v25  ;;  %4015 = vmatprep.mubr.msk.f32.mxu0 %vm359_vm1, %v5034_v51  ;;  %v984_v25 = vrot.slane %v4794_v41, 2  ;;  %v5097_v57 = vsel %vm938_vm2, %v985_v40, %v987_v61 }
  0x4f   : > { %v5074_v29 = vsel %vm938_vm2, %v980_v33, %v982_v50  ;;  %v3220_v50 = vld [vmem:[%s5781_s1 + $0x38] sm:$0xff]  ;;  %v5101_v33 = vsel %vm938_vm2, %v989_v11, %v990_v47  ;;  %v999_v11 = vrot.slane %v4898_v21, 2 }
  0x50   : > { %v5078_v13 = vsel %vm938_vm2, %v984_v25, %v985_v40  ;;  %v992_v25 = vrot.slane %v4852_v36, 2  ;;  %v997_v40 = vrot.slane %v4890_v12, 2 }
  0x51   : > { %3780 = vmatmul.mubr.msk.f32.gmra.mrb[28].mxu1 %vm359_vm1, %v5045_v17  ;;  %4016 = vmatmul.mubr.msk.f32.gmra.mrb[12].mxu0 %vm359_vm1, %v5051_v53  ;;  %v1015_v17 = vrot.slane %v5007_v56, 2 }
  0x52   : > { %3782 = vmatprep.mubr.msk.f32.mxu1 %vm359_vm1, %v5054_v5  ;;  %4018 = vmatprep.mubr.msk.f32.mxu0 %vm359_vm1, %v5058_v4  ;;  %v5105_v5 = vpack.c.bf16 %v3220_v50, %v3219_v49  ;;  %v5117_v36 = vsel %vm938_vm2, %v990_v47, %v992_v25  ;;  %v1002_v47 = vrot.slane %v4926_v0, 2  ;;  %v1004_v50 = vrot.slane %v4934_v58, 2 }
  0x53   : > { %v1005_v25 = vrot.slane %v4937_v31, 2 }
  0x55   : > { %3783 = vmatmul.mubr.msk.f32.gmra.mrb[30].mxu1 %vm359_vm1, %v5069_v34  ;;  %4019 = vmatmul.mubr.msk.f32.gmra.mrb[14].mxu0 %vm359_vm1, %v5074_v29  ;;  %v995_v34 = vrot.slane %v4863_v37, 2 }
  0x56   : > { %3789 = vmatprep.mubr.msk.f32.mxu1 %vm359_vm1, %v4583_v14  ;;  %4021 = vmatprep.mubr.msk.f32.mxu0 %vm359_vm1, %v5078_v13 }
  0x57   : > { %v5121_v61 = vsel %vm938_vm2, %v994_v27, %v995_v34  ;;  %v5135_v12 = vsel %vm938_vm2, %v995_v34, %v997_v40  ;;  %v1007_v34 = vrot.slane %v4961_v48, 2  ;;  %v5156_v27 = vsel %vm938_vm2, %v1004_v50, %v1005_v25 }
  0x58   : > { %5896 = vst [vmem:[#allocation41_spill] sm:$0xff] %v5121_v61  ;;  %5898 = vst [vmem:[#allocation43_spill] sm:$0xff] %v5156_v27  ;;  %v1009_v40 = vrot.slane %v4969_v32, 2  ;;  %v1014_v50 = vrot.slane %v5004_v52, 2 }
  0x59   : > { %3790 = vmatmul.mubr.msk.f32.vlgmr.msra.gmra.mrb[0].mxu1 %vm359_vm1, %v4586_v15  ;;  %4022 = vmatmul.mubr.msk.f32.gmra.mrb[16].mxu0 %vm359_vm1, %v5097_v57  ;;  %v5169_v48 = vsel %vm938_vm2, %v1005_v25, %v1007_v34  ;;  %v1017_v25 = vrot.slane %v5031_v60, 2 }
  0x5a   : > { %4212 = vmatpush3.bf16.msra.mxu1 %v4650_v46  ;;  %3792 = vmatprep.mubr.msk.f32.mxu1 %vm359_vm1, %v4589_v16  ;;  %v1000_v46 = vrot.slane %v4901_v28, 2  ;;  %5899 = vst [vmem:[#allocation44_spill] sm:$0xff] %v5169_v48  ;;  %v5183_v16 = vld [vmem:[%s4574_s6 + $0x188] sm:$0xff]  ;;  %v5196_v34 = vsel %vm938_vm2, %v1014_v50, %v1015_v17  ;;  %v3389_v50 = vld [vmem:[%s5781_s1 + $0x80] sm:$0xff] }
  0x5b   : > { %4024 = vmatprep.mubr.msk.f32.mxu0 %vm359_vm1, %v5101_v33  ;;  %4214 = vmatprep.subr.bf16.mxu1 %v5105_v5  ;;  %5902 = vst [vmem:[#allocation47_spill] sm:$0xff] %v5196_v34  ;;  %v5212_v60 = vsel %vm938_vm2, %v1015_v17, %v1017_v25  ;;  %v3390_v25 = vld [vmem:[%s5781_s1 + $0x88] sm:$0xff] }
  0x5c   : > { %v5139_v49 = vsel %vm938_vm2, %v999_v11, %v1000_v46  ;;  %v5152_v0 = vsel %vm938_vm2, %v1000_v46, %v1002_v47  ;;  %v1010_v11 = vrot.slane %v4972_v2, 2  ;;  %v1012_v46 = vrot.slane %v4996_v9, 2  ;;  %5903 = vst [vmem:[#allocation48_spill] sm:$0xff] %v5212_v60 }
  0x5d   : > { %3793 = vmatmul.mubr.msk.f32.gmra.mrb[2].mxu1 %vm359_vm1, %v4597_v20  ;;  %4025 = vmatmul.mubr.msk.f32.gmra.mrb[18].mxu0 %vm359_vm1, %v5117_v36  ;;  %5897 = vst [vmem:[#allocation42_spill] sm:$0xff] %v5152_v0  ;;  %v5180_v20 = vld [vmem:[%s4574_s6 + $0x180] sm:$0xff] }
  0x5e   : > { %3795 = vmatprep.mubr.msk.f32.mxu1 %vm359_vm1, %v4609_v26  ;;  %4027 = vmatprep.mubr.msk.f32.mxu0 %vm359_vm1, %v5121_v61  ;;  %v5173_v47 = vsel %vm938_vm2, %v1009_v40, %v1010_v11  ;;  %v5192_v9 = vsel %vm938_vm2, %v1010_v11, %v1012_v46  ;;  %v1879_v40 = vrot.slane %v5180_v20, 2 }
  0x5f   : > { %5900 = vst [vmem:[#allocation45_spill] sm:$0xff] %v5173_v47  ;;  %5901 = vst [vmem:[#allocation46_spill] sm:$0xff] %v5192_v9 }
  0x61   : > { %3796 = vmatmul.mubr.msk.f32.gmra.mrb[4].mxu1 %vm359_vm1, %v4617_v30  ;;  %4028 = vmatmul.mubr.msk.f32.gmra.mrb[20].mxu0 %vm359_vm1, %v5135_v12 }
  0x62   : > { %3798 = vmatprep.mubr.msk.f32.mxu1 %vm359_vm1, %v4631_v38  ;;  %4030 = vmatprep.mubr.msk.f32.mxu0 %vm359_vm1, %v5139_v49 }
  0x65   : > { %3799 = vmatmul.mubr.msk.f32.gmra.mrb[6].mxu1 %vm359_vm1, %v4634_v39  ;;  %4031 = vmatmul.mubr.msk.f32.gmra.mrb[22].mxu0 %vm359_vm1, %v5152_v0  ;;  %v5201_v0 = vld [vmem:[%s4574_s6 + $0x190] sm:$0x3] }
  0x66   : > { %3801 = vmatprep.mubr.msk.f32.mxu1 %vm359_vm1, %v4645_v44  ;;  %4033 = vmatprep.mubr.msk.f32.mxu0 %vm359_vm1, %v5156_v27  ;;  %v1880_v27 = vrot.slane %v5183_v16, 2  ;;  %v1882_v11 = vrot.slane %v5201_v0, 2 }
  0x68   : > { %v5216_v46 = vsel %vm938_vm2, %v1879_v40, %v1880_v27  ;;  %v5227_v17 = vsel %vm938_vm2, %v1880_v27, %v1882_v11  ;;  %v5243_v27 = vpack.c.bf16 %v3390_v25, %v3389_v50  ;;  %v940_v40 = vrot.slane %v4586_v15, 2  ;;  %v5906_v15 = vld [vmem:[#allocation20_spill] sm:$0xff]  ;;  %v5911_v25 = vld [vmem:[#allocation30_spill] sm:$0xff] }
  0x69   : > { %3802 = vmatmul.mubr.msk.f32.gmra.mrb[8].mxu1 %vm359_vm1, %v4648_v45  ;;  %4034 = vmatmul.mubr.msk.f32.gmra.mrb[24].mxu0 %vm359_vm1, %v5169_v48  ;;  %5904 = vst [vmem:[#allocation49_spill] sm:$0xff] %v5216_v46  ;;  %5905 = vst [vmem:[#allocation50_spill] sm:$0xff] %v5227_v17  ;;  %v942_v11 = vrot.slane %v4601_v22, 2  ;;  %v5907_v22 = vld [vmem:[#allocation22_spill] sm:$0xff] }
  0x6a   : > { %3804 = vmatprep.mubr.msk.f32.mxu1 %vm359_vm1, %v4674_v54  ;;  %4036 = vmatprep.mubr.msk.f32.mxu0 %vm359_vm1, %v5173_v47 }
  0x6d   : > { %3805 = vmatmul.mubr.msk.f32.gmra.mrb[10].mxu1 %vm359_vm1, %v4677_v55  ;;  %4037 = vmatmul.mubr.msk.f32.gmra.mrb[26].mxu0 %vm359_vm1, %v5192_v9 }
  0x6e   : > { %3807 = vmatprep.mubr.msk.f32.mxu1 %vm359_vm1, %v4701_v62  ;;  %4039 = vmatprep.mubr.msk.f32.mxu0 %vm359_vm1, %v5196_v34 }
  0x71   : > { %3808 = vmatmul.mubr.msk.f32.gmra.mrb[12].mxu1 %vm359_vm1, %v4704_v63  ;;  %4040 = vmatmul.mubr.msk.f32.gmra.mrb[28].mxu0 %vm359_vm1, %v5212_v60 }
  0x72   : > { %3810 = vmatprep.mubr.msk.f32.mxu1 %vm359_vm1, %v4727_v6  ;;  %4042 = vmatprep.mubr.msk.f32.mxu0 %vm359_vm1, %v5216_v46  ;;  %v5916_v46 = vld [vmem:[#allocation6_spill] sm:$0xff] }
  0x75   : > { %3811 = vmatmul.mubr.msk.f32.gmra.mrb[14].mxu1 %vm359_vm1, %v4730_v8  ;;  %4043 = vmatmul.mubr.msk.f32.gmra.mrb[30].mxu0 %vm359_vm1, %v5227_v17  ;;  %v5915_v17 = vld [vmem:[#allocation5_spill] sm:$0xff] }
  0x76   : > { %3813 = vmatprep.mubr.msk.f32.mxu1 %vm359_vm1, %v4753_v18  ;;  %4049 = vmatprep.mubr.msk.f32.mxu0 %vm359_vm1, %v4609_v26 }
  0x79   : > { %3814 = vmatmul.mubr.msk.f32.gmra.mrb[16].mxu1 %vm359_vm1, %v4756_v19  ;;  %4050 = vmatmul.mubr.msk.f32.vlgmr.msra.gmra.mrb[0].mxu0 %vm359_vm1, %v4617_v30 }
  0x7a   : > { %3816 = vmatprep.mubr.msk.f32.mxu1 %vm359_vm1, %v4794_v41  ;;  %4232 = vmatpush3.bf16.msra.mxu0 %v4865_v43  ;;  %v939_v43 = vrot.slane %v4583_v14, 2  ;;  %v943_v14 = vsel %vm938_vm2, %v940_v40, %v942_v11  ;;  %v5913_v11 = vld [vmem:[#allocation36_spill] sm:$0xff] }
  0x7b   : > { %4052 = vmatprep.mubr.msk.f32.mxu0 %vm359_vm1, %v4631_v38  ;;  %4234 = vmatprep.subr.bf16.mxu0 %v5243_v27 }
  0x7c   : > { %v941_v50 = vsel %vm938_vm2, %v939_v43, %v940_v40  ;;  %v5912_v43 = vld [vmem:[#allocation32_spill] sm:$0xff]  ;;  %v5365_v40 = vld [vmem:[%s4574_s6 + $0x198] sm:$0xff] }
  0x7d   : > { %3817 = vmatmul.mubr.msk.f32.gmra.mrb[18].mxu1 %vm359_vm1, %v4797_v42  ;;  %4053 = vmatmul.mubr.msk.f32.gmra.mrb[2].mxu0 %vm359_vm1, %v4634_v39 }
  0x7e   : > { %3819 = vmatprep.mubr.msk.f32.mxu1 %vm359_vm1, %v4822_v1  ;;  %4055 = vmatprep.mubr.msk.f32.mxu0 %vm359_vm1, %v4645_v44 }
  0x81   : > { %3820 = vmatmul.mubr.msk.f32.gmra.mrb[20].mxu1 %vm359_vm1, %v4825_v3  ;;  %4056 = vmatmul.mubr.msk.f32.gmra.mrb[4].mxu0 %vm359_vm1, %v4648_v45 }
  0x82   : > { %3822 = vmatprep.mubr.msk.f32.mxu1 %vm359_vm1, %v4860_v24  ;;  %4058 = vmatprep.mubr.msk.f32.mxu0 %vm359_vm1, %v4674_v54 }
  0x85   : > { %3823 = vmatmul.mubr.msk.f32.gmra.mrb[22].mxu1 %vm359_vm1, %v4863_v37  ;;  %4059 = vmatmul.mubr.msk.f32.gmra.mrb[6].mxu0 %vm359_vm1, %v4677_v55 }
  0x86   : > { %3825 = vmatprep.mubr.msk.f32.mxu1 %vm359_vm1, %v4898_v21  ;;  %4061 = vmatprep.mubr.msk.f32.mxu0 %vm359_vm1, %v4701_v62 }
  0x89   : > { %3826 = vmatmul.mubr.msk.f32.gmra.mrb[24].mxu1 %vm359_vm1, %v4901_v28  ;;  %4062 = vmatmul.mubr.msk.f32.gmra.mrb[8].mxu0 %vm359_vm1, %v4704_v63 }
  0x8a   : > { %3828 = vmatprep.mubr.msk.f32.mxu1 %vm359_vm1, %v4934_v58  ;;  %4064 = vmatprep.mubr.msk.f32.mxu0 %vm359_vm1, %v4727_v6 }
  0x8d   : > { %3829 = vmatmul.mubr.msk.f32.gmra.mrb[26].mxu1 %vm359_vm1, %v4937_v31  ;;  %4065 = vmatmul.mubr.msk.f32.gmra.mrb[10].mxu0 %vm359_vm1, %v4730_v8 }
  0x8e   : > { %3831 = vmatprep.mubr.msk.f32.mxu1 %vm359_vm1, %v4969_v32  ;;  %4067 = vmatprep.mubr.msk.f32.mxu0 %vm359_vm1, %v4753_v18 }
  0x91   : > { %3832 = vmatmul.mubr.msk.f32.gmra.mrb[28].mxu1 %vm359_vm1, %v4972_v2  ;;  %4068 = vmatmul.mubr.msk.f32.gmra.mrb[12].mxu0 %vm359_vm1, %v4756_v19 }
  0x92   : > { %3834 = vmatprep.mubr.msk.f32.mxu1 %vm359_vm1, %v5004_v52  ;;  %4070 = vmatprep.mubr.msk.f32.mxu0 %vm359_vm1, %v4794_v41 }
  0x95   : > { %3835 = vmatmul.mubr.msk.f32.gmra.mrb[30].mxu1 %vm359_vm1, %v5007_v56  ;;  %4071 = vmatmul.mubr.msk.f32.gmra.mrb[14].mxu0 %vm359_vm1, %v4797_v42 }
  0x96   : > { %3841 = vmatprep.mubr.msk.f32.mxu1 %vm359_vm1, %v941_v50  ;;  %4073 = vmatprep.mubr.msk.f32.mxu0 %vm359_vm1, %v4822_v1  ;;  %v5376_v50 = vld [vmem:[%s4574_s6 + $0x1a0] sm:$0xff] }
  0x99   : > { %3842 = vmatmul.mubr.msk.f32.vlgmr.msra.gmra.mrb[0].mxu1 %vm359_vm1, %v943_v14  ;;  %4074 = vmatmul.mubr.msk.f32.gmra.mrb[16].mxu0 %vm359_vm1, %v4825_v3  ;;  %v5914_v14 = vld [vmem:[#allocation4_spill] sm:$0xff] }
  0x9a   : > { %4216 = vmatpush3.bf16.msra.mxu1 %v5105_v5  ;;  %3844 = vmatprep.mubr.msk.f32.mxu1 %vm359_vm1, %v4817_v59  ;;  %v5908_v59 = vld [vmem:[#allocation24_spill] sm:$0xff] }
  0x9b   : > { %4076 = vmatprep.mubr.msk.f32.mxu0 %vm359_vm1, %v4860_v24  ;;  %4237 = vmatprep.subr.bf16.mxu1 %v4558_v7  ;;  %v5910_v5 = vld [vmem:[#allocation28_spill] sm:$0xff] }
  0x9d   : > { %3845 = vmatmul.mubr.msk.f32.gmra.mrb[2].mxu1 %vm359_vm1, %v4844_v23  ;;  %4077 = vmatmul.mubr.msk.f32.gmra.mrb[18].mxu0 %vm359_vm1, %v4863_v37  ;;  %v5909_v23 = vld [vmem:[#allocation26_spill] sm:$0xff] }
  0x9e   : > { %3847 = vmatprep.mubr.msk.f32.mxu1 %vm359_vm1, %v4855_v35  ;;  %4079 = vmatprep.mubr.msk.f32.mxu0 %vm359_vm1, %v4898_v21 }
  0xa1   : > { %3848 = vmatmul.mubr.msk.f32.gmra.mrb[4].mxu1 %vm359_vm1, %v5906_v15  ;;  %4080 = vmatmul.mubr.msk.f32.gmra.mrb[20].mxu0 %vm359_vm1, %v4901_v28 }
  0xa2   : > { %3850 = vmatprep.mubr.msk.f32.mxu1 %vm359_vm1, %v5907_v22  ;;  %4082 = vmatprep.mubr.msk.f32.mxu0 %vm359_vm1, %v4934_v58 }
  0xa5   : > { %3851 = vmatmul.mubr.msk.f32.gmra.mrb[6].mxu1 %vm359_vm1, %v5908_v59  ;;  %4083 = vmatmul.mubr.msk.f32.gmra.mrb[22].mxu0 %vm359_vm1, %v4937_v31 }
  0xa6   : > { %3853 = vmatprep.mubr.msk.f32.mxu1 %vm359_vm1, %v5909_v23  ;;  %4085 = vmatprep.mubr.msk.f32.mxu0 %vm359_vm1, %v4969_v32 }
  0xa9   : > { %3854 = vmatmul.mubr.msk.f32.gmra.mrb[8].mxu1 %vm359_vm1, %v5910_v5  ;;  %4086 = vmatmul.mubr.msk.f32.gmra.mrb[24].mxu0 %vm359_vm1, %v4972_v2 }
  0xaa   : > { %3856 = vmatprep.mubr.msk.f32.mxu1 %vm359_vm1, %v5911_v25  ;;  %4088 = vmatprep.mubr.msk.f32.mxu0 %vm359_vm1, %v5004_v52 }
  0xad   : > { %3857 = vmatmul.mubr.msk.f32.gmra.mrb[10].mxu1 %vm359_vm1, %v5912_v43  ;;  %4089 = vmatmul.mubr.msk.f32.gmra.mrb[26].mxu0 %vm359_vm1, %v5007_v56  ;;  %v5917_v56 = vld [vmem:[#allocation7_spill] sm:$0xff] }
  0xae   : > { %3859 = vmatprep.mubr.msk.f32.mxu1 %vm359_vm1, %v4999_v10  ;;  %4091 = vmatprep.mubr.msk.f32.mxu0 %vm359_vm1, %v5180_v20 }
  0xb1   : > { %3860 = vmatmul.mubr.msk.f32.gmra.mrb[12].mxu1 %vm359_vm1, %v5913_v11  ;;  %4092 = vmatmul.mubr.msk.f32.gmra.mrb[28].mxu0 %vm359_vm1, %v5183_v16 }
  0xb2   : > { %3862 = vmatprep.mubr.msk.f32.mxu1 %vm359_vm1, %v5034_v51  ;;  %4094 = vmatprep.mubr.msk.f32.mxu0 %vm359_vm1, %v5365_v40 }
  0xb5   : > { %3863 = vmatmul.mubr.msk.f32.gmra.mrb[14].mxu1 %vm359_vm1, %v5051_v53  ;;  %4095 = vmatmul.mubr.msk.f32.gmra.mrb[30].mxu0 %vm359_vm1, %v5376_v50 }
  0xb6   : > { %3865 = vmatprep.mubr.msk.f32.mxu1 %vm359_vm1, %v5058_v4  ;;  %4101 = vmatprep.mubr.msk.f32.mxu0 %vm359_vm1, %v5914_v14  ;;  %v5918_v14 = vld [vmem:[#allocation8_spill] sm:$0xff] }
  0xb9   : > { %3866 = vmatmul.mubr.msk.f32.gmra.mrb[16].mxu1 %vm359_vm1, %v5074_v29  ;;  %4102 = vmatmul.mubr.msk.f32.vlgmr.msra.gmra.mrb[0].mxu0 %vm359_vm1, %v5915_v17  ;;  %v5919_v17 = vld [vmem:[#allocation9_spill] sm:$0xff] }
  0xba   : > { %3868 = vmatprep.mubr.msk.f32.mxu1 %vm359_vm1, %v5078_v13  ;;  %4236 = vmatpush3.bf16.msra.mxu0 %v5243_v27  ;;  %v5922_v27 = vld [vmem:[#allocation12_spill] sm:$0xff] }
  0xbb   : > { %4104 = vmatprep.mubr.msk.f32.mxu0 %vm359_vm1, %v5916_v46  ;;  %v5920_v46 = vld [vmem:[#allocation10_spill] sm:$0xff] }
  0xbd   : > { %3869 = vmatmul.mubr.msk.f32.gmra.mrb[18].mxu1 %vm359_vm1, %v5097_v57  ;;  %4105 = vmatmul.mubr.msk.f32.gmra.mrb[2].mxu0 %vm359_vm1, %v5917_v56  ;;  %v5921_v56 = vld [vmem:[#allocation11_spill] sm:$0xff] }
  0xbe   : > { %3871 = vmatprep.mubr.msk.f32.mxu1 %vm359_vm1, %v5101_v33  ;;  %4107 = vmatprep.mubr.msk.f32.mxu0 %vm359_vm1, %v5918_v14  ;;  %v5923_v14 = vld [vmem:[#allocation42_spill] sm:$0xff] }
  0xc1   : > { %3872 = vmatmul.mubr.msk.f32.gmra.mrb[20].mxu1 %vm359_vm1, %v5117_v36  ;;  %4108 = vmatmul.mubr.msk.f32.gmra.mrb[4].mxu0 %vm359_vm1, %v5919_v17  ;;  %v5924_v17 = vld [vmem:[#allocation13_spill] sm:$0xff] }
  0xc2   : > { %3874 = vmatprep.mubr.msk.f32.mxu1 %vm359_vm1, %v5121_v61  ;;  %4110 = vmatprep.mubr.msk.f32.mxu0 %vm359_vm1, %v5920_v46  ;;  %v5925_v61 = vld [vmem:[#allocation43_spill] sm:$0xff]  ;;  %v5926_v46 = vld [vmem:[#allocation14_spill] sm:$0xff] }
  0xc5   : > { %3875 = vmatmul.mubr.msk.f32.gmra.mrb[22].mxu1 %vm359_vm1, %v5135_v12  ;;  %4111 = vmatmul.mubr.msk.f32.gmra.mrb[6].mxu0 %vm359_vm1, %v5921_v56  ;;  %v5927_v56 = vld [vmem:[#allocation15_spill] sm:$0xff] }
  0xc6   : > { %3877 = vmatprep.mubr.msk.f32.mxu1 %vm359_vm1, %v5139_v49  ;;  %4113 = vmatprep.mubr.msk.f32.mxu0 %vm359_vm1, %v5922_v27  ;;  %v5928_v27 = vld [vmem:[#allocation16_spill] sm:$0xff] }
  0xc9   : > { %3878 = vmatmul.mubr.msk.f32.gmra.mrb[24].mxu1 %vm359_vm1, %v5923_v14  ;;  %4114 = vmatmul.mubr.msk.f32.gmra.mrb[8].mxu0 %vm359_vm1, %v5924_v17  ;;  %v5929_v17 = vld [vmem:[#allocation17_spill] sm:$0xff] }
  0xca   : > { %3880 = vmatprep.mubr.msk.f32.mxu1 %vm359_vm1, %v5925_v61  ;;  %4116 = vmatprep.mubr.msk.f32.mxu0 %vm359_vm1, %v5926_v46  ;;  %v5930_v46 = vld [vmem:[#allocation18_spill] sm:$0xff] }
  0xcd   : > { %3881 = vmatmul.mubr.msk.f32.gmra.mrb[26].mxu1 %vm359_vm1, %v5169_v48  ;;  %4117 = vmatmul.mubr.msk.f32.gmra.mrb[10].mxu0 %vm359_vm1, %v5927_v56  ;;  %v5931_v56 = vld [vmem:[#allocation19_spill] sm:$0xff] }
  0xce   : > { %3883 = vmatprep.mubr.msk.f32.mxu1 %vm359_vm1, %v5173_v47  ;;  %4119 = vmatprep.mubr.msk.f32.mxu0 %vm359_vm1, %v5928_v27  ;;  %v5932_v47 = vld [vmem:[#allocation2_spill] sm:$0xff]  ;;  %v5933_v27 = vld [vmem:[#allocation21_spill] sm:$0xff]  ;;  %v5501_v48 = vld [vmem:[%s4574_s6 + $0x1a8] sm:$0x3] }
  0xd1   : > { %3884 = vmatmul.mubr.msk.f32.gmra.mrb[28].mxu1 %vm359_vm1, %v5192_v9  ;;  %4120 = vmatmul.mubr.msk.f32.gmra.mrb[12].mxu0 %vm359_vm1, %v5929_v17  ;;  %v5934_v9 = vld [vmem:[#allocation3_spill] sm:$0xff] }
  0xd2   : > { %3886 = vmatprep.mubr.msk.f32.mxu1 %vm359_vm1, %v5196_v34  ;;  %4122 = vmatprep.mubr.msk.f32.mxu0 %vm359_vm1, %v5930_v46  ;;  %v5935_v17 = vld [vmem:[#allocation23_spill] sm:$0xff]  ;;  %v5943_v34 = vld [vmem:[#allocation38_spill] sm:$0xff] }
  0xd5   : > { %3887 = vmatmul.mubr.msk.f32.gmra.mrb[30].mxu1 %vm359_vm1, %v5212_v60  ;;  %4123 = vmatmul.mubr.msk.f32.gmra.mrb[14].mxu0 %vm359_vm1, %v5931_v56  ;;  %v5936_v60 = vld [vmem:[#allocation25_spill] sm:$0xff] }
  0xd6   : > { %3893 = vmatprep.mubr.msk.f32.mxu1 %vm359_vm1, %v5932_v47  ;;  %4125 = vmatprep.mubr.msk.f32.mxu0 %vm359_vm1, %v5933_v27  ;;  %v5937_v47 = vld [vmem:[#allocation27_spill] sm:$0xff] }
  0xd9   : > { %3894 = vmatmul.mubr.msk.f32.vlgmr.msra.gmra.mrb[0].mxu1 %vm359_vm1, %v5934_v9  ;;  %4126 = vmatmul.mubr.msk.f32.gmra.mrb[16].mxu0 %vm359_vm1, %v5935_v17  ;;  %v5938_v9 = vld [vmem:[#allocation29_spill] sm:$0xff] }
  0xda   : > { %4238 = vmatpush3.bf16.msra.mxu1 %v4558_v7  ;;  %3896 = vmatprep.mubr.msk.f32.mxu1 %vm359_vm1, %v4609_v26  ;;  %v5939_v7 = vld [vmem:[#allocation31_spill] sm:$0xff]  ;;  %v5940_v26 = vld [vmem:[#allocation33_spill] sm:$0xff] }
  0xdb   : > { %4128 = vmatprep.mubr.msk.f32.mxu0 %vm359_vm1, %v5936_v60 }
  0xdd   : > { %3897 = vmatmul.mubr.msk.f32.gmra.mrb[2].mxu1 %vm359_vm1, %v4617_v30  ;;  %4129 = vmatmul.mubr.msk.f32.gmra.mrb[18].mxu0 %vm359_vm1, %v5937_v47  ;;  %v5941_v30 = vld [vmem:[#allocation35_spill] sm:$0xff] }
  0xde   : > { %3899 = vmatprep.mubr.msk.f32.mxu1 %vm359_vm1, %v4631_v38  ;;  %4131 = vmatprep.mubr.msk.f32.mxu0 %vm359_vm1, %v5938_v9  ;;  %v5942_v38 = vld [vmem:[#allocation37_spill] sm:$0xff] }
  0xe1   : > { %3900 = vmatmul.mubr.msk.f32.gmra.mrb[4].mxu1 %vm359_vm1, %v4634_v39  ;;  %4132 = vmatmul.mubr.msk.f32.gmra.mrb[20].mxu0 %vm359_vm1, %v5939_v7  ;;  %v1610_v39 = vrot.slane %v5180_v20, 1 }
  0xe2   : > { %3902 = vmatprep.mubr.msk.f32.mxu1 %vm359_vm1, %v4645_v44  ;;  %4134 = vmatprep.mubr.msk.f32.mxu0 %vm359_vm1, %v5940_v26  ;;  %v1611_v44 = vrot.slane %v5183_v16, 1 }
  0xe4   : > { %v5498_v26 = vsel %vm275_vm0, %v1610_v39, %v1611_v44 }
  0xe5   : > { %3903 = vmatmul.mubr.msk.f32.gmra.mrb[6].mxu1 %vm359_vm1, %v4648_v45  ;;  %4135 = vmatmul.mubr.msk.f32.gmra.mrb[22].mxu0 %vm359_vm1, %v5941_v30  ;;  %v5944_v45 = vld [vmem:[#allocation39_spill] sm:$0xff]  ;;  %v2416_v30 = vrot.slane %v5376_v50, 1 }
  0xe6   : > { %3905 = vmatprep.mubr.msk.f32.mxu1 %vm359_vm1, %v4674_v54  ;;  %4137 = vmatprep.mubr.msk.f32.mxu0 %vm359_vm1, %v5942_v38  ;;  %v1613_v54 = vrot.slane %v5201_v0, 1  ;;  %v2415_v38 = vrot.slane %v5365_v40, 1  ;;  %v2418_v0 = vrot.slane %v5501_v48, 1 }
  0xe8   : > { %v2417_v39 = vsel %vm275_vm0, %v2415_v38, %v2416_v30 }
  0xe9   : > { %3906 = vmatmul.mubr.msk.f32.gmra.mrb[8].mxu1 %vm359_vm1, %v4677_v55  ;;  %4138 = vmatmul.mubr.msk.f32.gmra.mrb[24].mxu0 %vm359_vm1, %v5943_v34  ;;  %v5945_v55 = vld [vmem:[#allocation40_spill] sm:$0xff] }
  0xea   : > { %3908 = vmatprep.mubr.msk.f32.mxu1 %vm359_vm1, %v4701_v62  ;;  %4140 = vmatprep.mubr.msk.f32.mxu0 %vm359_vm1, %v5944_v45  ;;  %v5512_v62 = vsel %vm275_vm0, %v1611_v44, %v1613_v54 }
  0xed   : > { %3909 = vmatmul.mubr.msk.f32.gmra.mrb[10].mxu1 %vm359_vm1, %v4704_v63  ;;  %4141 = vmatmul.mubr.msk.f32.gmra.mrb[26].mxu0 %vm359_vm1, %v5945_v55  ;;  %v2419_v63 = vsel %vm275_vm0, %v2416_v30, %v2418_v0 }
  0xee   : > { %3911 = vmatprep.mubr.msk.f32.mxu1 %vm359_vm1, %v4727_v6  ;;  %4143 = vmatprep.mubr.msk.f32.mxu0 %vm359_vm1, %v5498_v26  ;;  %v5949_v6 = vld [vmem:[#allocation33_spill] sm:$0xff] }
  0xf1   : > { %3912 = vmatmul.mubr.msk.f32.gmra.mrb[12].mxu1 %vm359_vm1, %v4730_v8  ;;  %4144 = vmatmul.mubr.msk.f32.gmra.mrb[28].mxu0 %vm359_vm1, %v5512_v62  ;;  %v5950_v8 = vld [vmem:[#allocation45_spill] sm:$0xff] }
  0xf2   : > { %3914 = vmatprep.mubr.msk.f32.mxu1 %vm359_vm1, %v4753_v18  ;;  %4146 = vmatprep.mubr.msk.f32.mxu0 %vm359_vm1, %v2417_v39  ;;  %v5951_v18 = vld [vmem:[#allocation35_spill] sm:$0xff] }
  0xf5   : > { %3915 = vmatmul.mubr.msk.f32.gmra.mrb[14].mxu1 %vm359_vm1, %v4756_v19  ;;  %4147 = vmatmul.mubr.msk.f32.gmra.mrb[30].mxu0 %vm359_vm1, %v2419_v63  ;;  %v5952_v19 = vld [vmem:[#allocation46_spill] sm:$0xff] }
  0xf6   : > { %3917 = vmatprep.mubr.msk.f32.mxu1 %vm359_vm1, %v4794_v41  ;;  %4153 = vmatprep.mubr.msk.f32.mxu0 %vm359_vm1, %v4855_v35  ;;  %v2684_v35 = vrot.slane %v5365_v40, 2  ;;  %v2685_v41 = vrot.slane %v5376_v50, 2 }
  0xf9   : > { %3918 = vmatmul.mubr.msk.f32.gmra.mrb[16].mxu1 %vm359_vm1, %v4797_v42  ;;  %4154 = vmatmul.mubr.msk.f32.vlgmr.msra.gmra.mrb[0].mxu0 %vm359_vm1, %v5906_v15  ;;  %v5955_v42 = vld [vmem:[#allocation48_spill] sm:$0xff] }
  0xfa   : > { %3920 = vmatprep.mubr.msk.f32.mxu1 %vm359_vm1, %v4822_v1  ;;  %4156 = vmatprep.mubr.msk.f32.mxu0 %vm359_vm1, %v5907_v22  ;;  %v5956_v1 = vld [vmem:[#allocation49_spill] sm:$0xff] }
  0xfd   : > { %3921 = vmatmul.mubr.msk.f32.gmra.mrb[18].mxu1 %vm359_vm1, %v4825_v3  ;;  %4157 = vmatmul.mubr.msk.f32.gmra.mrb[2].mxu0 %vm359_vm1, %v5908_v59  ;;  %v2687_v3 = vrot.slane %v5501_v48, 2 }
  0xfe   : > { %3923 = vmatprep.mubr.msk.f32.mxu1 %vm359_vm1, %v4860_v24  ;;  %4159 = vmatprep.mubr.msk.f32.mxu0 %vm359_vm1, %v5909_v23  ;;  %v5954_v24 = vld [vmem:[#allocation47_spill] sm:$0xff] }
 0x101   : > { %3924 = vmatmul.mubr.msk.f32.gmra.mrb[20].mxu1 %vm359_vm1, %v4863_v37  ;;  %4160 = vmatmul.mubr.msk.f32.gmra.mrb[4].mxu0 %vm359_vm1, %v5910_v5  ;;  %v2686_v37 = vsel %vm938_vm2, %v2684_v35, %v2685_v41 }
 0x102   : > { %3926 = vmatprep.mubr.msk.f32.mxu1 %vm359_vm1, %v4898_v21  ;;  %4162 = vmatprep.mubr.msk.f32.mxu0 %vm359_vm1, %v5911_v25  ;;  %v5953_v21 = vld [vmem:[#allocation37_spill] sm:$0xff] }
 0x105   : > { %3927 = vmatmul.mubr.msk.f32.gmra.mrb[22].mxu1 %vm359_vm1, %v4901_v28  ;;  %4163 = vmatmul.mubr.msk.f32.gmra.mrb[6].mxu0 %vm359_vm1, %v5912_v43  ;;  %v5957_v28 = vld [vmem:[#allocation50_spill] sm:$0xff] }
 0x106   : > { %3929 = vmatprep.mubr.msk.f32.mxu1 %vm359_vm1, %v4934_v58  ;;  %4165 = vmatprep.mubr.msk.f32.mxu0 %vm359_vm1, %v4999_v10  ;;  %v5946_v58 = vld [vmem:[#allocation34_spill] sm:$0xff] }
 0x109   : > { %3930 = vmatmul.mubr.msk.f32.gmra.mrb[24].mxu1 %vm359_vm1, %v4937_v31  ;;  %4166 = vmatmul.mubr.msk.f32.gmra.mrb[8].mxu0 %vm359_vm1, %v5913_v11  ;;  %v2688_v31 = vsel %vm938_vm2, %v2685_v41, %v2687_v3 }
 0x10a   : > { %3932 = vmatprep.mubr.msk.f32.mxu1 %vm359_vm1, %v4969_v32  ;;  %4168 = vmatprep.mubr.msk.f32.mxu0 %vm359_vm1, %v5034_v51 }
 0x10d   : > { %3933 = vmatmul.mubr.msk.f32.gmra.mrb[26].mxu1 %vm359_vm1, %v4972_v2  ;;  %4169 = vmatmul.mubr.msk.f32.gmra.mrb[10].mxu0 %vm359_vm1, %v5051_v53 }
 0x10e   : > { %3935 = vmatprep.mubr.msk.f32.mxu1 %vm359_vm1, %v5004_v52  ;;  %4171 = vmatprep.mubr.msk.f32.mxu0 %vm359_vm1, %v5058_v4 }
 0x111   : > { %3936 = vmatmul.mubr.msk.f32.gmra.mrb[28].mxu1 %vm359_vm1, %v5946_v58  ;;  %4172 = vmatmul.mubr.msk.f32.gmra.mrb[12].mxu0 %vm359_vm1, %v5074_v29 }
 0x112   : > { %3938 = vmatprep.mubr.msk.f32.mxu1 %vm359_vm1, %v5180_v20  ;;  %4174 = vmatprep.mubr.msk.f32.mxu0 %vm359_vm1, %v5078_v13  ;;  %v5947_v20 = vld [vmem:[#allocation41_spill] sm:$0xff] }
 0x115   : > { %3939 = vmatmul.mubr.msk.f32.gmra.mrb[30].mxu1 %vm359_vm1, %v5183_v16  ;;  %4175 = vmatmul.mubr.msk.f32.gmra.mrb[14].mxu0 %vm359_vm1, %v5097_v57  ;;  %v5948_v16 = vld [vmem:[#allocation44_spill] sm:$0xff] }
 0x116   : > { %3969 = vmatprep.mubr.msk.f32.mxu1 %vm359_vm1, %v5930_v46  ;;  %4177 = vmatprep.mubr.msk.f32.mxu0 %vm359_vm1, %v5101_v33 }
 0x119   : > { %3970 = vmatmul.mubr.msk.f32.vlgmr.msra.gmra.mrb[16].mxu1 %vm359_vm1, %v5931_v56  ;;  %4178 = vmatmul.mubr.msk.f32.gmra.mrb[16].mxu0 %vm359_vm1, %v5117_v36 }
 0x11a   : > { %3972 = vmatprep.mubr.msk.f32.mxu1 %vm359_vm1, %v5933_v27  ;;  %4180 = vmatprep.mubr.msk.f32.mxu0 %vm359_vm1, %v5947_v20 }
 0x11d   : > { %3973 = vmatmul.mubr.msk.f32.gmra.mrb[18].mxu1 %vm359_vm1, %v5935_v17  ;;  %4181 = vmatmul.mubr.msk.f32.gmra.mrb[18].mxu0 %vm359_vm1, %v5135_v12 }
 0x11e   : > { %3975 = vmatprep.mubr.msk.f32.mxu1 %vm359_vm1, %v5936_v60  ;;  %4183 = vmatprep.mubr.msk.f32.mxu0 %vm359_vm1, %v5139_v49  ;;  %v5669_v60 = vld [vmem:[%s5782_s2] ss:$0 sm:$0xff] }
 0x121   : > { %3976 = vmatmul.mubr.msk.f32.gmra.mrb[20].mxu1 %vm359_vm1, %v5937_v47  ;;  %4184 = vmatmul.mubr.msk.f32.gmra.mrb[20].mxu0 %vm359_vm1, %v5923_v14 }
 0x122   : > { %3978 = vmatprep.mubr.msk.f32.mxu1 %vm359_vm1, %v5938_v9  ;;  %4186 = vmatprep.mubr.msk.f32.mxu0 %vm359_vm1, %v5925_v61 }
 0x125   : > { %3979 = vmatmul.mubr.msk.f32.gmra.mrb[22].mxu1 %vm359_vm1, %v5939_v7  ;;  %4187 = vmatmul.mubr.msk.f32.gmra.mrb[22].mxu0 %vm359_vm1, %v5948_v16 }
 0x126   : > { %3981 = vmatprep.mubr.msk.f32.mxu1 %vm359_vm1, %v5949_v6  ;;  %4189 = vmatprep.mubr.msk.f32.mxu0 %vm359_vm1, %v5950_v8 }
 0x129   : > { %3982 = vmatmul.mubr.msk.f32.gmra.mrb[24].mxu1 %vm359_vm1, %v5951_v18  ;;  %4190 = vmatmul.mubr.msk.f32.gmra.mrb[24].mxu0 %vm359_vm1, %v5952_v19 }
 0x12a   : > { %3984 = vmatprep.mubr.msk.f32.mxu1 %vm359_vm1, %v5953_v21  ;;  %4192 = vmatprep.mubr.msk.f32.mxu0 %vm359_vm1, %v5954_v24 }
 0x12d   : > { %3985 = vmatmul.mubr.msk.f32.gmra.mrb[26].mxu1 %vm359_vm1, %v5943_v34  ;;  %4193 = vmatmul.mubr.msk.f32.gmra.mrb[26].mxu0 %vm359_vm1, %v5955_v42 }
 0x12e   : > { %3987 = vmatprep.mubr.msk.f32.mxu1 %vm359_vm1, %v5944_v45  ;;  %4195 = vmatprep.mubr.msk.f32.mxu0 %vm359_vm1, %v5956_v1 }
 0x131   : > { %3988 = vmatmul.mubr.msk.f32.gmra.mrb[28].mxu1 %vm359_vm1, %v5945_v55  ;;  %4196 = vmatmul.mubr.msk.f32.gmra.mrb[28].mxu0 %vm359_vm1, %v5957_v28 }
 0x132   : > { %3990 = vmatprep.mubr.msk.f32.mxu1 %vm359_vm1, %v5498_v26  ;;  %4198 = vmatprep.mubr.msk.f32.mxu0 %vm359_vm1, %v2686_v37 }
 0x135   : > { %3991 = vmatmul.mubr.msk.f32.gmra.mrb[30].mxu1 %vm359_vm1, %v5512_v62  ;;  %4199 = vmatmul.mubr.msk.f32.gmra.mrb[30].mxu0 %vm359_vm1, %v2688_v31 }
 0x1ac   : > { %v3895_v52 = vpop.f32.mrb[0].mxu1 }
 0x1ad   : > { %v1418_v32 = vpop.f32.mrb[1].mxu1 }
 0x1b0   : > { %v3898_v2 = vpop.f32.mrb[2].mxu1 }
 0x1b1   : > { %v1428_v10 = vpop.f32.mrb[3].mxu1 }
 0x1b4   : > { %v3901_v4 = vpop.f32.mrb[4].mxu1 }
 0x1b5   : > { %v1438_v51 = vpop.f32.mrb[5].mxu1 }
 0x1b8   : > { %v3904_v53 = vpop.f32.mrb[6].mxu1 }
 0x1b9   : > { %v1448_v29 = vpop.f32.mrb[7].mxu1 }
 0x1bc   : > { %v3907_v13 = vpop.f32.mrb[8].mxu1 }
 0x1bd   : > { %v1458_v57 = vpop.f32.mrb[9].mxu1 }
 0x1c0   : > { %v3910_v33 = vpop.f32.mrb[10].mxu1 }
 0x1c1   : > { %v1468_v36 = vpop.f32.mrb[11].mxu1 }
 0x1c4   : > { %v5658_v61 = vpop.f32.mrb[12].mxu1 }
 0x1c5   : > { %v5660_v12 = vpop.f32.mrb[13].mxu1 }
 0x1c8   : > { %v5662_v49 = vpop.f32.mrb[14].mxu1 }
 0x1c9   : > { %v5664_v48 = vpop.f32.mrb[15].mxu1 }
 0x1cc   : > { %v4155_v34 = vpop.f32.mrb[0].mxu0 }
 0x1cd   : > { %v4239_v15 = vadd.f32 %v4155_v34, %v3895_v52  ;;  %v2762_v22 = vpop.f32.mrb[1].mxu0 }
 0x1ce   : > { %v4240_v59 = vadd.f32 %v2762_v22, %v1418_v32 }
 0x1cf   : > { %v2961_v23 = vadd.f32 %v4239_v15, %v5669_v60 }
 0x1d0   : > { %v2960_v5 = vadd.f32 %v4240_v59, %v5669_v60  ;;  %v4158_v25 = vpop.f32.mrb[2].mxu0 }
 0x1d1   : > { %v2993_v43 = vmax.f32 %v2961_v23, 0.0  ;;  %v4241_v40 = vadd.f32 %v4158_v25, %v3898_v2  ;;  %v2772_v11 = vpop.f32.mrb[3].mxu0 }
 0x1d2   : > { %v2992_v50 = vmax.f32 %v2960_v5, 0.0  ;;  %v4242_v14 = vadd.f32 %v2772_v11, %v1428_v10 }
 0x1d3   : > { %3025 = vst.msk [vmem:[%s5676_s7 + $0x8] sm:$0xff] %vm359_vm1, %v2993_v43  ;;  %v2963_v46 = vadd.f32 %v4241_v40, %v5669_v60 }
 0x1d4   : > { %3024 = vst.msk [vmem:[%s5676_s7] sm:$0xff] %vm359_vm1, %v2992_v50  ;;  %v2962_v56 = vadd.f32 %v4242_v14, %v5669_v60  ;;  %v4161_v27 = vpop.f32.mrb[4].mxu0 }
 0x1d5   : > { %v2995_v17 = vmax.f32 %v2963_v46, 0.0  ;;  %v4243_v47 = vadd.f32 %v4161_v27, %v3901_v4  ;;  %v2782_v9 = vpop.f32.mrb[5].mxu0 }
 0x1d6   : > { %v2994_v7 = vmax.f32 %v2962_v56, 0.0  ;;  %v4244_v26 = vadd.f32 %v2782_v9, %v1438_v51 }
 0x1d7   : > { %3027 = vst.msk [vmem:[%s5676_s7 + $0x18] sm:$0xff] %vm359_vm1, %v2995_v17  ;;  %v2965_v30 = vadd.f32 %v4243_v47, %v5669_v60 }
 0x1d8   : > { %3026 = vst.msk [vmem:[%s5676_s7 + $0x10] sm:$0xff] %vm359_vm1, %v2994_v7  ;;  %v2964_v38 = vadd.f32 %v4244_v26, %v5669_v60  ;;  %v4164_v44 = vpop.f32.mrb[6].mxu0 }
 0x1d9   : > { %v2997_v45 = vmax.f32 %v2965_v30, 0.0  ;;  %v4245_v54 = vadd.f32 %v4164_v44, %v3904_v53  ;;  %v2792_v55 = vpop.f32.mrb[7].mxu0 }
 0x1da   : > { %v2996_v62 = vmax.f32 %v2964_v38, 0.0  ;;  %v4246_v0 = vadd.f32 %v2792_v55, %v1448_v29 }
 0x1db   : > { %3029 = vst.msk [vmem:[%s5676_s7 + $0x28] sm:$0xff] %vm359_vm1, %v2997_v45  ;;  %v2967_v39 = vadd.f32 %v4245_v54, %v5669_v60 }
 0x1dc   : > { %3028 = vst.msk [vmem:[%s5676_s7 + $0x20] sm:$0xff] %vm359_vm1, %v2996_v62  ;;  %v2966_v63 = vadd.f32 %v4246_v0, %v5669_v60  ;;  %v4167_v58 = vpop.f32.mrb[8].mxu0 }
 0x1dd   : > { %v2999_v20 = vmax.f32 %v2967_v39, 0.0  ;;  %v4247_v16 = vadd.f32 %v4167_v58, %v3907_v13  ;;  %v2802_v6 = vpop.f32.mrb[9].mxu0 }
 0x1de   : > { %v2998_v8 = vmax.f32 %v2966_v63, 0.0  ;;  %v4248_v18 = vadd.f32 %v2802_v6, %v1458_v57 }
 0x1df   : > { %3031 = vst.msk [vmem:[%s5676_s7 + $0x38] sm:$0xff] %vm359_vm1, %v2999_v20  ;;  %v2969_v19 = vadd.f32 %v4247_v16, %v5669_v60 }
 0x1e0   : > { %3030 = vst.msk [vmem:[%s5676_s7 + $0x30] sm:$0xff] %vm359_vm1, %v2998_v8  ;;  %v2968_v21 = vadd.f32 %v4248_v18, %v5669_v60  ;;  %v4170_v24 = vpop.f32.mrb[10].mxu0 }
 0x1e1   : > { %v3001_v35 = vmax.f32 %v2969_v19, 0.0  ;;  %v4249_v41 = vadd.f32 %v4170_v24, %v3910_v33  ;;  %v2812_v42 = vpop.f32.mrb[11].mxu0 }
 0x1e2   : > { %v3000_v1 = vmax.f32 %v2968_v21, 0.0  ;;  %v4250_v3 = vadd.f32 %v2812_v42, %v1468_v36 }
 0x1e3   : > { %3033 = vst.msk [vmem:[%s5676_s7 + $0x48] sm:$0xff] %vm359_vm1, %v3001_v35  ;;  %v2971_v37 = vadd.f32 %v4249_v41, %v5669_v60 }
 0x1e4   : > { %3032 = vst.msk [vmem:[%s5676_s7 + $0x40] sm:$0xff] %vm359_vm1, %v3000_v1  ;;  %v2970_v28 = vadd.f32 %v4250_v3, %v5669_v60  ;;  %v4173_v31 = vpop.f32.mrb[12].mxu0 }
 0x1e5   : > { %v3003_v52 = vmax.f32 %v2971_v37, 0.0  ;;  %v4251_v32 = vadd.f32 %v4173_v31, %v5658_v61  ;;  %v2822_v2 = vpop.f32.mrb[13].mxu0 }
 0x1e6   : > { %v3002_v10 = vmax.f32 %v2970_v28, 0.0  ;;  %v4252_v4 = vadd.f32 %v2822_v2, %v5660_v12 }
 0x1e7   : > { %3035 = vst.msk [vmem:[%s5676_s7 + $0x58] sm:$0xff] %vm359_vm1, %v3003_v52  ;;  %v2973_v51 = vadd.f32 %v4251_v32, %v5669_v60 }
 0x1e8   : > { %3034 = vst.msk [vmem:[%s5676_s7 + $0x50] sm:$0xff] %vm359_vm1, %v3002_v10  ;;  %v2972_v53 = vadd.f32 %v4252_v4, %v5669_v60  ;;  %v4176_v29 = vpop.f32.mrb[14].mxu0 }
 0x1e9   : > { %v3005_v13 = vmax.f32 %v2973_v51, 0.0  ;;  %v4253_v57 = vadd.f32 %v4176_v29, %v5662_v49  ;;  %v2832_v33 = vpop.f32.mrb[15].mxu0 }
 0x1ea   : > { %v3004_v36 = vmax.f32 %v2972_v53, 0.0  ;;  %v4254_v61 = vadd.f32 %v2832_v33, %v5664_v48 }
 0x1eb   : > { %3037 = vst.msk [vmem:[%s5676_s7 + $0x68] sm:$0xff] %vm359_vm1, %v3005_v13  ;;  %v2975_v12 = vadd.f32 %v4253_v57, %v5669_v60 }
 0x1ec   : > { %v3971_v34 = vpop.f32.mrb[16].mxu1  ;;  %3036 = vst.msk [vmem:[%s5676_s7 + $0x60] sm:$0xff] %vm359_vm1, %v3004_v36  ;;  %v2974_v15 = vadd.f32 %v4254_v61, %v5669_v60  ;;  %v4179_v22 = vpop.f32.mrb[16].mxu0 }
 0x1ed   : > { %v1768_v59 = vpop.f32.mrb[17].mxu1  ;;  %v3007_v23 = vmax.f32 %v2975_v12, 0.0  ;;  %v4255_v5 = vadd.f32 %v4179_v22, %v3971_v34  ;;  %v2842_v49 = vpop.f32.mrb[17].mxu0 }
 0x1ee   : > { %v3006_v25 = vmax.f32 %v2974_v15, 0.0  ;;  %v4256_v43 = vadd.f32 %v2842_v49, %v1768_v59 }
 0x1ef   : > { %3039 = vst.msk [vmem:[%s5676_s7 + $0x78] sm:$0xff] %vm359_vm1, %v3007_v23  ;;  %v2977_v48 = vadd.f32 %v4255_v5, %v5669_v60 }
 0x1f0   : > { %v3974_v40 = vpop.f32.mrb[18].mxu1  ;;  %3038 = vst.msk [vmem:[%s5676_s7 + $0x70] sm:$0xff] %vm359_vm1, %v3006_v25  ;;  %v2976_v11 = vadd.f32 %v4256_v43, %v5669_v60  ;;  %v4182_v50 = vpop.f32.mrb[18].mxu0 }
 0x1f1   : > { %v1778_v14 = vpop.f32.mrb[19].mxu1  ;;  %v3009_v46 = vmax.f32 %v2977_v48, 0.0  ;;  %v4257_v56 = vadd.f32 %v4182_v50, %v3974_v40  ;;  %v2852_v27 = vpop.f32.mrb[19].mxu0 }
 0x1f2   : > { %v3008_v17 = vmax.f32 %v2976_v11, 0.0  ;;  %v4258_v47 = vadd.f32 %v2852_v27, %v1778_v14 }
 0x1f3   : > { %3041 = vst.msk [vmem:[%s5676_s7 + $0x88] sm:$0xff] %vm359_vm1, %v3009_v46  ;;  %v2979_v9 = vadd.f32 %v4257_v56, %v5669_v60 }
 0x1f4   : > { %v3977_v7 = vpop.f32.mrb[20].mxu1  ;;  %3040 = vst.msk [vmem:[%s5676_s7 + $0x80] sm:$0xff] %vm359_vm1, %v3008_v17  ;;  %v2978_v26 = vadd.f32 %v4258_v47, %v5669_v60  ;;  %v4185_v30 = vpop.f32.mrb[20].mxu0 }
 0x1f5   : > { %v1788_v38 = vpop.f32.mrb[21].mxu1  ;;  %v3011_v44 = vmax.f32 %v2979_v9, 0.0  ;;  %v4259_v45 = vadd.f32 %v4185_v30, %v3977_v7  ;;  %v2862_v54 = vpop.f32.mrb[21].mxu0 }
 0x1f6   : > { %v3010_v55 = vmax.f32 %v2978_v26, 0.0  ;;  %v4260_v62 = vadd.f32 %v2862_v54, %v1788_v38 }
 0x1f7   : > { %3043 = vst.msk [vmem:[%s5676_s7 + $0x98] sm:$0xff] %vm359_vm1, %v3011_v44  ;;  %v2981_v0 = vadd.f32 %v4259_v45, %v5669_v60 }
 0x1f8   : > { %v3980_v39 = vpop.f32.mrb[22].mxu1  ;;  %3042 = vst.msk [vmem:[%s5676_s7 + $0x90] sm:$0xff] %vm359_vm1, %v3010_v55  ;;  %v2980_v63 = vadd.f32 %v4260_v62, %v5669_v60  ;;  %v4188_v58 = vpop.f32.mrb[22].mxu0 }
 0x1f9   : > { %v1798_v20 = vpop.f32.mrb[23].mxu1  ;;  %v3013_v16 = vmax.f32 %v2981_v0, 0.0  ;;  %v4261_v6 = vadd.f32 %v4188_v58, %v3980_v39  ;;  %v2872_v8 = vpop.f32.mrb[23].mxu0 }
 0x1fa   : > { %v3012_v18 = vmax.f32 %v2980_v63, 0.0  ;;  %v4262_v19 = vadd.f32 %v2872_v8, %v1798_v20 }
 0x1fb   : > { %3045 = vst.msk [vmem:[%s5676_s7 + $0xa8] sm:$0xff] %vm359_vm1, %v3013_v16  ;;  %v2983_v21 = vadd.f32 %v4261_v6, %v5669_v60 }
 0x1fc   : > { %v3983_v24 = vpop.f32.mrb[24].mxu1  ;;  %3044 = vst.msk [vmem:[%s5676_s7 + $0xa0] sm:$0xff] %vm359_vm1, %v3012_v18  ;;  %v2982_v35 = vadd.f32 %v4262_v19, %v5669_v60  ;;  %v4191_v41 = vpop.f32.mrb[24].mxu0 }
 0x1fd   : > { %v1808_v42 = vpop.f32.mrb[25].mxu1  ;;  %v3015_v1 = vmax.f32 %v2983_v21, 0.0  ;;  %v4263_v3 = vadd.f32 %v4191_v41, %v3983_v24  ;;  %v2882_v37 = vpop.f32.mrb[25].mxu0 }
 0x1fe   : > { %v3014_v28 = vmax.f32 %v2982_v35, 0.0  ;;  %v4264_v31 = vadd.f32 %v2882_v37, %v1808_v42 }
 0x1ff   : > { %3047 = vst.msk [vmem:[%s5676_s7 + $0xb8] sm:$0xff] %vm359_vm1, %v3015_v1  ;;  %v2985_v52 = vadd.f32 %v4263_v3, %v5669_v60 }
 0x200   : > { %v3986_v32 = vpop.f32.mrb[26].mxu1  ;;  %3046 = vst.msk [vmem:[%s5676_s7 + $0xb0] sm:$0xff] %vm359_vm1, %v3014_v28  ;;  %v2984_v2 = vadd.f32 %v4264_v31, %v5669_v60  ;;  %v4194_v10 = vpop.f32.mrb[26].mxu0 }
 0x201   : > { %v1818_v4 = vpop.f32.mrb[27].mxu1  ;;  %v3017_v51 = vmax.f32 %v2985_v52, 0.0  ;;  %v4265_v53 = vadd.f32 %v4194_v10, %v3986_v32  ;;  %v2892_v29 = vpop.f32.mrb[27].mxu0 }
 0x202   : > { %v3016_v13 = vmax.f32 %v2984_v2, 0.0  ;;  %v4266_v57 = vadd.f32 %v2892_v29, %v1818_v4 }
 0x203   : > { %3049 = vst.msk [vmem:[%s5676_s7 + $0xc8] sm:$0xff] %vm359_vm1, %v3017_v51  ;;  %v2987_v33 = vadd.f32 %v4265_v53, %v5669_v60 }
 0x204   : > { %v3989_v36 = vpop.f32.mrb[28].mxu1  ;;  %3048 = vst.msk [vmem:[%s5676_s7 + $0xc0] sm:$0xff] %vm359_vm1, %v3016_v13  ;;  %v2986_v61 = vadd.f32 %v4266_v57, %v5669_v60  ;;  %v4197_v12 = vpop.f32.mrb[28].mxu0 }
 0x205   : > { %v1828_v34 = vpop.f32.mrb[29].mxu1  ;;  %v3019_v15 = vmax.f32 %v2987_v33, 0.0  ;;  %v4267_v22 = vadd.f32 %v4197_v12, %v3989_v36  ;;  %v2902_v59 = vpop.f32.mrb[29].mxu0 }
 0x206   : > { %v3018_v23 = vmax.f32 %v2986_v61, 0.0  ;;  %v4268_v5 = vadd.f32 %v2902_v59, %v1828_v34 }
 0x207   : > { %3051 = vst.msk [vmem:[%s5676_s7 + $0xd8] sm:$0xff] %vm359_vm1, %v3019_v15  ;;  %v2989_v49 = vadd.f32 %v4267_v22, %v5669_v60 }
 0x208   : > { %v3992_v25 = vpop.f32.mrb[30].mxu1  ;;  %3050 = vst.msk [vmem:[%s5676_s7 + $0xd0] sm:$0xff] %vm359_vm1, %v3018_v23  ;;  %v2988_v43 = vadd.f32 %v4268_v5, %v5669_v60  ;;  %v4200_v48 = vpop.f32.mrb[30].mxu0 }
 0x209   : > { %v1838_v40 = vpop.f32.mrb[31].mxu1  ;;  %v3021_v11 = vmax.f32 %v2989_v49, 0.0  ;;  %v4269_v50 = vadd.f32 %v4200_v48, %v3992_v25  ;;  %v2912_v14 = vpop.f32.mrb[31].mxu0 }
 0x20a   : > { %v3020_v46 = vmax.f32 %v2988_v43, 0.0  ;;  %v4270_v56 = vadd.f32 %v2912_v14, %v1838_v40 }
 0x20b   : > { %3053 = vst.msk [vmem:[%s5676_s7 + $0xe8] sm:$0xff] %vm359_vm1, %v3021_v11  ;;  %v2991_v27 = vadd.f32 %v4269_v50, %v5669_v60 }
 0x20c   : > { %3052 = vst.msk [vmem:[%s5676_s7 + $0xe0] sm:$0xff] %vm359_vm1, %v3020_v46  ;;  %v2990_v17 = vadd.f32 %v4270_v56, %v5669_v60 }
 0x20d   : > { %v3023_v47 = vmax.f32 %v2991_v27, 0.0 }
 0x20e   : > { %v3022_v9 = vmax.f32 %v2990_v17, 0.0 }
 0x20f   : > { %3055 = vst.msk [vmem:[%s5676_s7 + $0xf8] sm:$0xff] %vm359_vm1, %v3023_v47 }
 0x210   : > { %3054 = vst.msk [vmem:[%s5676_s7 + $0xf0] sm:$0xff] %vm359_vm1, %v3022_v9 }
 0x211 PF: > { %s13_s12 = sadd.s32 1, %s4510_s12  }
 0x212   : > { %p10_p4 = scmp.ge.s32.totalorder %s13_s12, 4  }
 0x214   :  { %12 = sbr.rel (!%p10_p4) target bundleno = 1 (0x1), region = 70 }

// kernel: bottleneck_forward.5
= control target key start
LH: loop header
LB: loop body
LE: loop exit
PB: predicated region body
PF: predicated region fallthrough
CT: control target
= control target key end

     0   :  { %vm733_vm0 = vcmask 130048   ;;  %vm155_vm1 = vcmask 261120   ;;  %s2805_s0 = inlined_call_operand.vmem [shape: f32[512,16], index: 0, kind: input, shape index: {}]   ;;  %s2806_s1 = inlined_call_operand.vmem [shape: f32[16,64], index: 1, kind: input, shape index: {}]   ;;  %s2807_s2 = inlined_call_operand.vmem [shape: f32[512,32], index: 2, kind: input, shape index: {}]   ;;  %s2808_s3 = inlined_call_operand.vmem [shape: f32[32,64], index: 3, kind: input, shape index: {}]   ;;  %s2809_s4 = inlined_call_operand.vmem [shape: f32[1,64], index: 4, kind: input, shape index: {}]   ;;  %s2810_s5 = inlined_call_operand.hbm [shape: f32[512,64], index: 5, kind: output, shape index: {}]  }
   0x1   :  { %v151_v0 = vld [vmem:[%s2808_s3] sm:$0xff]  ;;  %v152_v1 = vld [vmem:[%s2808_s3 + $0x8] sm:$0xff]  ;;  %v153_v5 = vld [vmem:[%s2808_s3 + $0x10] sm:$0xff] }
   0x2   :  { %v85_v2 = vld [vmem:[%s2806_s1] sm:$0xff]  ;;  %v1994_v3 = vpack.c.bf16 %v152_v1, %v151_v0  ;;  %v86_v4 = vld [vmem:[%s2806_s1 + $0x8] sm:$0xff]  ;;  %v154_v6 = vld [vmem:[%s2808_s3 + $0x18] sm:$0xff] }
   0x3   :  { %v2002_v7 = vpack.c.bf16 %v86_v4, %v85_v2  ;;  %v1998_v8 = vpack.c.bf16 %v154_v6, %v153_v5  ;;  %v21_v9 = vld [vmem:[%s2805_s0] sm:$0xff]  ;;  %v22_v11 = vld [vmem:[%s2805_s0 + $0x8] sm:$0xff]  ;;  %v23_v12 = vld [vmem:[%s2805_s0 + $0x10] sm:$0xff] }
   0x4   :  { %1995 = vmatprep.subr.bf16.mxu1 %v1994_v3  ;;  %1898 = vmatprep.mubr.msk.f32.mxu0 %vm733_vm0, %v21_v9  ;;  %v87_v10 = vld [vmem:[%s2807_s2] sm:$0xff]  ;;  %v88_v13 = vld [vmem:[%s2807_s2 + $0x8] sm:$0xff]  ;;  %v89_v14 = vld [vmem:[%s2807_s2 + $0x10] sm:$0xff] }
   0x5   :  { %1997 = vmatpush3.bf16.msra.mxu1 %v1994_v3  ;;  %2003 = vmatprep.subr.bf16.mxu0 %v2002_v7  ;;  %v24_v15 = vld [vmem:[%s2805_s0 + $0x18] sm:$0xff]  ;;  %v25_v16 = vld [vmem:[%s2805_s0 + $0x20] sm:$0xff]  ;;  %v26_v19 = vld [vmem:[%s2805_s0 + $0x28] sm:$0xff] }
   0x6   :  { %1999 = vmatprep.subr.bf16.mxu1 %v1998_v8  ;;  %2005 = vmatpush3.bf16.msra.mxu0 %v2002_v7  ;;  %v90_v17 = vld [vmem:[%s2807_s2 + $0x18] sm:$0xff]  ;;  %v91_v18 = vld [vmem:[%s2807_s2 + $0x20] sm:$0xff]  ;;  %v27_v20 = vld [vmem:[%s2805_s0 + $0x30] sm:$0xff] }
   0x7   :  { %1798 = vmatprep.mubr.msk.f32.mxu1 %vm155_vm1, %v87_v10  ;;  %v92_v21 = vld [vmem:[%s2807_s2 + $0x28] sm:$0xff]  ;;  %v93_v22 = vld [vmem:[%s2807_s2 + $0x30] sm:$0xff]  ;;  %v28_v23 = vld [vmem:[%s2805_s0 + $0x38] sm:$0xff] }
   0x8   :  { %v29_v24 = vld [vmem:[%s2805_s0 + $0x40] sm:$0xff]  ;;  %v94_v25 = vld [vmem:[%s2807_s2 + $0x38] sm:$0xff]  ;;  %v30_v27 = vld [vmem:[%s2805_s0 + $0x48] sm:$0xff] }
   0x9   :  { %2001 = vmatpush3.bf16.msra.mxu1 %v1998_v8  ;;  %1899 = vmatmul.mubr.msk.f32.vlgmr.msra.gmra.mrb[0].mxu0 %vm733_vm0, %v22_v11  ;;  %v95_v26 = vld [vmem:[%s2807_s2 + $0x40] sm:$0xff]  ;;  %v31_v28 = vld [vmem:[%s2805_s0 + $0x50] sm:$0xff]  ;;  %v96_v29 = vld [vmem:[%s2807_s2 + $0x48] sm:$0xff] }
   0xa   :  { %1901 = vmatprep.mubr.msk.f32.mxu0 %vm733_vm0, %v23_v12  ;;  %v97_v30 = vld [vmem:[%s2807_s2 + $0x50] sm:$0xff]  ;;  %v32_v31 = vld [vmem:[%s2805_s0 + $0x58] sm:$0xff]  ;;  %v33_v32 = vld [vmem:[%s2805_s0 + $0x60] sm:$0xff] }
   0xb   :  { %v98_v33 = vld [vmem:[%s2807_s2 + $0x58] sm:$0xff]  ;;  %v99_v34 = vld [vmem:[%s2807_s2 + $0x60] sm:$0xff]  ;;  %v34_v35 = vld [vmem:[%s2805_s0 + $0x68] sm:$0xff] }
   0xc   :  { %1799 = vmatmul.mubr.msk.f32.vlgmr.msra.gmra.mrb[0].mxu1 %vm155_vm1, %v88_v13  ;;  %v35_v36 = vld [vmem:[%s2805_s0 + $0x70] sm:$0xff]  ;;  %v100_v37 = vld [vmem:[%s2807_s2 + $0x68] sm:$0xff]  ;;  %v36_v39 = vld [vmem:[%s2805_s0 + $0x78] sm:$0xff] }
   0xd   :  { %1801 = vmatprep.mubr.msk.f32.mxu1 %vm155_vm1, %v89_v14  ;;  %1902 = vmatmul.mubr.msk.f32.gmra.mrb[2].mxu0 %vm733_vm0, %v24_v15  ;;  %v101_v38 = vld [vmem:[%s2807_s2 + $0x70] sm:$0xff]  ;;  %v37_v40 = vld [vmem:[%s2805_s0 + $0x80] sm:$0xff]  ;;  %v102_v41 = vld [vmem:[%s2807_s2 + $0x78] sm:$0xff] }
   0xe   :  { %1904 = vmatprep.mubr.msk.f32.mxu0 %vm733_vm0, %v25_v16  ;;  %v103_v42 = vld [vmem:[%s2807_s2 + $0x80] sm:$0xff]  ;;  %v38_v43 = vld [vmem:[%s2805_s0 + $0x88] sm:$0xff]  ;;  %v39_v44 = vld [vmem:[%s2805_s0 + $0x90] sm:$0xff] }
   0xf   :  { %v104_v45 = vld [vmem:[%s2807_s2 + $0x88] sm:$0xff]  ;;  %v105_v46 = vld [vmem:[%s2807_s2 + $0x90] sm:$0xff]  ;;  %v40_v47 = vld [vmem:[%s2805_s0 + $0x98] sm:$0xff] }
  0x10   :  { %1802 = vmatmul.mubr.msk.f32.gmra.mrb[2].mxu1 %vm155_vm1, %v90_v17  ;;  %v41_v48 = vld [vmem:[%s2805_s0 + $0xa0] sm:$0xff]  ;;  %v106_v49 = vld [vmem:[%s2807_s2 + $0x98] sm:$0xff] }
  0x11   :  { %1804 = vmatprep.mubr.msk.f32.mxu1 %vm155_vm1, %v91_v18  ;;  %1905 = vmatmul.mubr.msk.f32.gmra.mrb[4].mxu0 %vm733_vm0, %v26_v19 }
  0x12   :  { %1907 = vmatprep.mubr.msk.f32.mxu0 %vm733_vm0, %v27_v20 }
  0x14   :  { %1805 = vmatmul.mubr.msk.f32.gmra.mrb[4].mxu1 %vm155_vm1, %v92_v21 }
  0x15   :  { %1807 = vmatprep.mubr.msk.f32.mxu1 %vm155_vm1, %v93_v22  ;;  %1908 = vmatmul.mubr.msk.f32.gmra.mrb[6].mxu0 %vm733_vm0, %v28_v23 }
  0x16   :  { %1910 = vmatprep.mubr.msk.f32.mxu0 %vm733_vm0, %v29_v24 }
  0x18   :  { %1808 = vmatmul.mubr.msk.f32.gmra.mrb[6].mxu1 %vm155_vm1, %v94_v25 }
  0x19   :  { %1810 = vmatprep.mubr.msk.f32.mxu1 %vm155_vm1, %v95_v26  ;;  %1911 = vmatmul.mubr.msk.f32.gmra.mrb[8].mxu0 %vm733_vm0, %v30_v27 }
  0x1a   :  { %1913 = vmatprep.mubr.msk.f32.mxu0 %vm733_vm0, %v31_v28 }
  0x1c   :  { %1811 = vmatmul.mubr.msk.f32.gmra.mrb[8].mxu1 %vm155_vm1, %v96_v29 }
  0x1d   :  { %1813 = vmatprep.mubr.msk.f32.mxu1 %vm155_vm1, %v97_v30  ;;  %1914 = vmatmul.mubr.msk.f32.gmra.mrb[10].mxu0 %vm733_vm0, %v32_v31 }
  0x1e   :  { %1916 = vmatprep.mubr.msk.f32.mxu0 %vm733_vm0, %v33_v32 }
  0x20   :  { %1814 = vmatmul.mubr.msk.f32.gmra.mrb[10].mxu1 %vm155_vm1, %v98_v33 }
  0x21   :  { %1816 = vmatprep.mubr.msk.f32.mxu1 %vm155_vm1, %v99_v34  ;;  %1917 = vmatmul.mubr.msk.f32.gmra.mrb[12].mxu0 %vm733_vm0, %v34_v35 }
  0x22   :  { %1919 = vmatprep.mubr.msk.f32.mxu0 %vm733_vm0, %v35_v36 }
  0x24   :  { %1817 = vmatmul.mubr.msk.f32.gmra.mrb[12].mxu1 %vm155_vm1, %v100_v37 }
  0x25   :  { %1819 = vmatprep.mubr.msk.f32.mxu1 %vm155_vm1, %v101_v38  ;;  %1920 = vmatmul.mubr.msk.f32.gmra.mrb[14].mxu0 %vm733_vm0, %v36_v39 }
  0x26   :  { %1922 = vmatprep.mubr.msk.f32.mxu0 %vm733_vm0, %v37_v40 }
  0x28   :  { %1820 = vmatmul.mubr.msk.f32.gmra.mrb[14].mxu1 %vm155_vm1, %v102_v41 }
  0x29   :  { %1822 = vmatprep.mubr.msk.f32.mxu1 %vm155_vm1, %v103_v42  ;;  %1923 = vmatmul.mubr.msk.f32.gmra.mrb[16].mxu0 %vm733_vm0, %v38_v43 }
  0x2a   :  { %1925 = vmatprep.mubr.msk.f32.mxu0 %vm733_vm0, %v39_v44 }
  0x2c   :  { %1823 = vmatmul.mubr.msk.f32.gmra.mrb[16].mxu1 %vm155_vm1, %v104_v45 }
  0x2d   :  { %1825 = vmatprep.mubr.msk.f32.mxu1 %vm155_vm1, %v105_v46  ;;  %1926 = vmatmul.mubr.msk.f32.gmra.mrb[18].mxu0 %vm733_vm0, %v40_v47 }
  0x2e   :  { %10 = vsyncpa [#allocation3], 0  ;;  %1928 = vmatprep.mubr.msk.f32.mxu0 %vm733_vm0, %v41_v48  ;;  %v107_v50 = vld [vmem:[%s2807_s2 + $0xa0] sm:$0xff]  ;;  %v42_v51 = vld [vmem:[%s2805_s0 + $0xa8] sm:$0xff]  ;;  %vm1446_vm2 = vcmask 523264  }
  0x2f   :  { %v43_v52 = vld [vmem:[%s2805_s0 + $0xb0] sm:$0xff]  ;;  %v108_v53 = vld [vmem:[%s2807_s2 + $0xa8] sm:$0xff]  ;;  %v44_v55 = vld [vmem:[%s2805_s0 + $0xb8] sm:$0xff] }
  0x30   :  { %1826 = vmatmul.mubr.msk.f32.gmra.mrb[18].mxu1 %vm155_vm1, %v106_v49  ;;  %v109_v54 = vld [vmem:[%s2807_s2 + $0xb0] sm:$0xff]  ;;  %v45_v56 = vld [vmem:[%s2805_s0 + $0xc0] sm:$0xff]  ;;  %v110_v57 = vld [vmem:[%s2807_s2 + $0xb8] sm:$0xff] }
  0x31   :  { %1828 = vmatprep.mubr.msk.f32.mxu1 %vm155_vm1, %v107_v50  ;;  %1929 = vmatmul.mubr.msk.f32.gmra.mrb[20].mxu0 %vm733_vm0, %v42_v51  ;;  %v111_v58 = vld [vmem:[%s2807_s2 + $0xc0] sm:$0xff]  ;;  %v46_v59 = vld [vmem:[%s2805_s0 + $0xc8] sm:$0xff]  ;;  %v47_v60 = vld [vmem:[%s2805_s0 + $0xd0] sm:$0xff] }
  0x32   :  { %1931 = vmatprep.mubr.msk.f32.mxu0 %vm733_vm0, %v43_v52  ;;  %v112_v61 = vld [vmem:[%s2807_s2 + $0xc8] sm:$0xff]  ;;  %v113_v62 = vld [vmem:[%s2807_s2 + $0xd0] sm:$0xff]  ;;  %v48_v63 = vld [vmem:[%s2805_s0 + $0xd8] sm:$0xff] }
  0x33   :  { %v49_v0 = vld [vmem:[%s2805_s0 + $0xe0] sm:$0xff]  ;;  %v114_v1 = vld [vmem:[%s2807_s2 + $0xd8] sm:$0xff]  ;;  %v50_v3 = vld [vmem:[%s2805_s0 + $0xe8] sm:$0xff] }
  0x34   :  { %1829 = vmatmul.mubr.msk.f32.gmra.mrb[20].mxu1 %vm155_vm1, %v108_v53  ;;  %v115_v2 = vld [vmem:[%s2807_s2 + $0xe0] sm:$0xff]  ;;  %v51_v4 = vld [vmem:[%s2805_s0 + $0xf0] sm:$0xff]  ;;  %v116_v5 = vld [vmem:[%s2807_s2 + $0xe8] sm:$0xff] }
  0x35   :  { %1831 = vmatprep.mubr.msk.f32.mxu1 %vm155_vm1, %v109_v54  ;;  %1932 = vmatmul.mubr.msk.f32.gmra.mrb[22].mxu0 %vm733_vm0, %v44_v55  ;;  %v117_v6 = vld [vmem:[%s2807_s2 + $0xf0] sm:$0xff]  ;;  %v52_v7 = vld [vmem:[%s2805_s0 + $0xf8] sm:$0xff]  ;;  %v53_v8 = vld [vmem:[%s2805_s0 + $0x100] sm:$0xff] }
  0x36   :  { %1934 = vmatprep.mubr.msk.f32.mxu0 %vm733_vm0, %v45_v56  ;;  %v118_v9 = vld [vmem:[%s2807_s2 + $0xf8] sm:$0xff]  ;;  %v119_v10 = vld [vmem:[%s2807_s2 + $0x100] sm:$0xff]  ;;  %v54_v11 = vld [vmem:[%s2805_s0 + $0x108] sm:$0xff] }
  0x37   :  { %v55_v12 = vld [vmem:[%s2805_s0 + $0x110] sm:$0xff]  ;;  %v120_v13 = vld [vmem:[%s2807_s2 + $0x108] sm:$0xff]  ;;  %v56_v15 = vld [vmem:[%s2805_s0 + $0x118] sm:$0xff] }
  0x38   :  { %1832 = vmatmul.mubr.msk.f32.gmra.mrb[22].mxu1 %vm155_vm1, %v110_v57  ;;  %v121_v14 = vld [vmem:[%s2807_s2 + $0x110] sm:$0xff]  ;;  %v57_v16 = vld [vmem:[%s2805_s0 + $0x120] sm:$0xff]  ;;  %v122_v17 = vld [vmem:[%s2807_s2 + $0x118] sm:$0xff] }
  0x39   :  { %1834 = vmatprep.mubr.msk.f32.mxu1 %vm155_vm1, %v111_v58  ;;  %1935 = vmatmul.mubr.msk.f32.gmra.mrb[24].mxu0 %vm733_vm0, %v46_v59  ;;  %v123_v18 = vld [vmem:[%s2807_s2 + $0x120] sm:$0xff]  ;;  %v58_v19 = vld [vmem:[%s2805_s0 + $0x128] sm:$0xff]  ;;  %v59_v20 = vld [vmem:[%s2805_s0 + $0x130] sm:$0xff] }
  0x3a   :  { %1937 = vmatprep.mubr.msk.f32.mxu0 %vm733_vm0, %v47_v60  ;;  %v124_v21 = vld [vmem:[%s2807_s2 + $0x128] sm:$0xff]  ;;  %v125_v22 = vld [vmem:[%s2807_s2 + $0x130] sm:$0xff]  ;;  %v60_v23 = vld [vmem:[%s2805_s0 + $0x138] sm:$0xff] }
  0x3b   :  { %v61_v24 = vld [vmem:[%s2805_s0 + $0x140] sm:$0xff]  ;;  %v126_v25 = vld [vmem:[%s2807_s2 + $0x138] sm:$0xff]  ;;  %v62_v27 = vld [vmem:[%s2805_s0 + $0x148] sm:$0xff] }
  0x3c   :  { %1835 = vmatmul.mubr.msk.f32.gmra.mrb[24].mxu1 %vm155_vm1, %v112_v61  ;;  %v127_v26 = vld [vmem:[%s2807_s2 + $0x140] sm:$0xff]  ;;  %v63_v28 = vld [vmem:[%s2805_s0 + $0x150] sm:$0xff]  ;;  %v128_v29 = vld [vmem:[%s2807_s2 + $0x148] sm:$0xff] }
  0x3d   :  { %1837 = vmatprep.mubr.msk.f32.mxu1 %vm155_vm1, %v113_v62  ;;  %1938 = vmatmul.mubr.msk.f32.gmra.mrb[26].mxu0 %vm733_vm0, %v48_v63  ;;  %v129_v30 = vld [vmem:[%s2807_s2 + $0x150] sm:$0xff]  ;;  %v64_v31 = vld [vmem:[%s2805_s0 + $0x158] sm:$0xff]  ;;  %v65_v32 = vld [vmem:[%s2805_s0 + $0x160] sm:$0xff] }
  0x3e   :  { %1940 = vmatprep.mubr.msk.f32.mxu0 %vm733_vm0, %v49_v0  ;;  %v130_v33 = vld [vmem:[%s2807_s2 + $0x158] sm:$0xff]  ;;  %v131_v34 = vld [vmem:[%s2807_s2 + $0x160] sm:$0xff]  ;;  %v66_v35 = vld [vmem:[%s2805_s0 + $0x168] sm:$0xff] }
  0x3f   :  { %v67_v36 = vld [vmem:[%s2805_s0 + $0x170] sm:$0xff]  ;;  %v132_v37 = vld [vmem:[%s2807_s2 + $0x168] sm:$0xff]  ;;  %v68_v39 = vld [vmem:[%s2805_s0 + $0x178] sm:$0xff] }
  0x40   :  { %1838 = vmatmul.mubr.msk.f32.gmra.mrb[26].mxu1 %vm155_vm1, %v114_v1  ;;  %v133_v38 = vld [vmem:[%s2807_s2 + $0x170] sm:$0xff]  ;;  %v69_v40 = vld [vmem:[%s2805_s0 + $0x180] sm:$0xff]  ;;  %v134_v41 = vld [vmem:[%s2807_s2 + $0x178] sm:$0xff] }
  0x41   :  { %1840 = vmatprep.mubr.msk.f32.mxu1 %vm155_vm1, %v115_v2  ;;  %1941 = vmatmul.mubr.msk.f32.gmra.mrb[28].mxu0 %vm733_vm0, %v50_v3  ;;  %v135_v42 = vld [vmem:[%s2807_s2 + $0x180] sm:$0xff]  ;;  %v70_v43 = vld [vmem:[%s2805_s0 + $0x188] sm:$0xff]  ;;  %v71_v44 = vld [vmem:[%s2805_s0 + $0x190] sm:$0xff] }
  0x42   :  { %1943 = vmatprep.mubr.msk.f32.mxu0 %vm733_vm0, %v51_v4  ;;  %v136_v45 = vld [vmem:[%s2807_s2 + $0x188] sm:$0xff]  ;;  %v137_v46 = vld [vmem:[%s2807_s2 + $0x190] sm:$0xff]  ;;  %v72_v47 = vld [vmem:[%s2805_s0 + $0x198] sm:$0xff] }
  0x43   :  { %v73_v48 = vld [vmem:[%s2805_s0 + $0x1a0] sm:$0xff]  ;;  %v138_v49 = vld [vmem:[%s2807_s2 + $0x198] sm:$0xff]  ;;  %v74_v51 = vld [vmem:[%s2805_s0 + $0x1a8] sm:$0xff] }
  0x44   :  { %1841 = vmatmul.mubr.msk.f32.gmra.mrb[28].mxu1 %vm155_vm1, %v116_v5  ;;  %v139_v50 = vld [vmem:[%s2807_s2 + $0x1a0] sm:$0xff]  ;;  %v75_v52 = vld [vmem:[%s2805_s0 + $0x1b0] sm:$0xff]  ;;  %v140_v53 = vld [vmem:[%s2807_s2 + $0x1a8] sm:$0xff] }
  0x45   :  { %1843 = vmatprep.mubr.msk.f32.mxu1 %vm155_vm1, %v117_v6  ;;  %1944 = vmatmul.mubr.msk.f32.gmra.mrb[30].mxu0 %vm733_vm0, %v52_v7  ;;  %v141_v54 = vld [vmem:[%s2807_s2 + $0x1b0] sm:$0xff]  ;;  %v76_v55 = vld [vmem:[%s2805_s0 + $0x1b8] sm:$0xff]  ;;  %v77_v56 = vld [vmem:[%s2805_s0 + $0x1c0] sm:$0xff] }
  0x46   :  { %1946 = vmatprep.mubr.msk.f32.mxu0 %vm733_vm0, %v53_v8  ;;  %v142_v57 = vld [vmem:[%s2807_s2 + $0x1b8] sm:$0xff]  ;;  %v143_v58 = vld [vmem:[%s2807_s2 + $0x1c0] sm:$0xff]  ;;  %v78_v59 = vld [vmem:[%s2805_s0 + $0x1c8] sm:$0xff] }
  0x47   :  { %v79_v60 = vld [vmem:[%s2805_s0 + $0x1d0] sm:$0xff]  ;;  %v144_v61 = vld [vmem:[%s2807_s2 + $0x1c8] sm:$0xff]  ;;  %v80_v63 = vld [vmem:[%s2805_s0 + $0x1d8] sm:$0xff] }
  0x48   :  { %1844 = vmatmul.mubr.msk.f32.gmra.mrb[30].mxu1 %vm155_vm1, %v118_v9  ;;  %v145_v62 = vld [vmem:[%s2807_s2 + $0x1d0] sm:$0xff]  ;;  %v81_v0 = vld [vmem:[%s2805_s0 + $0x1e0] sm:$0xff]  ;;  %v146_v1 = vld [vmem:[%s2807_s2 + $0x1d8] sm:$0xff] }
  0x49   :  { %1846 = vmatprep.mubr.msk.f32.mxu1 %vm155_vm1, %v119_v10  ;;  %1947 = vmatmul.mubr.msk.f32.gmra.mrb[32].mxu0 %vm733_vm0, %v54_v11  ;;  %v147_v2 = vld [vmem:[%s2807_s2 + $0x1e0] sm:$0xff]  ;;  %v82_v3 = vld [vmem:[%s2805_s0 + $0x1e8] sm:$0xff]  ;;  %v83_v4 = vld [vmem:[%s2805_s0 + $0x1f0] sm:$0xff] }
  0x4a   :  { %1949 = vmatprep.mubr.msk.f32.mxu0 %vm733_vm0, %v55_v12  ;;  %v148_v5 = vld [vmem:[%s2807_s2 + $0x1e8] sm:$0xff]  ;;  %v149_v6 = vld [vmem:[%s2807_s2 + $0x1f0] sm:$0xff]  ;;  %v84_v7 = vld [vmem:[%s2805_s0 + $0x1f8] sm:$0xff]  ;;  %s2097_s0 = smov [#allocation2]  }
  0x4b   :  { %v150_v8 = vld [vmem:[%s2807_s2 + $0x1f8] sm:$0xff]  ;;  %v2663_v12 = vld [vmem:[%s2809_s4] ss:$0 sm:$0xff]  ;;  %s1516_s2 = sshll.u32 %s2097_s0, 4  ;;  %s1517_s2 = int_to_ptr.vmem [resolvable:$true] %s1516_s2 }
  0x4c   :  { %1847 = vmatmul.mubr.msk.f32.gmra.mrb[32].mxu1 %vm155_vm1, %v120_v13  ;;  %s2073_s4 = scalar_lea.vmem %s1517_s2, 8192  ;;  %p2078_p1 = scmp.lt.s32.totalorder %s1517_s2, %s1517_s2 }
  0x4d   :  { %1849 = vmatprep.mubr.msk.f32.mxu1 %vm155_vm1, %v121_v14  ;;  %1950 = vmatmul.mubr.msk.f32.gmra.mrb[34].mxu0 %vm733_vm0, %v56_v15  ;;  %p2074_p0 = scmp.ne.s32.totalorder %s1517_s2, %s2073_s4  ;;  %p2079_p2 = scmp.lt.s32.totalorder %s2073_s4, %s2073_s4 }
  0x4e   :  { %1952 = vmatprep.mubr.msk.f32.mxu0 %vm733_vm0, %v57_v16 }
  0x4f   :  { %p2080_p3 = por %p2079_p2, %p2078_p1 }
  0x50   :  { %1850 = vmatmul.mubr.msk.f32.gmra.mrb[34].mxu1 %vm155_vm1, %v122_v17 }
  0x51   :  { %1852 = vmatprep.mubr.msk.f32.mxu1 %vm155_vm1, %v123_v18  ;;  %1953 = vmatmul.mubr.msk.f32.gmra.mrb[36].mxu0 %vm733_vm0, %v58_v19  ;;  %p2081_p4 = pnand %p2080_p3, %p2074_p0 }
  0x52   :  { %1955 = vmatprep.mubr.msk.f32.mxu0 %vm733_vm0, %v59_v20 }
  0x54   :  { %1853 = vmatmul.mubr.msk.f32.gmra.mrb[36].mxu1 %vm155_vm1, %v124_v21 }
  0x55   :  { %1855 = vmatprep.mubr.msk.f32.mxu1 %vm155_vm1, %v125_v22  ;;  %1956 = vmatmul.mubr.msk.f32.gmra.mrb[38].mxu0 %vm733_vm0, %v60_v23 }
  0x56   :  { %1958 = vmatprep.mubr.msk.f32.mxu0 %vm733_vm0, %v61_v24 }
  0x58   :  { %1856 = vmatmul.mubr.msk.f32.gmra.mrb[38].mxu1 %vm155_vm1, %v126_v25 }
  0x59   :  { %1858 = vmatprep.mubr.msk.f32.mxu1 %vm155_vm1, %v127_v26  ;;  %1959 = vmatmul.mubr.msk.f32.gmra.mrb[40].mxu0 %vm733_vm0, %v62_v27 }
  0x5a   :  { %1961 = vmatprep.mubr.msk.f32.mxu0 %vm733_vm0, %v63_v28 }
  0x5c   :  { %1859 = vmatmul.mubr.msk.f32.gmra.mrb[40].mxu1 %vm155_vm1, %v128_v29 }
  0x5d   :  { %1861 = vmatprep.mubr.msk.f32.mxu1 %vm155_vm1, %v129_v30  ;;  %1962 = vmatmul.mubr.msk.f32.gmra.mrb[42].mxu0 %vm733_vm0, %v64_v31 }
  0x5e   :  { %1964 = vmatprep.mubr.msk.f32.mxu0 %vm733_vm0, %v65_v32 }
  0x60   :  { %1862 = vmatmul.mubr.msk.f32.gmra.mrb[42].mxu1 %vm155_vm1, %v130_v33 }
  0x61   :  { %1864 = vmatprep.mubr.msk.f32.mxu1 %vm155_vm1, %v131_v34  ;;  %1965 = vmatmul.mubr.msk.f32.gmra.mrb[44].mxu0 %vm733_vm0, %v66_v35 }
  0x62   :  { %1967 = vmatprep.mubr.msk.f32.mxu0 %vm733_vm0, %v67_v36 }
  0x64   :  { %1865 = vmatmul.mubr.msk.f32.gmra.mrb[44].mxu1 %vm155_vm1, %v132_v37 }
  0x65   :  { %1867 = vmatprep.mubr.msk.f32.mxu1 %vm155_vm1, %v133_v38  ;;  %1968 = vmatmul.mubr.msk.f32.gmra.mrb[46].mxu0 %vm733_vm0, %v68_v39 }
  0x66   :  { %1970 = vmatprep.mubr.msk.f32.mxu0 %vm733_vm0, %v69_v40 }
  0x68   :  { %1868 = vmatmul.mubr.msk.f32.gmra.mrb[46].mxu1 %vm155_vm1, %v134_v41 }
  0x69   :  { %1870 = vmatprep.mubr.msk.f32.mxu1 %vm155_vm1, %v135_v42  ;;  %1971 = vmatmul.mubr.msk.f32.gmra.mrb[48].mxu0 %vm733_vm0, %v70_v43 }
  0x6a   :  { %1973 = vmatprep.mubr.msk.f32.mxu0 %vm733_vm0, %v71_v44 }
  0x6c   :  { %1871 = vmatmul.mubr.msk.f32.gmra.mrb[48].mxu1 %vm155_vm1, %v136_v45 }
  0x6d   :  { %1873 = vmatprep.mubr.msk.f32.mxu1 %vm155_vm1, %v137_v46  ;;  %1974 = vmatmul.mubr.msk.f32.gmra.mrb[50].mxu0 %vm733_vm0, %v72_v47 }
  0x6e   :  { %1976 = vmatprep.mubr.msk.f32.mxu0 %vm733_vm0, %v73_v48 }
  0x70   :  { %1874 = vmatmul.mubr.msk.f32.gmra.mrb[50].mxu1 %vm155_vm1, %v138_v49 }
  0x71   :  { %1876 = vmatprep.mubr.msk.f32.mxu1 %vm155_vm1, %v139_v50  ;;  %1977 = vmatmul.mubr.msk.f32.gmra.mrb[52].mxu0 %vm733_vm0, %v74_v51 }
  0x72   :  { %1979 = vmatprep.mubr.msk.f32.mxu0 %vm733_vm0, %v75_v52 }
  0x74   :  { %1877 = vmatmul.mubr.msk.f32.gmra.mrb[52].mxu1 %vm155_vm1, %v140_v53 }
  0x75   :  { %1879 = vmatprep.mubr.msk.f32.mxu1 %vm155_vm1, %v141_v54  ;;  %1980 = vmatmul.mubr.msk.f32.gmra.mrb[54].mxu0 %vm733_vm0, %v76_v55 }
  0x76   :  { %1982 = vmatprep.mubr.msk.f32.mxu0 %vm733_vm0, %v77_v56 }
  0x78   :  { %1880 = vmatmul.mubr.msk.f32.gmra.mrb[54].mxu1 %vm155_vm1, %v142_v57 }
  0x79   :  { %1882 = vmatprep.mubr.msk.f32.mxu1 %vm155_vm1, %v143_v58  ;;  %1983 = vmatmul.mubr.msk.f32.gmra.mrb[56].mxu0 %vm733_vm0, %v78_v59 }
  0x7a   :  { %1985 = vmatprep.mubr.msk.f32.mxu0 %vm733_vm0, %v79_v60 }
  0x7c   :  { %1883 = vmatmul.mubr.msk.f32.gmra.mrb[56].mxu1 %vm155_vm1, %v144_v61 }
  0x7d   :  { %1885 = vmatprep.mubr.msk.f32.mxu1 %vm155_vm1, %v145_v62  ;;  %1986 = vmatmul.mubr.msk.f32.gmra.mrb[58].mxu0 %vm733_vm0, %v80_v63 }
  0x7e   :  { %1988 = vmatprep.mubr.msk.f32.mxu0 %vm733_vm0, %v81_v0 }
  0x80   :  { %1886 = vmatmul.mubr.msk.f32.gmra.mrb[58].mxu1 %vm155_vm1, %v146_v1 }
  0x81   :  { %1888 = vmatprep.mubr.msk.f32.mxu1 %vm155_vm1, %v147_v2  ;;  %1989 = vmatmul.mubr.msk.f32.gmra.mrb[60].mxu0 %vm733_vm0, %v82_v3 }
  0x82   :  { %1991 = vmatprep.mubr.msk.f32.mxu0 %vm733_vm0, %v83_v4 }
  0x84   :  { %1889 = vmatmul.mubr.msk.f32.gmra.mrb[60].mxu1 %vm155_vm1, %v148_v5 }
  0x85   :  { %1891 = vmatprep.mubr.msk.f32.mxu1 %vm155_vm1, %v149_v6  ;;  %1992 = vmatmul.mubr.msk.f32.gmra.mrb[62].mxu0 %vm733_vm0, %v84_v7 }
  0x88   :  { %1892 = vmatmul.mubr.msk.f32.gmra.mrb[62].mxu1 %vm155_vm1, %v150_v8 }
  0xdc   :  { %v1900_v9 = vpop.f32.mrb[0].mxu0 }
  0xdd   :  { %v992_v10 = vpop.f32.mrb[1].mxu0 }
  0xdf   :  { %v1800_v11 = vpop.f32.mrb[0].mxu1 }
  0xe0   :  { %v998_v13 = vadd.f32 %v1900_v9, %v1800_v11  ;;  %v414_v14 = vpop.f32.mrb[1].mxu1  ;;  %v1903_v15 = vpop.f32.mrb[2].mxu0 }
  0xe1   :  { %v993_v16 = vadd.f32 %v992_v10, %v414_v14  ;;  %v1002_v17 = vpop.f32.mrb[3].mxu0 }
  0xe2   :  { %v1319_v18 = vadd.f32 %v2663_v12, %v998_v13 }
  0xe3   :  { %v1318_v19 = vadd.f32 %v2663_v12, %v993_v16  ;;  %v1803_v20 = vpop.f32.mrb[2].mxu1 }
  0xe4   :  { %v1383_v21 = vmax.f32 %v1319_v18, 0.0  ;;  %v1008_v22 = vadd.f32 %v1903_v15, %v1803_v20  ;;  %v424_v23 = vpop.f32.mrb[3].mxu1  ;;  %v1906_v24 = vpop.f32.mrb[4].mxu0 }
  0xe5   :  { %v1382_v25 = vmax.f32 %v1318_v19, 0.0  ;;  %v1003_v26 = vadd.f32 %v1002_v17, %v424_v23  ;;  %v1012_v27 = vpop.f32.mrb[5].mxu0 }
  0xe6   :  { %1448 = vst.msk [vmem:[#allocation2 + $0x8] sm:$0xff] %vm1446_vm2, %v1383_v21  ;;  %v1321_v28 = vadd.f32 %v2663_v12, %v1008_v22 }
  0xe7   :  { %1447 = vst.msk [vmem:[#allocation2] sm:$0xff] %vm1446_vm2, %v1382_v25  ;;  %v1320_v29 = vadd.f32 %v2663_v12, %v1003_v26  ;;  %v1806_v30 = vpop.f32.mrb[4].mxu1 }
  0xe8   :  { %v1385_v31 = vmax.f32 %v1321_v28, 0.0  ;;  %v1018_v32 = vadd.f32 %v1906_v24, %v1806_v30  ;;  %v434_v33 = vpop.f32.mrb[5].mxu1  ;;  %v1909_v34 = vpop.f32.mrb[6].mxu0 }
  0xe9   :  { %v1384_v35 = vmax.f32 %v1320_v29, 0.0  ;;  %v1013_v36 = vadd.f32 %v1012_v27, %v434_v33  ;;  %v1022_v37 = vpop.f32.mrb[7].mxu0 }
  0xea   :  { %1450 = vst.msk [vmem:[#allocation2 + $0x18] sm:$0xff] %vm1446_vm2, %v1385_v31  ;;  %v1323_v38 = vadd.f32 %v2663_v12, %v1018_v32 }
  0xeb   :  { %1449 = vst.msk [vmem:[#allocation2 + $0x10] sm:$0xff] %vm1446_vm2, %v1384_v35  ;;  %v1322_v39 = vadd.f32 %v2663_v12, %v1013_v36  ;;  %v1809_v40 = vpop.f32.mrb[6].mxu1 }
  0xec   :  { %v1387_v41 = vmax.f32 %v1323_v38, 0.0  ;;  %v1028_v42 = vadd.f32 %v1909_v34, %v1809_v40  ;;  %v444_v43 = vpop.f32.mrb[7].mxu1  ;;  %v1912_v44 = vpop.f32.mrb[8].mxu0 }
  0xed   :  { %v1386_v45 = vmax.f32 %v1322_v39, 0.0  ;;  %v1023_v46 = vadd.f32 %v1022_v37, %v444_v43  ;;  %v1032_v47 = vpop.f32.mrb[9].mxu0 }
  0xee   :  { %1452 = vst.msk [vmem:[#allocation2 + $0x28] sm:$0xff] %vm1446_vm2, %v1387_v41  ;;  %v1325_v48 = vadd.f32 %v2663_v12, %v1028_v42 }
  0xef   :  { %1451 = vst.msk [vmem:[#allocation2 + $0x20] sm:$0xff] %vm1446_vm2, %v1386_v45  ;;  %v1324_v49 = vadd.f32 %v2663_v12, %v1023_v46  ;;  %v1812_v50 = vpop.f32.mrb[8].mxu1 }
  0xf0   :  { %v1389_v51 = vmax.f32 %v1325_v48, 0.0  ;;  %v1038_v52 = vadd.f32 %v1912_v44, %v1812_v50  ;;  %v454_v53 = vpop.f32.mrb[9].mxu1  ;;  %v1915_v54 = vpop.f32.mrb[10].mxu0 }
  0xf1   :  { %v1388_v55 = vmax.f32 %v1324_v49, 0.0  ;;  %v1033_v56 = vadd.f32 %v1032_v47, %v454_v53  ;;  %v1042_v57 = vpop.f32.mrb[11].mxu0 }
  0xf2   :  { %1454 = vst.msk [vmem:[#allocation2 + $0x38] sm:$0xff] %vm1446_vm2, %v1389_v51  ;;  %v1327_v58 = vadd.f32 %v2663_v12, %v1038_v52 }
  0xf3   :  { %1453 = vst.msk [vmem:[#allocation2 + $0x30] sm:$0xff] %vm1446_vm2, %v1388_v55  ;;  %v1326_v59 = vadd.f32 %v2663_v12, %v1033_v56  ;;  %v1815_v60 = vpop.f32.mrb[10].mxu1 }
  0xf4   :  { %v1391_v61 = vmax.f32 %v1327_v58, 0.0  ;;  %v1048_v62 = vadd.f32 %v1915_v54, %v1815_v60  ;;  %v464_v63 = vpop.f32.mrb[11].mxu1  ;;  %v1918_v0 = vpop.f32.mrb[12].mxu0 }
  0xf5   :  { %v1390_v1 = vmax.f32 %v1326_v59, 0.0  ;;  %v1043_v2 = vadd.f32 %v1042_v57, %v464_v63  ;;  %v1052_v3 = vpop.f32.mrb[13].mxu0 }
  0xf6   :  { %1456 = vst.msk [vmem:[#allocation2 + $0x48] sm:$0xff] %vm1446_vm2, %v1391_v61  ;;  %v1329_v4 = vadd.f32 %v2663_v12, %v1048_v62 }
  0xf7   :  { %1455 = vst.msk [vmem:[#allocation2 + $0x40] sm:$0xff] %vm1446_vm2, %v1390_v1  ;;  %v1328_v5 = vadd.f32 %v2663_v12, %v1043_v2  ;;  %v1818_v6 = vpop.f32.mrb[12].mxu1 }
  0xf8   :  { %v1393_v7 = vmax.f32 %v1329_v4, 0.0  ;;  %v1058_v8 = vadd.f32 %v1918_v0, %v1818_v6  ;;  %v474_v9 = vpop.f32.mrb[13].mxu1  ;;  %v1921_v10 = vpop.f32.mrb[14].mxu0 }
  0xf9   :  { %v1392_v11 = vmax.f32 %v1328_v5, 0.0  ;;  %v1053_v13 = vadd.f32 %v1052_v3, %v474_v9  ;;  %v1062_v14 = vpop.f32.mrb[15].mxu0 }
  0xfa   :  { %1458 = vst.msk [vmem:[#allocation2 + $0x58] sm:$0xff] %vm1446_vm2, %v1393_v7  ;;  %v1331_v15 = vadd.f32 %v2663_v12, %v1058_v8 }
  0xfb   :  { %1457 = vst.msk [vmem:[#allocation2 + $0x50] sm:$0xff] %vm1446_vm2, %v1392_v11  ;;  %v1330_v16 = vadd.f32 %v2663_v12, %v1053_v13  ;;  %v1821_v17 = vpop.f32.mrb[14].mxu1 }
  0xfc   :  { %v1395_v18 = vmax.f32 %v1331_v15, 0.0  ;;  %v1068_v19 = vadd.f32 %v1921_v10, %v1821_v17  ;;  %v484_v20 = vpop.f32.mrb[15].mxu1  ;;  %v1924_v21 = vpop.f32.mrb[16].mxu0 }
  0xfd   :  { %v1394_v22 = vmax.f32 %v1330_v16, 0.0  ;;  %v1063_v23 = vadd.f32 %v1062_v14, %v484_v20  ;;  %v1072_v24 = vpop.f32.mrb[17].mxu0 }
  0xfe   :  { %1460 = vst.msk [vmem:[#allocation2 + $0x68] sm:$0xff] %vm1446_vm2, %v1395_v18  ;;  %v1333_v25 = vadd.f32 %v2663_v12, %v1068_v19 }
  0xff   :  { %1459 = vst.msk [vmem:[#allocation2 + $0x60] sm:$0xff] %vm1446_vm2, %v1394_v22  ;;  %v1332_v26 = vadd.f32 %v2663_v12, %v1063_v23  ;;  %v1824_v27 = vpop.f32.mrb[16].mxu1 }
 0x100   :  { %v1397_v28 = vmax.f32 %v1333_v25, 0.0  ;;  %v1078_v29 = vadd.f32 %v1924_v21, %v1824_v27  ;;  %v494_v30 = vpop.f32.mrb[17].mxu1  ;;  %v1927_v31 = vpop.f32.mrb[18].mxu0 }
 0x101   :  { %v1396_v32 = vmax.f32 %v1332_v26, 0.0  ;;  %v1073_v33 = vadd.f32 %v1072_v24, %v494_v30  ;;  %v1082_v34 = vpop.f32.mrb[19].mxu0 }
 0x102   :  { %1462 = vst.msk [vmem:[#allocation2 + $0x78] sm:$0xff] %vm1446_vm2, %v1397_v28  ;;  %v1335_v35 = vadd.f32 %v2663_v12, %v1078_v29 }
 0x103   :  { %1461 = vst.msk [vmem:[#allocation2 + $0x70] sm:$0xff] %vm1446_vm2, %v1396_v32  ;;  %v1334_v36 = vadd.f32 %v2663_v12, %v1073_v33  ;;  %v1827_v37 = vpop.f32.mrb[18].mxu1 }
 0x104   :  { %v1399_v38 = vmax.f32 %v1335_v35, 0.0  ;;  %v1088_v39 = vadd.f32 %v1927_v31, %v1827_v37  ;;  %v504_v40 = vpop.f32.mrb[19].mxu1  ;;  %v1930_v41 = vpop.f32.mrb[20].mxu0 }
 0x105   :  { %v1398_v42 = vmax.f32 %v1334_v36, 0.0  ;;  %v1083_v43 = vadd.f32 %v1082_v34, %v504_v40  ;;  %v1092_v44 = vpop.f32.mrb[21].mxu0 }
 0x106   :  { %1464 = vst.msk [vmem:[#allocation2 + $0x88] sm:$0xff] %vm1446_vm2, %v1399_v38  ;;  %v1337_v45 = vadd.f32 %v2663_v12, %v1088_v39 }
 0x107   :  { %1463 = vst.msk [vmem:[#allocation2 + $0x80] sm:$0xff] %vm1446_vm2, %v1398_v42  ;;  %v1336_v46 = vadd.f32 %v2663_v12, %v1083_v43  ;;  %v1830_v47 = vpop.f32.mrb[20].mxu1 }
 0x108   :  { %v1401_v48 = vmax.f32 %v1337_v45, 0.0  ;;  %v1098_v49 = vadd.f32 %v1930_v41, %v1830_v47  ;;  %v514_v50 = vpop.f32.mrb[21].mxu1  ;;  %v1933_v51 = vpop.f32.mrb[22].mxu0 }
 0x109   :  { %v1400_v52 = vmax.f32 %v1336_v46, 0.0  ;;  %v1093_v53 = vadd.f32 %v1092_v44, %v514_v50  ;;  %v1102_v54 = vpop.f32.mrb[23].mxu0 }
 0x10a   :  { %1466 = vst.msk [vmem:[#allocation2 + $0x98] sm:$0xff] %vm1446_vm2, %v1401_v48  ;;  %v1339_v55 = vadd.f32 %v2663_v12, %v1098_v49 }
 0x10b   :  { %1465 = vst.msk [vmem:[#allocation2 + $0x90] sm:$0xff] %vm1446_vm2, %v1400_v52  ;;  %v1338_v56 = vadd.f32 %v2663_v12, %v1093_v53  ;;  %v1833_v57 = vpop.f32.mrb[22].mxu1 }
 0x10c   :  { %v1403_v58 = vmax.f32 %v1339_v55, 0.0  ;;  %v1108_v59 = vadd.f32 %v1933_v51, %v1833_v57  ;;  %v524_v60 = vpop.f32.mrb[23].mxu1  ;;  %v1936_v61 = vpop.f32.mrb[24].mxu0 }
 0x10d   :  { %v1402_v62 = vmax.f32 %v1338_v56, 0.0  ;;  %v1103_v63 = vadd.f32 %v1102_v54, %v524_v60  ;;  %v1112_v0 = vpop.f32.mrb[25].mxu0 }
 0x10e   :  { %1468 = vst.msk [vmem:[#allocation2 + $0xa8] sm:$0xff] %vm1446_vm2, %v1403_v58  ;;  %v1341_v1 = vadd.f32 %v2663_v12, %v1108_v59 }
 0x10f   :  { %1467 = vst.msk [vmem:[#allocation2 + $0xa0] sm:$0xff] %vm1446_vm2, %v1402_v62  ;;  %v1340_v2 = vadd.f32 %v2663_v12, %v1103_v63  ;;  %v1836_v3 = vpop.f32.mrb[24].mxu1 }
 0x110   :  { %v1405_v4 = vmax.f32 %v1341_v1, 0.0  ;;  %v1118_v5 = vadd.f32 %v1936_v61, %v1836_v3  ;;  %v534_v6 = vpop.f32.mrb[25].mxu1  ;;  %v1939_v7 = vpop.f32.mrb[26].mxu0 }
 0x111   :  { %v1404_v8 = vmax.f32 %v1340_v2, 0.0  ;;  %v1113_v9 = vadd.f32 %v1112_v0, %v534_v6  ;;  %v1122_v10 = vpop.f32.mrb[27].mxu0 }
 0x112   :  { %1470 = vst.msk [vmem:[#allocation2 + $0xb8] sm:$0xff] %vm1446_vm2, %v1405_v4  ;;  %v1343_v11 = vadd.f32 %v2663_v12, %v1118_v5 }
 0x113   :  { %1469 = vst.msk [vmem:[#allocation2 + $0xb0] sm:$0xff] %vm1446_vm2, %v1404_v8  ;;  %v1342_v13 = vadd.f32 %v2663_v12, %v1113_v9  ;;  %v1839_v14 = vpop.f32.mrb[26].mxu1 }
 0x114   :  { %v1407_v15 = vmax.f32 %v1343_v11, 0.0  ;;  %v1128_v16 = vadd.f32 %v1939_v7, %v1839_v14  ;;  %v544_v17 = vpop.f32.mrb[27].mxu1  ;;  %v1942_v18 = vpop.f32.mrb[28].mxu0 }
 0x115   :  { %v1406_v19 = vmax.f32 %v1342_v13, 0.0  ;;  %v1123_v20 = vadd.f32 %v1122_v10, %v544_v17  ;;  %v1132_v21 = vpop.f32.mrb[29].mxu0 }
 0x116   :  { %1472 = vst.msk [vmem:[#allocation2 + $0xc8] sm:$0xff] %vm1446_vm2, %v1407_v15  ;;  %v1345_v22 = vadd.f32 %v2663_v12, %v1128_v16 }
 0x117   :  { %1471 = vst.msk [vmem:[#allocation2 + $0xc0] sm:$0xff] %vm1446_vm2, %v1406_v19  ;;  %v1344_v23 = vadd.f32 %v2663_v12, %v1123_v20  ;;  %v1842_v24 = vpop.f32.mrb[28].mxu1 }
 0x118   :  { %v1409_v25 = vmax.f32 %v1345_v22, 0.0  ;;  %v1138_v26 = vadd.f32 %v1942_v18, %v1842_v24  ;;  %v554_v27 = vpop.f32.mrb[29].mxu1  ;;  %v1945_v28 = vpop.f32.mrb[30].mxu0 }
 0x119   :  { %v1408_v29 = vmax.f32 %v1344_v23, 0.0  ;;  %v1133_v30 = vadd.f32 %v1132_v21, %v554_v27  ;;  %v1142_v31 = vpop.f32.mrb[31].mxu0 }
 0x11a   :  { %1474 = vst.msk [vmem:[#allocation2 + $0xd8] sm:$0xff] %vm1446_vm2, %v1409_v25  ;;  %v1347_v32 = vadd.f32 %v2663_v12, %v1138_v26 }
 0x11b   :  { %1473 = vst.msk [vmem:[#allocation2 + $0xd0] sm:$0xff] %vm1446_vm2, %v1408_v29  ;;  %v1346_v33 = vadd.f32 %v2663_v12, %v1133_v30  ;;  %v1845_v34 = vpop.f32.mrb[30].mxu1 }
 0x11c   :  { %v1411_v35 = vmax.f32 %v1347_v32, 0.0  ;;  %v1148_v36 = vadd.f32 %v1945_v28, %v1845_v34  ;;  %v564_v37 = vpop.f32.mrb[31].mxu1  ;;  %v1948_v38 = vpop.f32.mrb[32].mxu0 }
 0x11d   :  { %v1410_v39 = vmax.f32 %v1346_v33, 0.0  ;;  %v1143_v40 = vadd.f32 %v1142_v31, %v564_v37  ;;  %v1152_v41 = vpop.f32.mrb[33].mxu0 }
 0x11e   :  { %1476 = vst.msk [vmem:[#allocation2 + $0xe8] sm:$0xff] %vm1446_vm2, %v1411_v35  ;;  %v1349_v42 = vadd.f32 %v2663_v12, %v1148_v36 }
 0x11f   :  { %1475 = vst.msk [vmem:[#allocation2 + $0xe0] sm:$0xff] %vm1446_vm2, %v1410_v39  ;;  %v1348_v43 = vadd.f32 %v2663_v12, %v1143_v40  ;;  %v1848_v44 = vpop.f32.mrb[32].mxu1 }
 0x120   :  { %v1413_v45 = vmax.f32 %v1349_v42, 0.0  ;;  %v1158_v46 = vadd.f32 %v1948_v38, %v1848_v44  ;;  %v574_v47 = vpop.f32.mrb[33].mxu1  ;;  %v1951_v48 = vpop.f32.mrb[34].mxu0 }
 0x121   :  { %v1412_v49 = vmax.f32 %v1348_v43, 0.0  ;;  %v1153_v50 = vadd.f32 %v1152_v41, %v574_v47  ;;  %v1162_v51 = vpop.f32.mrb[35].mxu0 }
 0x122   :  { %1478 = vst.msk [vmem:[#allocation2 + $0xf8] sm:$0xff] %vm1446_vm2, %v1413_v45  ;;  %v1351_v52 = vadd.f32 %v2663_v12, %v1158_v46 }
 0x123   :  { %1477 = vst.msk [vmem:[#allocation2 + $0xf0] sm:$0xff] %vm1446_vm2, %v1412_v49  ;;  %v1350_v53 = vadd.f32 %v2663_v12, %v1153_v50  ;;  %v1851_v54 = vpop.f32.mrb[34].mxu1 }
 0x124   :  { %v1415_v55 = vmax.f32 %v1351_v52, 0.0  ;;  %v1168_v56 = vadd.f32 %v1951_v48, %v1851_v54  ;;  %v584_v57 = vpop.f32.mrb[35].mxu1  ;;  %v1954_v58 = vpop.f32.mrb[36].mxu0 }
 0x125   :  { %v1414_v59 = vmax.f32 %v1350_v53, 0.0  ;;  %v1163_v60 = vadd.f32 %v1162_v51, %v584_v57  ;;  %v1172_v61 = vpop.f32.mrb[37].mxu0 }
 0x126   :  { %1480 = vst.msk [vmem:[#allocation2 + $0x108] sm:$0xff] %vm1446_vm2, %v1415_v55  ;;  %v1353_v62 = vadd.f32 %v2663_v12, %v1168_v56 }
 0x127   :  { %1479 = vst.msk [vmem:[#allocation2 + $0x100] sm:$0xff] %vm1446_vm2, %v1414_v59  ;;  %v1352_v63 = vadd.f32 %v2663_v12, %v1163_v60  ;;  %v1854_v0 = vpop.f32.mrb[36].mxu1 }
 0x128   :  { %v1417_v1 = vmax.f32 %v1353_v62, 0.0  ;;  %v1178_v2 = vadd.f32 %v1954_v58, %v1854_v0  ;;  %v594_v3 = vpop.f32.mrb[37].mxu1  ;;  %v1957_v4 = vpop.f32.mrb[38].mxu0 }
 0x129   :  { %v1416_v5 = vmax.f32 %v1352_v63, 0.0  ;;  %v1173_v6 = vadd.f32 %v1172_v61, %v594_v3  ;;  %v1182_v7 = vpop.f32.mrb[39].mxu0 }
 0x12a   :  { %1482 = vst.msk [vmem:[#allocation2 + $0x118] sm:$0xff] %vm1446_vm2, %v1417_v1  ;;  %v1355_v8 = vadd.f32 %v2663_v12, %v1178_v2 }
 0x12b   :  { %1481 = vst.msk [vmem:[#allocation2 + $0x110] sm:$0xff] %vm1446_vm2, %v1416_v5  ;;  %v1354_v9 = vadd.f32 %v2663_v12, %v1173_v6  ;;  %v1857_v10 = vpop.f32.mrb[38].mxu1 }
 0x12c   :  { %v1419_v11 = vmax.f32 %v1355_v8, 0.0  ;;  %v1188_v13 = vadd.f32 %v1957_v4, %v1857_v10  ;;  %v604_v14 = vpop.f32.mrb[39].mxu1  ;;  %v1960_v15 = vpop.f32.mrb[40].mxu0 }
 0x12d   :  { %v1418_v16 = vmax.f32 %v1354_v9, 0.0  ;;  %v1183_v17 = vadd.f32 %v1182_v7, %v604_v14  ;;  %v1192_v18 = vpop.f32.mrb[41].mxu0 }
 0x12e   :  { %1484 = vst.msk [vmem:[#allocation2 + $0x128] sm:$0xff] %vm1446_vm2, %v1419_v11  ;;  %v1357_v19 = vadd.f32 %v2663_v12, %v1188_v13 }
 0x12f   :  { %1483 = vst.msk [vmem:[#allocation2 + $0x120] sm:$0xff] %vm1446_vm2, %v1418_v16  ;;  %v1356_v20 = vadd.f32 %v2663_v12, %v1183_v17  ;;  %v1860_v21 = vpop.f32.mrb[40].mxu1 }
 0x130   :  { %v1421_v22 = vmax.f32 %v1357_v19, 0.0  ;;  %v1198_v23 = vadd.f32 %v1960_v15, %v1860_v21  ;;  %v614_v24 = vpop.f32.mrb[41].mxu1  ;;  %v1963_v25 = vpop.f32.mrb[42].mxu0 }
 0x131   :  { %v1420_v26 = vmax.f32 %v1356_v20, 0.0  ;;  %v1193_v27 = vadd.f32 %v1192_v18, %v614_v24  ;;  %v1202_v28 = vpop.f32.mrb[43].mxu0 }
 0x132   :  { %1486 = vst.msk [vmem:[#allocation2 + $0x138] sm:$0xff] %vm1446_vm2, %v1421_v22  ;;  %v1359_v29 = vadd.f32 %v2663_v12, %v1198_v23 }
 0x133   :  { %1485 = vst.msk [vmem:[#allocation2 + $0x130] sm:$0xff] %vm1446_vm2, %v1420_v26  ;;  %v1358_v30 = vadd.f32 %v2663_v12, %v1193_v27  ;;  %v1863_v31 = vpop.f32.mrb[42].mxu1 }
 0x134   :  { %v1423_v32 = vmax.f32 %v1359_v29, 0.0  ;;  %v1208_v33 = vadd.f32 %v1963_v25, %v1863_v31  ;;  %v624_v34 = vpop.f32.mrb[43].mxu1  ;;  %v1966_v35 = vpop.f32.mrb[44].mxu0 }
 0x135   :  { %v1422_v36 = vmax.f32 %v1358_v30, 0.0  ;;  %v1203_v37 = vadd.f32 %v1202_v28, %v624_v34  ;;  %v1212_v38 = vpop.f32.mrb[45].mxu0 }
 0x136   :  { %1488 = vst.msk [vmem:[#allocation2 + $0x148] sm:$0xff] %vm1446_vm2, %v1423_v32  ;;  %v1361_v39 = vadd.f32 %v2663_v12, %v1208_v33 }
 0x137   :  { %1487 = vst.msk [vmem:[#allocation2 + $0x140] sm:$0xff] %vm1446_vm2, %v1422_v36  ;;  %v1360_v40 = vadd.f32 %v2663_v12, %v1203_v37  ;;  %v1866_v41 = vpop.f32.mrb[44].mxu1 }
 0x138   :  { %v1425_v42 = vmax.f32 %v1361_v39, 0.0  ;;  %v1218_v43 = vadd.f32 %v1966_v35, %v1866_v41  ;;  %v634_v44 = vpop.f32.mrb[45].mxu1  ;;  %v1969_v45 = vpop.f32.mrb[46].mxu0 }
 0x139   :  { %v1424_v46 = vmax.f32 %v1360_v40, 0.0  ;;  %v1213_v47 = vadd.f32 %v1212_v38, %v634_v44  ;;  %v1222_v48 = vpop.f32.mrb[47].mxu0 }
 0x13a   :  { %1490 = vst.msk [vmem:[#allocation2 + $0x158] sm:$0xff] %vm1446_vm2, %v1425_v42  ;;  %v1363_v49 = vadd.f32 %v2663_v12, %v1218_v43 }
 0x13b   :  { %1489 = vst.msk [vmem:[#allocation2 + $0x150] sm:$0xff] %vm1446_vm2, %v1424_v46  ;;  %v1362_v50 = vadd.f32 %v2663_v12, %v1213_v47  ;;  %v1869_v51 = vpop.f32.mrb[46].mxu1 }
 0x13c   :  { %v1427_v52 = vmax.f32 %v1363_v49, 0.0  ;;  %v1228_v53 = vadd.f32 %v1969_v45, %v1869_v51  ;;  %v644_v54 = vpop.f32.mrb[47].mxu1  ;;  %v1972_v55 = vpop.f32.mrb[48].mxu0 }
 0x13d   :  { %v1426_v56 = vmax.f32 %v1362_v50, 0.0  ;;  %v1223_v57 = vadd.f32 %v1222_v48, %v644_v54  ;;  %v1232_v58 = vpop.f32.mrb[49].mxu0 }
 0x13e   :  { %1492 = vst.msk [vmem:[#allocation2 + $0x168] sm:$0xff] %vm1446_vm2, %v1427_v52  ;;  %v1365_v59 = vadd.f32 %v2663_v12, %v1228_v53 }
 0x13f   :  { %1491 = vst.msk [vmem:[#allocation2 + $0x160] sm:$0xff] %vm1446_vm2, %v1426_v56  ;;  %v1364_v60 = vadd.f32 %v2663_v12, %v1223_v57  ;;  %v1872_v61 = vpop.f32.mrb[48].mxu1 }
 0x140   :  { %v1429_v62 = vmax.f32 %v1365_v59, 0.0  ;;  %v1238_v63 = vadd.f32 %v1972_v55, %v1872_v61  ;;  %v654_v0 = vpop.f32.mrb[49].mxu1  ;;  %v1975_v1 = vpop.f32.mrb[50].mxu0 }
 0x141   :  { %v1428_v2 = vmax.f32 %v1364_v60, 0.0  ;;  %v1233_v3 = vadd.f32 %v1232_v58, %v654_v0  ;;  %v1242_v4 = vpop.f32.mrb[51].mxu0 }
 0x142   :  { %1494 = vst.msk [vmem:[#allocation2 + $0x178] sm:$0xff] %vm1446_vm2, %v1429_v62  ;;  %v1367_v5 = vadd.f32 %v2663_v12, %v1238_v63 }
 0x143   :  { %1493 = vst.msk [vmem:[#allocation2 + $0x170] sm:$0xff] %vm1446_vm2, %v1428_v2  ;;  %v1366_v6 = vadd.f32 %v2663_v12, %v1233_v3  ;;  %v1875_v7 = vpop.f32.mrb[50].mxu1 }
 0x144   :  { %v1431_v8 = vmax.f32 %v1367_v5, 0.0  ;;  %v1248_v9 = vadd.f32 %v1975_v1, %v1875_v7  ;;  %v664_v10 = vpop.f32.mrb[51].mxu1  ;;  %v1978_v11 = vpop.f32.mrb[52].mxu0 }
 0x145   :  { %v1430_v13 = vmax.f32 %v1366_v6, 0.0  ;;  %v1243_v14 = vadd.f32 %v1242_v4, %v664_v10  ;;  %v1252_v15 = vpop.f32.mrb[53].mxu0 }
 0x146   :  { %1496 = vst.msk [vmem:[#allocation2 + $0x188] sm:$0xff] %vm1446_vm2, %v1431_v8  ;;  %v1369_v16 = vadd.f32 %v2663_v12, %v1248_v9 }
 0x147   :  { %1495 = vst.msk [vmem:[#allocation2 + $0x180] sm:$0xff] %vm1446_vm2, %v1430_v13  ;;  %v1368_v17 = vadd.f32 %v2663_v12, %v1243_v14  ;;  %v1878_v18 = vpop.f32.mrb[52].mxu1 }
 0x148   :  { %v1433_v19 = vmax.f32 %v1369_v16, 0.0  ;;  %v1258_v20 = vadd.f32 %v1978_v11, %v1878_v18  ;;  %v674_v21 = vpop.f32.mrb[53].mxu1  ;;  %v1981_v22 = vpop.f32.mrb[54].mxu0 }
 0x149   :  { %v1432_v23 = vmax.f32 %v1368_v17, 0.0  ;;  %v1253_v24 = vadd.f32 %v1252_v15, %v674_v21  ;;  %v1262_v25 = vpop.f32.mrb[55].mxu0 }
 0x14a   :  { %1498 = vst.msk [vmem:[#allocation2 + $0x198] sm:$0xff] %vm1446_vm2, %v1433_v19  ;;  %v1371_v26 = vadd.f32 %v2663_v12, %v1258_v20 }
 0x14b   :  { %1497 = vst.msk [vmem:[#allocation2 + $0x190] sm:$0xff] %vm1446_vm2, %v1432_v23  ;;  %v1370_v27 = vadd.f32 %v2663_v12, %v1253_v24  ;;  %v1881_v28 = vpop.f32.mrb[54].mxu1 }
 0x14c   :  { %v1435_v29 = vmax.f32 %v1371_v26, 0.0  ;;  %v1268_v30 = vadd.f32 %v1981_v22, %v1881_v28  ;;  %v684_v31 = vpop.f32.mrb[55].mxu1  ;;  %v1984_v32 = vpop.f32.mrb[56].mxu0 }
 0x14d   :  { %v1434_v33 = vmax.f32 %v1370_v27, 0.0  ;;  %v1263_v34 = vadd.f32 %v1262_v25, %v684_v31  ;;  %v1272_v35 = vpop.f32.mrb[57].mxu0 }
 0x14e   :  { %1500 = vst.msk [vmem:[#allocation2 + $0x1a8] sm:$0xff] %vm1446_vm2, %v1435_v29  ;;  %v1373_v36 = vadd.f32 %v2663_v12, %v1268_v30 }
 0x14f   :  { %1499 = vst.msk [vmem:[#allocation2 + $0x1a0] sm:$0xff] %vm1446_vm2, %v1434_v33  ;;  %v1372_v37 = vadd.f32 %v2663_v12, %v1263_v34  ;;  %v1884_v38 = vpop.f32.mrb[56].mxu1 }
 0x150   :  { %v1437_v39 = vmax.f32 %v1373_v36, 0.0  ;;  %v1278_v40 = vadd.f32 %v1984_v32, %v1884_v38  ;;  %v694_v41 = vpop.f32.mrb[57].mxu1  ;;  %v1987_v42 = vpop.f32.mrb[58].mxu0 }
 0x151   :  { %v1436_v43 = vmax.f32 %v1372_v37, 0.0  ;;  %v1273_v44 = vadd.f32 %v1272_v35, %v694_v41  ;;  %v1282_v45 = vpop.f32.mrb[59].mxu0 }
 0x152   :  { %1502 = vst.msk [vmem:[#allocation2 + $0x1b8] sm:$0xff] %vm1446_vm2, %v1437_v39  ;;  %v1375_v46 = vadd.f32 %v2663_v12, %v1278_v40 }
 0x153   :  { %1501 = vst.msk [vmem:[#allocation2 + $0x1b0] sm:$0xff] %vm1446_vm2, %v1436_v43  ;;  %v1374_v47 = vadd.f32 %v2663_v12, %v1273_v44  ;;  %v1887_v48 = vpop.f32.mrb[58].mxu1 }
 0x154   :  { %v1439_v49 = vmax.f32 %v1375_v46, 0.0  ;;  %v1288_v50 = vadd.f32 %v1987_v42, %v1887_v48  ;;  %v704_v51 = vpop.f32.mrb[59].mxu1  ;;  %v1990_v52 = vpop.f32.mrb[60].mxu0 }
 0x155   :  { %v1438_v53 = vmax.f32 %v1374_v47, 0.0  ;;  %v1283_v54 = vadd.f32 %v1282_v45, %v704_v51  ;;  %v1292_v55 = vpop.f32.mrb[61].mxu0 }
 0x156   :  { %1504 = vst.msk [vmem:[#allocation2 + $0x1c8] sm:$0xff] %vm1446_vm2, %v1439_v49  ;;  %v1377_v56 = vadd.f32 %v2663_v12, %v1288_v50 }
 0x157   :  { %1503 = vst.msk [vmem:[#allocation2 + $0x1c0] sm:$0xff] %vm1446_vm2, %v1438_v53  ;;  %v1376_v57 = vadd.f32 %v2663_v12, %v1283_v54  ;;  %v1890_v58 = vpop.f32.mrb[60].mxu1 }
 0x158   :  { %v1441_v59 = vmax.f32 %v1377_v56, 0.0  ;;  %v1298_v60 = vadd.f32 %v1990_v52, %v1890_v58  ;;  %v714_v61 = vpop.f32.mrb[61].mxu1  ;;  %v1993_v62 = vpop.f32.mrb[62].mxu0 }
 0x159   :  { %v1440_v63 = vmax.f32 %v1376_v57, 0.0  ;;  %v1293_v0 = vadd.f32 %v1292_v55, %v714_v61  ;;  %v1302_v1 = vpop.f32.mrb[63].mxu0 }
 0x15a   :  { %1506 = vst.msk [vmem:[#allocation2 + $0x1d8] sm:$0xff] %vm1446_vm2, %v1441_v59  ;;  %v1379_v2 = vadd.f32 %v2663_v12, %v1298_v60 }
 0x15b   :  { %1505 = vst.msk [vmem:[#allocation2 + $0x1d0] sm:$0xff] %vm1446_vm2, %v1440_v63  ;;  %v1378_v3 = vadd.f32 %v2663_v12, %v1293_v0  ;;  %v1893_v4 = vpop.f32.mrb[62].mxu1 }
 0x15c   :  { %v1443_v5 = vmax.f32 %v1379_v2, 0.0  ;;  %v1308_v6 = vadd.f32 %v1993_v62, %v1893_v4  ;;  %v724_v7 = vpop.f32.mrb[63].mxu1 }
 0x15d   :  { %v1442_v8 = vmax.f32 %v1378_v3, 0.0  ;;  %v1303_v9 = vadd.f32 %v1302_v1, %v724_v7 }
 0x15e   :  { %1508 = vst.msk [vmem:[#allocation2 + $0x1e8] sm:$0xff] %vm1446_vm2, %v1443_v5  ;;  %v1381_v10 = vadd.f32 %v2663_v12, %v1308_v6 }
 0x15f   :  { %1507 = vst.msk [vmem:[#allocation2 + $0x1e0] sm:$0xff] %vm1446_vm2, %v1442_v8  ;;  %v1380_v11 = vadd.f32 %v2663_v12, %v1303_v9 }
 0x160   :  { %v1445_v13 = vmax.f32 %v1381_v10, 0.0 }
 0x161   :  { %v1444_v14 = vmax.f32 %v1380_v11, 0.0 }
 0x162   :  { %1510 = vst.msk [vmem:[#allocation2 + $0x1f8] sm:$0xff] %vm1446_vm2, %v1445_v13 }
 0x163   :  { %1509 = vst.msk [vmem:[#allocation2 + $0x1f0] sm:$0xff] %vm1446_vm2, %v1444_v14 }
 0x164   :  { %2084 = shalt.err (!%p2081_p4)
}
 0x165   :  { %s2085_s20 = scalar_lea.hbm %s2810_s5, 8192 }
 0x166   :  { %p2086_p5 = scmp.ne.s32.totalorder %s2810_s5, %s2085_s20  ;;  %p2089_p6 = scmp.lt.u32.totalorder %s2085_s20, %s2810_s5 }
 0x168   :  { %p2091_p7 = pnand %p2089_p6, %p2086_p5 }
 0x16a   :  { %2094 = shalt.err (!%p2091_p7)
}
 0x16b   :  { %s2098_s25 = smov 128   ;;  %s2099_s26 = smov 8  }
 0x16c   :  { %1522 = dma.vmem_to_hbm [thread:$0]  %s1517_s2, 8192, %s2810_s5, [#allocation3], %s2098_s25, %s2098_s25, %s2099_s26  }
 0x16d   :  { %2095 = dma.done.wait [#allocation3], 8192  }
 0x16e   :  { %2096 = vsyncadd [#allocation3], 4294959104 }
 0x16f   :  { %1526 = vsyncpa [#allocation3], 1 }

</bundles_post_ra>
